<compile_context>
chip_gen: v6e
topology: v6e:2x2x1
jax: 0.10.0
libtpu: 0.0.40
codegen_flags: <defaults>
</compile_context>

<pallas_src>
import functools

import jax
import jax.numpy as jnp
from jax.experimental import pallas as pl
from jax.experimental.pallas import tpu as pltpu

LPAD = 8        # left halo columns in the staging buffer (>= 3, multiple of 8)
RPAD = 8        # right halo columns (>= 3, multiple of 8)
PAD_EFF = 3     # effective SAME padding of the 1x7 conv after the crop
KW = 7          # conv2 kernel width


def _fused_conv_gate_kernel(x_ref, w_ref, o_ref, xp_ref, acc_ref):
    """One row tile: both convs as 7 shifted (TR*W,128)@(128,128) matmuls.

    x_ref  : (TR, W, CI)        bf16  input tile, channels on lanes
    w_ref  : (KW, CI, 2*CO)     bf16  fused weights (lanes 0:CO = conv2 tap t,
                                      lanes CO:2CO = conv1 at the center tap)
    o_ref  : (TR, W, CO)        f32   gated output tile
    xp_ref : (TR, W+16, CI)     bf16  zero-halo staging scratch
    acc_ref: (TR*W, 2*CO)       f32   fused conv accumulator scratch
    """
    TR, W, CI = x_ref.shape
    CO = o_ref.shape[-1]

    # Stage the tile with a zero halo so every tap is a full-width matmul and
    # the 1x7 conv sees zero padding at the image edges.  Halo columns are
    # re-zeroed every step so the kernel is safe under "parallel" semantics.
    xp_ref[:, 0:LPAD, :] = jnp.zeros((TR, LPAD, CI), dtype=xp_ref.dtype)
    xp_ref[:, LPAD + W:, :] = jnp.zeros((TR, RPAD, CI), dtype=xp_ref.dtype)
    xp_ref[:, LPAD:LPAD + W, :] = x_ref[...]

    # 7-tap fused conv, statically unrolled so the scheduler can interleave the
    # shifted loads with the MXU pushes.  Tap t reads x[w + t - PAD_EFF].
    for t in range(KW):
        start = LPAD - PAD_EFF + t                       # static offset, 5..11
        lhs = xp_ref[:, start:start + W, :].reshape(TR * W, CI)
        contrib = jax.lax.dot_general(
            lhs, w_ref[t],
            dimension_numbers=(((1,), (0,)), ((), ())),
            preferred_element_type=jnp.float32)
        if t == 0:
            acc_ref[...] = contrib
        else:
            acc_ref[...] += contrib

    # Hardswish-like gate epilogue: pure VPU work (clip = cmp+select, * const).
    acc = acc_ref[...]
    t2 = acc[:, 0:CO]            # conv2 (SAME pad=3) output
    t1 = acc[:, CO:2 * CO]       # conv1 (1x1) output
    s = jnp.clip(t1 + t2, 0.0, 6.0)
    d = jnp.clip(t1 - t2, 0.0, 6.0)
    gate = s * d * (1.0 / 6.0)
    o_ref[...] = gate.reshape(TR, W, CO).astype(o_ref.dtype)


def _build_fused_weight(w1, w2):
    """Fused (KW, CI, 2*CO) bf16 weight: lanes [0,CO) = conv2 tap t, lanes
    [CO,2CO) = conv1, placed only at the center tap (zeros elsewhere)."""
    CO, CI = w1.shape[0], w1.shape[1]
    assert w2.shape == (CO, CI, 1, KW)
    wf = jnp.zeros((KW, CI, 2 * CO), jnp.float32)
    wf = wf.at[:, :, 0:CO].set(jnp.transpose(w2[:, :, 0, :], (2, 1, 0)))
    wf = wf.at[PAD_EFF, :, CO:2 * CO].set(jnp.transpose(w1[:, :, 0, 0], (1, 0)))
    return wf.astype(jnp.bfloat16)


def _pick_tile_rows(rows, width, ci, co, vmem_budget_bytes=40 * 1024 * 1024):
    """Largest row tile that keeps double-buffered blocks + scratch <= budget
    (budget chosen so the same tile also fits v7x's 64 MiB VMEM)."""
    per_row = (2 * width * ci * 2                    # x tile (bf16), 2 buffers
               + 2 * width * co * 4                  # out tile (f32), 2 buffers
               + (width + LPAD + RPAD) * ci * 2      # xp scratch (bf16)
               + width * 2 * co * 4)                 # acc scratch (f32)
    tr = max(1, min(rows, 64, vmem_budget_bytes // per_row))
    if tr >= 8:
        tr -= tr % 8
    return tr


@functools.partial(jax.jit, static_argnames=("tile_rows",))
def fused_conv_gate(x, w1, w2, tile_rows=None):
    """NCHW forward of the (fixed-up) PyTorch Model with one Pallas kernel."""
    N, CI, H, W = x.shape
    CO = w1.shape[0]
    assert w1.shape == (CO, CI, 1, 1) and w2.shape == (CO, CI, 1, KW)
    assert CI % 128 == 0 and W >= KW and W % 8 == 0

    # Channels-last rows layout (rows = N*H, W, C_in), cast to bf16 so the
    # kernel-side HBM read of x is halved.  This transpose is the only extra
    # HBM pass (NCHW adapter); there is no wrapper-side width padding of x.
    rows = N * H
    x_rows = jnp.transpose(x, (0, 2, 3, 1)).reshape(rows, W, CI)
    x_rows = x_rows.astype(jnp.bfloat16)
    wf = _build_fused_weight(w1, w2)

    tr = tile_rows if tile_rows is not None else _pick_tile_rows(rows, W, CI, CO)
    rem = rows % tr
    if rem:
        x_rows = jnp.pad(x_rows, ((0, tr - rem), (0, 0), (0, 0)))
    rows_p = x_rows.shape[0]
    grid = (rows_p // tr,)

    est_vmem = tr * (2 * W * CI * 2 + 2 * W * CO * 4
                     + (W + LPAD + RPAD) * CI * 2 + W * 2 * CO * 4) \
        + 2 * KW * CI * 2 * CO * 2
    vmem_limit = int(min(64 * 1024 * 1024,
                         max(32 * 1024 * 1024, est_vmem + (8 << 20))))

    out_rows = pl.pallas_call(
        _fused_conv_gate_kernel,
        out_shape=jax.ShapeDtypeStruct((rows_p, W, CO), jnp.float32),
        grid=grid,
        in_specs=[
            pl.BlockSpec((tr, W, CI), lambda i: (i, 0, 0)),
            pl.BlockSpec((KW, CI, 2 * CO), lambda i: (0, 0, 0)),  # resident
        ],
        out_specs=pl.BlockSpec((tr, W, CO), lambda i: (i, 0, 0)),
        scratch_shapes=[
            pltpu.VMEM((tr, W + LPAD + RPAD, CI), jnp.bfloat16),
            pltpu.VMEM((tr * W, 2 * CO), jnp.float32),
        ],
        compiler_params=pltpu.CompilerParams(
            dimension_semantics=("parallel",),
            vmem_limit_bytes=vmem_limit),
    )(x_rows, wf)

    out = out_rows[:rows].reshape(N, H, W, CO)
    return jnp.transpose(out, (0, 3, 1, 2))


def _reference_forward(x, w1, w2):
    """Pure-JAX reference with the same numerics convention (bf16 inputs and
    weights, f32 accumulation, SAME pad=3 crop of conv2)."""
    f32 = jnp.float32
    xb = x.astype(jnp.bfloat16).astype(f32)
    w1b = w1.astype(jnp.bfloat16).astype(f32)
    w2b = w2.astype(jnp.bfloat16).astype(f32)
    hi = jax.lax.Precision.HIGHEST
    x_nhwc = jnp.transpose(xb, (0, 2, 3, 1))
    t1 = jnp.einsum("nhwc,oc->nhwo", x_nhwc, w1b[:, :, 0, 0], precision=hi)
    xpad = jnp.pad(x_nhwc, ((0, 0), (0, 0), (PAD_EFF, PAD_EFF), (0, 0)))
    W = x.shape[3]
    t2 = sum(
        jnp.einsum("nhwc,oc->nhwo", xpad[:, :, t:t + W, :], w2b[:, :, 0, t],
                   precision=hi)
        for t in range(KW))
    s = jnp.clip(t1 + t2, 0.0, 6.0)
    d = jnp.clip(t1 - t2, 0.0, 6.0)
    out = s * d / 6.0
    return jnp.transpose(out, (0, 3, 1, 2))


if __name__ == "__main__":
    key = jax.random.PRNGKey(0)
    kx, k1, k2 = jax.random.split(key, 3)

    # Small shapes; the module itself fixes C_in=128 and C_out=64.
    N, CI, H, W = 1, 128, 16, 32
    CO = 64
    x = jax.random.normal(kx, (N, CI, H, W), dtype=jnp.float32)
    w1 = jax.random.normal(k1, (CO, CI, 1, 1), dtype=jnp.float32) * 0.05
    w2 = jax.random.normal(k2, (CO, CI, 1, KW), dtype=jnp.float32) * 0.05

    out = fused_conv_gate(x, w1, w2, tile_rows=8)   # 2 grid steps at this size
    out = jax.block_until_ready(out)

    ref = _reference_forward(x, w1, w2)
    err = float(jnp.max(jnp.abs(out - ref)))
    assert out.shape == (N, CO, H, W), out.shape
    assert err < 2e-2, f"max abs error {err}"
    print("KERNEL_OK")
</pallas_src>

<mosaic_0001>
module attributes {stable_mosaic.version = 11 : i64} {
  func.func @_fused_conv_gate_kernel(%arg0: i32, %arg1: memref<8x32x128xbf16, #tpu.memory_space<vmem>>, %arg2: memref<7x128x128xbf16, #tpu.memory_space<vmem>>, %arg3: memref<8x32x64xf32, #tpu.memory_space<vmem>>, %arg4: memref<8x48x128xbf16, #tpu.memory_space<vmem>>, %arg5: memref<256x128xf32, #tpu.memory_space<vmem>>) attributes {dimension_semantics = [#tpu.dimension_semantics<parallel>], iteration_bounds = array<i64: 2>, scalar_prefetch = 0 : i64, scratch_operands = 2 : i64, tpu.core_type = #tpu.core_type<tc>, window_params = [{transform_indices = @transform_0, window_bounds = array<i64: 8, 32, 128>}, {pipeline_mode = #tpu.pipeline_mode<synchronous>, transform_indices = @transform_1, window_bounds = array<i64: 7, 128, 128>}, {transform_indices = @transform_2, window_bounds = array<i64: 8, 32, 64>}]} {
    %cst = arith.constant 0.000000e+00 : bf16
    %0 = vector.broadcast %cst : bf16 to vector<8x8x128xbf16>
    %c0 = arith.constant 0 : index
    %c0_0 = arith.constant 0 : index
    %c0_1 = arith.constant 0 : index
    %1 = vector.load %arg4[%c0, %c0_0, %c0_1] : memref<8x48x128xbf16, #tpu.memory_space<vmem>>, vector<8x8x128xbf16>
    tpu.vector_store %arg4[%c0, %c0_0, %c0_1], %0 {strides = array<i32>} : memref<8x48x128xbf16, #tpu.memory_space<vmem>>, vector<8x8x128xbf16>,
    %cst_2 = arith.constant 0.000000e+00 : bf16
    %2 = vector.broadcast %cst_2 : bf16 to vector<8x8x128xbf16>
    %c0_3 = arith.constant 0 : index
    %c40 = arith.constant 40 : index
    %c0_4 = arith.constant 0 : index
    %3 = vector.load %arg4[%c0_3, %c40, %c0_4] : memref<8x48x128xbf16, #tpu.memory_space<vmem>>, vector<8x8x128xbf16>
    tpu.vector_store %arg4[%c0_3, %c40, %c0_4], %2 {strides = array<i32>} : memref<8x48x128xbf16, #tpu.memory_space<vmem>>, vector<8x8x128xbf16>,
    %c0_5 = arith.constant 0 : index
    %c0_6 = arith.constant 0 : index
    %c0_7 = arith.constant 0 : index
    %4 = vector.load %arg1[%c0_5, %c0_6, %c0_7] : memref<8x32x128xbf16, #tpu.memory_space<vmem>>, vector<8x32x128xbf16>
    %c0_8 = arith.constant 0 : index
    %c8 = arith.constant 8 : index
    %c0_9 = arith.constant 0 : index
    %5 = vector.load %arg4[%c0_8, %c8, %c0_9] : memref<8x48x128xbf16, #tpu.memory_space<vmem>>, vector<8x32x128xbf16>
    tpu.vector_store %arg4[%c0_8, %c8, %c0_9], %4 {strides = array<i32>} : memref<8x48x128xbf16, #tpu.memory_space<vmem>>, vector<8x32x128xbf16>,
    %c0_10 = arith.constant 0 : index
    %c5 = arith.constant 5 : index
    %c0_11 = arith.constant 0 : index
    %6 = vector.load %arg4[%c0_10, %c5, %c0_11] : memref<8x48x128xbf16, #tpu.memory_space<vmem>>, vector<8x32x128xbf16>
    %7 = vector.shape_cast %6 : vector<8x32x128xbf16> to vector<256x128xbf16>
    %c0_12 = arith.constant 0 : index
    %c0_13 = arith.constant 0 : index
    %c0_14 = arith.constant 0 : index
    %8 = vector.load %arg2[%c0_12, %c0_13, %c0_14] : memref<7x128x128xbf16, #tpu.memory_space<vmem>>, vector<1x128x128xbf16>
    %9 = vector.shape_cast %8 : vector<1x128x128xbf16> to vector<128x128xbf16>
    %cst_15 = arith.constant dense<0.000000e+00> : vector<256x128xf32>
    %10 = tpu.matmul %7, %9, %cst_15 {dimension_numbers = #tpu.dot_dimension_numbers<[1], [0], [0], [1], [0, 0, 1, 1], [], []>} : vector<256x128xbf16>, vector<128x128xbf16>, vector<256x128xf32> -> vector<256x128xf32>
    %c0_16 = arith.constant 0 : index
    %c0_17 = arith.constant 0 : index
    %11 = vector.load %arg5[%c0_16, %c0_17] : memref<256x128xf32, #tpu.memory_space<vmem>>, vector<256x128xf32>
    tpu.vector_store %arg5[%c0_16, %c0_17], %10 {strides = array<i32>} : memref<256x128xf32, #tpu.memory_space<vmem>>, vector<256x128xf32>,
    %c0_18 = arith.constant 0 : index
    %c6 = arith.constant 6 : index
    %c0_19 = arith.constant 0 : index
    %12 = vector.load %arg4[%c0_18, %c6, %c0_19] : memref<8x48x128xbf16, #tpu.memory_space<vmem>>, vector<8x32x128xbf16>
    %13 = vector.shape_cast %12 : vector<8x32x128xbf16> to vector<256x128xbf16>
    %c1 = arith.constant 1 : index
    %c0_20 = arith.constant 0 : index
    %c0_21 = arith.constant 0 : index
    %14 = vector.load %arg2[%c1, %c0_20, %c0_21] : memref<7x128x128xbf16, #tpu.memory_space<vmem>>, vector<1x128x128xbf16>
    %15 = vector.shape_cast %14 : vector<1x128x128xbf16> to vector<128x128xbf16>
    %cst_22 = arith.constant dense<0.000000e+00> : vector<256x128xf32>
    %16 = tpu.matmul %13, %15, %cst_22 {dimension_numbers = #tpu.dot_dimension_numbers<[1], [0], [0], [1], [0, 0, 1, 1], [], []>} : vector<256x128xbf16>, vector<128x128xbf16>, vector<256x128xf32> -> vector<256x128xf32>
    %c0_23 = arith.constant 0 : index
    %c0_24 = arith.constant 0 : index
    %17 = vector.load %arg5[%c0_23, %c0_24] : memref<256x128xf32, #tpu.memory_space<vmem>>, vector<256x128xf32>
    %18 = arith.addf %17, %16 : vector<256x128xf32>
    %c0_25 = arith.constant 0 : index
    %c0_26 = arith.constant 0 : index
    %19 = vector.load %arg5[%c0_25, %c0_26] : memref<256x128xf32, #tpu.memory_space<vmem>>, vector<256x128xf32>
    tpu.vector_store %arg5[%c0_25, %c0_26], %18 {strides = array<i32>} : memref<256x128xf32, #tpu.memory_space<vmem>>, vector<256x128xf32>,
    %c0_27 = arith.constant 0 : index
    %c7 = arith.constant 7 : index
    %c0_28 = arith.constant 0 : index
    %20 = vector.load %arg4[%c0_27, %c7, %c0_28] : memref<8x48x128xbf16, #tpu.memory_space<vmem>>, vector<8x32x128xbf16>
    %21 = vector.shape_cast %20 : vector<8x32x128xbf16> to vector<256x128xbf16>
    %c2 = arith.constant 2 : index
    %c0_29 = arith.constant 0 : index
    %c0_30 = arith.constant 0 : index
    %22 = vector.load %arg2[%c2, %c0_29, %c0_30] : memref<7x128x128xbf16, #tpu.memory_space<vmem>>, vector<1x128x128xbf16>
    %23 = vector.shape_cast %22 : vector<1x128x128xbf16> to vector<128x128xbf16>
    %cst_31 = arith.constant dense<0.000000e+00> : vector<256x128xf32>
    %24 = tpu.matmul %21, %23, %cst_31 {dimension_numbers = #tpu.dot_dimension_numbers<[1], [0], [0], [1], [0, 0, 1, 1], [], []>} : vector<256x128xbf16>, vector<128x128xbf16>, vector<256x128xf32> -> vector<256x128xf32>
    %c0_32 = arith.constant 0 : index
    %c0_33 = arith.constant 0 : index
    %25 = vector.load %arg5[%c0_32, %c0_33] : memref<256x128xf32, #tpu.memory_space<vmem>>, vector<256x128xf32>
    %26 = arith.addf %25, %24 : vector<256x128xf32>
    %c0_34 = arith.constant 0 : index
    %c0_35 = arith.constant 0 : index
    %27 = vector.load %arg5[%c0_34, %c0_35] : memref<256x128xf32, #tpu.memory_space<vmem>>, vector<256x128xf32>
    tpu.vector_store %arg5[%c0_34, %c0_35], %26 {strides = array<i32>} : memref<256x128xf32, #tpu.memory_space<vmem>>, vector<256x128xf32>,
    %c0_36 = arith.constant 0 : index
    %c8_37 = arith.constant 8 : index
    %c0_38 = arith.constant 0 : index
    %28 = vector.load %arg4[%c0_36, %c8_37, %c0_38] : memref<8x48x128xbf16, #tpu.memory_space<vmem>>, vector<8x32x128xbf16>
    %29 = vector.shape_cast %28 : vector<8x32x128xbf16> to vector<256x128xbf16>
    %c3 = arith.constant 3 : index
    %c0_39 = arith.constant 0 : index
    %c0_40 = arith.constant 0 : index
    %30 = vector.load %arg2[%c3, %c0_39, %c0_40] : memref<7x128x128xbf16, #tpu.memory_space<vmem>>, vector<1x128x128xbf16>
    %31 = vector.shape_cast %30 : vector<1x128x128xbf16> to vector<128x128xbf16>
    %cst_41 = arith.constant dense<0.000000e+00> : vector<256x128xf32>
    %32 = tpu.matmul %29, %31, %cst_41 {dimension_numbers = #tpu.dot_dimension_numbers<[1], [0], [0], [1], [0, 0, 1, 1], [], []>} : vector<256x128xbf16>, vector<128x128xbf16>, vector<256x128xf32> -> vector<256x128xf32>
    %c0_42 = arith.constant 0 : index
    %c0_43 = arith.constant 0 : index
    %33 = vector.load %arg5[%c0_42, %c0_43] : memref<256x128xf32, #tpu.memory_space<vmem>>, vector<256x128xf32>
    %34 = arith.addf %33, %32 : vector<256x128xf32>
    %c0_44 = arith.constant 0 : index
    %c0_45 = arith.constant 0 : index
    %35 = vector.load %arg5[%c0_44, %c0_45] : memref<256x128xf32, #tpu.memory_space<vmem>>, vector<256x128xf32>
    tpu.vector_store %arg5[%c0_44, %c0_45], %34 {strides = array<i32>} : memref<256x128xf32, #tpu.memory_space<vmem>>, vector<256x128xf32>,
    %c0_46 = arith.constant 0 : index
    %c9 = arith.constant 9 : index
    %c0_47 = arith.constant 0 : index
    %36 = vector.load %arg4[%c0_46, %c9, %c0_47] : memref<8x48x128xbf16, #tpu.memory_space<vmem>>, vector<8x32x128xbf16>
    %37 = vector.shape_cast %36 : vector<8x32x128xbf16> to vector<256x128xbf16>
    %c4 = arith.constant 4 : index
    %c0_48 = arith.constant 0 : index
    %c0_49 = arith.constant 0 : index
    %38 = vector.load %arg2[%c4, %c0_48, %c0_49] : memref<7x128x128xbf16, #tpu.memory_space<vmem>>, vector<1x128x128xbf16>
    %39 = vector.shape_cast %38 : vector<1x128x128xbf16> to vector<128x128xbf16>
    %cst_50 = arith.constant dense<0.000000e+00> : vector<256x128xf32>
    %40 = tpu.matmul %37, %39, %cst_50 {dimension_numbers = #tpu.dot_dimension_numbers<[1], [0], [0], [1], [0, 0, 1, 1], [], []>} : vector<256x128xbf16>, vector<128x128xbf16>, vector<256x128xf32> -> vector<256x128xf32>
    %c0_51 = arith.constant 0 : index
    %c0_52 = arith.constant 0 : index
    %41 = vector.load %arg5[%c0_51, %c0_52] : memref<256x128xf32, #tpu.memory_space<vmem>>, vector<256x128xf32>
    %42 = arith.addf %41, %40 : vector<256x128xf32>
    %c0_53 = arith.constant 0 : index
    %c0_54 = arith.constant 0 : index
    %43 = vector.load %arg5[%c0_53, %c0_54] : memref<256x128xf32, #tpu.memory_space<vmem>>, vector<256x128xf32>
    tpu.vector_store %arg5[%c0_53, %c0_54], %42 {strides = array<i32>} : memref<256x128xf32, #tpu.memory_space<vmem>>, vector<256x128xf32>,
    %c0_55 = arith.constant 0 : index
    %c10 = arith.constant 10 : index
    %c0_56 = arith.constant 0 : index
    %44 = vector.load %arg4[%c0_55, %c10, %c0_56] : memref<8x48x128xbf16, #tpu.memory_space<vmem>>, vector<8x32x128xbf16>
    %45 = vector.shape_cast %44 : vector<8x32x128xbf16> to vector<256x128xbf16>
    %c5_57 = arith.constant 5 : index
    %c0_58 = arith.constant 0 : index
    %c0_59 = arith.constant 0 : index
    %46 = vector.load %arg2[%c5_57, %c0_58, %c0_59] : memref<7x128x128xbf16, #tpu.memory_space<vmem>>, vector<1x128x128xbf16>
    %47 = vector.shape_cast %46 : vector<1x128x128xbf16> to vector<128x128xbf16>
    %cst_60 = arith.constant dense<0.000000e+00> : vector<256x128xf32>
    %48 = tpu.matmul %45, %47, %cst_60 {dimension_numbers = #tpu.dot_dimension_numbers<[1], [0], [0], [1], [0, 0, 1, 1], [], []>} : vector<256x128xbf16>, vector<128x128xbf16>, vector<256x128xf32> -> vector<256x128xf32>
    %c0_61 = arith.constant 0 : index
    %c0_62 = arith.constant 0 : index
    %49 = vector.load %arg5[%c0_61, %c0_62] : memref<256x128xf32, #tpu.memory_space<vmem>>, vector<256x128xf32>
    %50 = arith.addf %49, %48 : vector<256x128xf32>
    %c0_63 = arith.constant 0 : index
    %c0_64 = arith.constant 0 : index
    %51 = vector.load %arg5[%c0_63, %c0_64] : memref<256x128xf32, #tpu.memory_space<vmem>>, vector<256x128xf32>
    tpu.vector_store %arg5[%c0_63, %c0_64], %50 {strides = array<i32>} : memref<256x128xf32, #tpu.memory_space<vmem>>, vector<256x128xf32>,
    %c0_65 = arith.constant 0 : index
    %c11 = arith.constant 11 : index
    %c0_66 = arith.constant 0 : index
    %52 = vector.load %arg4[%c0_65, %c11, %c0_66] : memref<8x48x128xbf16, #tpu.memory_space<vmem>>, vector<8x32x128xbf16>
    %53 = vector.shape_cast %52 : vector<8x32x128xbf16> to vector<256x128xbf16>
    %c6_67 = arith.constant 6 : index
    %c0_68 = arith.constant 0 : index
    %c0_69 = arith.constant 0 : index
    %54 = vector.load %arg2[%c6_67, %c0_68, %c0_69] : memref<7x128x128xbf16, #tpu.memory_space<vmem>>, vector<1x128x128xbf16>
    %55 = vector.shape_cast %54 : vector<1x128x128xbf16> to vector<128x128xbf16>
    %cst_70 = arith.constant dense<0.000000e+00> : vector<256x128xf32>
    %56 = tpu.matmul %53, %55, %cst_70 {dimension_numbers = #tpu.dot_dimension_numbers<[1], [0], [0], [1], [0, 0, 1, 1], [], []>} : vector<256x128xbf16>, vector<128x128xbf16>, vector<256x128xf32> -> vector<256x128xf32>
    %c0_71 = arith.constant 0 : index
    %c0_72 = arith.constant 0 : index
    %57 = vector.load %arg5[%c0_71, %c0_72] : memref<256x128xf32, #tpu.memory_space<vmem>>, vector<256x128xf32>
    %58 = arith.addf %57, %56 : vector<256x128xf32>
    %c0_73 = arith.constant 0 : index
    %c0_74 = arith.constant 0 : index
    %59 = vector.load %arg5[%c0_73, %c0_74] : memref<256x128xf32, #tpu.memory_space<vmem>>, vector<256x128xf32>
    tpu.vector_store %arg5[%c0_73, %c0_74], %58 {strides = array<i32>} : memref<256x128xf32, #tpu.memory_space<vmem>>, vector<256x128xf32>,
    %c0_75 = arith.constant 0 : index
    %c0_76 = arith.constant 0 : index
    %60 = vector.load %arg5[%c0_75, %c0_76] : memref<256x128xf32, #tpu.memory_space<vmem>>, vector<256x128xf32>
    %61 = vector.extract_strided_slice %60 {offsets = [0, 0], sizes = [256, 64], strides = [1, 1]} : vector<256x128xf32> to vector<256x64xf32>
    %62 = vector.extract_strided_slice %60 {offsets = [0, 64], sizes = [256, 64], strides = [1, 1]} : vector<256x128xf32> to vector<256x64xf32>
    %63 = arith.addf %62, %61 : vector<256x64xf32>
    %cst_77 = arith.constant 0.000000e+00 : f32
    %cst_78 = arith.constant 6.000000e+00 : f32
    %64 = vector.broadcast %cst_77 : f32 to vector<256x64xf32>
    %65 = arith.maximumf %64, %63 : vector<256x64xf32>
    %66 = vector.broadcast %cst_78 : f32 to vector<256x64xf32>
    %67 = arith.minimumf %66, %65 : vector<256x64xf32>
    %68 = arith.subf %62, %61 : vector<256x64xf32>
    %cst_79 = arith.constant 0.000000e+00 : f32
    %cst_80 = arith.constant 6.000000e+00 : f32
    %69 = vector.broadcast %cst_79 : f32 to vector<256x64xf32>
    %70 = arith.maximumf %69, %68 : vector<256x64xf32>
    %71 = vector.broadcast %cst_80 : f32 to vector<256x64xf32>
    %72 = arith.minimumf %71, %70 : vector<256x64xf32>
    %73 = arith.mulf %67, %72 : vector<256x64xf32>
    %cst_81 = arith.constant 0.166666672 : f32
    %74 = vector.broadcast %cst_81 : f32 to vector<256x64xf32>
    %75 = arith.mulf %73, %74 : vector<256x64xf32>
    %76 = vector.shape_cast %75 : vector<256x64xf32> to vector<8x32x64xf32>
    %c0_82 = arith.constant 0 : index
    %c0_83 = arith.constant 0 : index
    %c0_84 = arith.constant 0 : index
    %77 = vector.load %arg3[%c0_82, %c0_83, %c0_84] : memref<8x32x64xf32, #tpu.memory_space<vmem>>, vector<8x32x64xf32>
    tpu.vector_store %arg3[%c0_82, %c0_83, %c0_84], %76 {strides = array<i32>} : memref<8x32x64xf32, #tpu.memory_space<vmem>>, vector<8x32x64xf32>,
    return
  }
  func.func @transform_0(%arg0: i32) -> (i32, i32, i32) {
    %c0_i32 = arith.constant 0 : i32
    %c0_i32_0 = arith.constant 0 : i32
    %c0_i32_1 = arith.constant 0 : i32
    return %arg0, %c0_i32, %c0_i32_0 : i32, i32, i32
  }
  func.func @transform_1(%arg0: i32) -> (i32, i32, i32) {
    %c0_i32 = arith.constant 0 : i32
    %c0_i32_0 = arith.constant 0 : i32
    %c0_i32_1 = arith.constant 0 : i32
    %c0_i32_2 = arith.constant 0 : i32
    return %c0_i32, %c0_i32_0, %c0_i32_1 : i32, i32, i32
  }
  func.func @transform_2(%arg0: i32) -> (i32, i32, i32) {
    %c0_i32 = arith.constant 0 : i32
    %c0_i32_0 = arith.constant 0 : i32
    %c0_i32_1 = arith.constant 0 : i32
    return %arg0, %c0_i32, %c0_i32_0 : i32, i32, i32
  }
}

</mosaic_0001>

<bundles_post_ra>
// kernel: fused_conv_gate.1
= control target key start
LH: loop header
LB: loop body
LE: loop exit
PB: predicated region body
PF: predicated region fallthrough
CT: control target
= control target key end

     0   :  { %7 = vsyncpa [#allocation5], 0  ;;  %s8015_s0 = inlined_call_operand.vmem [shape: bf16[16,32,128], index: 0, kind: input, shape index: {}]   ;;  %s8016_s1 = inlined_call_operand.vmem [shape: bf16[7,128,128], index: 1, kind: input, shape index: {}]   ;;  %s8017_s2 = inlined_call_operand.hbm [shape: f32[16,32,64], index: 2, kind: output, shape index: {}]  }
   0x1   :  { %9 = vsyncpa [#allocation5 + $0x1], 0  ;;  %s6592_s9 = smov 0   ;;  %s6594_s10 = smov 0  }
   0x2   :  { %s6596_s11 = smov 0   ;;  %s6598_s12 = smov 0  }
   0x3 LB: > { %s6613_s13 = sadd.s32 4294967295, %s6570_s12   ;;  %s5570_s14 = sadd.s32 4294967294, %s6570_s12   ;;  %s6570_s12 = sphi %s6598_s12, %s8087_s12   ;;  %s6566_s11 = sphi %s6596_s11, %s8086_s11   ;;  %s6562_s10 = sphi %s6594_s10, %s8085_s10   ;;  %s6558_s9 = sphi %s6592_s9, %s8084_s9  }
   0x4   : > { %s6617_s15 = sadd.s32 1, %s6570_s12   ;;  %s69_s16 = sadd.s32 1, %s6566_s11 }
   0x5   : > { %s66_s17 = ssub.s32 %s6570_s12, %s6617_s15  ;;  %p79_p0 = scmp.ne.s32.totalorder %s6566_s11, %s6562_s10 }
   0x6   : > { %p67_p1 = scmp.eq.s32.totalorder %s66_s17, 0  ;;  %p80_p2 = scmp.eq.s32.totalorder %s6613_s13, 1 }
   0x7   : > { %p85_p3 = scmp.ne.s32.totalorder %s6562_s10, %s6558_s9  ;;  %p86_p4 = scmp.eq.s32.totalorder %s5570_s14, 1 }
   0x8   : > { %s6628_s18 = scalar_select %p67_p1, %s6566_s11, %s69_s16  }
   0x9   : > { %p6630_p5 = por %p80_p2, %p79_p0  ;;  %p6634_p6 = por %p86_p4, %p85_p3 }
   0xa   : > { %p5573_p7 = scmp.ge.s32.totalorder %s6570_s12, 1  ;;  %p117_p8 = scmp.lt.s32.totalorder %s6570_s12, 3 }
   0xc   : > { %p118_p9 = pnand %p5573_p7, %p117_p8 }
   0xe   : > { %121 = sbr.rel (%p118_p9) target bundleno = 813 (0x32d), region = 28 }
  0x13   : > { %v6438_v0 = vld [vmem:[%s8016_s1 + $0x38] sm:$0xff]   ;;  %s5575_s23 = sshll.u32 %s6613_s13, 3  ;;  %v6439_v1 = vld [vmem:[%s8016_s1 + $0x30] sm:$0xff]   ;;  %v6572_v2 = vmov 0   ;;  %v6440_v3 = vld [vmem:[%s8016_s1 + $0x28] sm:$0xff]   ;;  %vm1057_vm3 = vcmask 1040384  }
  0x14   : > { %p141_p10 = scmp.lt.s32.totalorder %s5575_s23, 15  ;;  %6043 = vmatprep.subr.bf16.mxu0 %v6438_v0  ;;  %6379 = vmatprep.subr.bf16.mxu1 %v6438_v0  ;;  %149 = vst [vmem:[#allocation2] sm:$0xf] %v6572_v2  ;;  %150 = vst [vmem:[#allocation2 + $0x18] sm:$0xf] %v6572_v2  ;;  %v6441_v4 = vld [vmem:[%s8016_s1 + $0x20] sm:$0xff]  }
  0x15   : > { %6044 = vmatpush3.bf16.msra.mxu0 %v6438_v0  ;;  %6387 = vmatpush3.bf16.msra.mxu1 %v6438_v0  ;;  %151 = vst [vmem:[#allocation2 + $0x30] sm:$0xf] %v6572_v2  ;;  %152 = vst [vmem:[#allocation2 + $0x48] sm:$0xf] %v6572_v2  ;;  %v6442_v9 = vld [vmem:[%s8016_s1 + $0x18] sm:$0xff]   ;;  %v6443_v20 = vld [vmem:[%s8016_s1 + $0x10] sm:$0xff]  }
  0x16   : > { %s8089_s23 = smov (!%p141_p10, %s5575_s23), 15  ;;  %153 = vst [vmem:[#allocation2 + $0x60] sm:$0xf] %v6572_v2  ;;  %154 = vst [vmem:[#allocation2 + $0x78] sm:$0xf] %v6572_v2  ;;  %6045 = vmatprep.subr.bf16.mxu0 %v6439_v1  ;;  %6380 = vmatprep.subr.bf16.mxu1 %v6439_v1  ;;  %v6444_v42 = vld [vmem:[%s8016_s1 + $0x8] sm:$0xff]  }
  0x17   : > { %155 = vst [vmem:[#allocation2 + $0x90] sm:$0xf] %v6572_v2  ;;  %156 = vst [vmem:[#allocation2 + $0xa8] sm:$0xf] %v6572_v2  ;;  %s5872_s28 = sshll.u32 %s8089_s23, 4  ;;  %v6445_v0 = vld [vmem:[%s8016_s1] sm:$0xff]  }
  0x18   : > { %157 = vst [vmem:[#allocation2 + $0x14] sm:$0xf] %v6572_v2  ;;  %158 = vst [vmem:[#allocation2 + $0x2c] sm:$0xf] %v6572_v2  ;;  %s6653_s3 = scalar_lea.vmem %s8015_s0, %s5872_s28  ;;  %vm269_vm0 = vsmask.f32 1280 }
  0x19   : > { %159 = vst [vmem:[#allocation2 + $0x44] sm:$0xf] %v6572_v2  ;;  %160 = vst [vmem:[#allocation2 + $0x5c] sm:$0xf] %v6572_v2  ;;  %6046 = vmatpush3.bf16.msra.mxu0 %v6439_v1  ;;  %6388 = vmatpush3.bf16.msra.mxu1 %v6439_v1  ;;  %v165_v5 = vld [vmem:[%s6653_s3] sm:$0xff]   ;;  %v167_v7 = vld [vmem:[%s6653_s3 + $0x8] sm:$0xff]  }
  0x1a   : > { %161 = vst [vmem:[#allocation2 + $0x74] sm:$0xf] %v6572_v2  ;;  %162 = vst [vmem:[#allocation2 + $0x8c] sm:$0xf] %v6572_v2  ;;  %6047 = vmatprep.subr.bf16.mxu0 %v6440_v3  ;;  %6381 = vmatprep.subr.bf16.mxu1 %v6440_v3  ;;  %v181_v6 = vld [vmem:[%s6653_s3 + $0x40] sm:$0xff]   ;;  %v183_v8 = vld [vmem:[%s6653_s3 + $0x48] sm:$0xff]  }
  0x1b   : > { %163 = vst [vmem:[#allocation2 + $0xa4] sm:$0xf] %v6572_v2  ;;  %164 = vst [vmem:[#allocation2 + $0xbc] sm:$0xf] %v6572_v2  ;;  %v229_v10 = vld [vmem:[#allocation2] sm:$0xc] }
  0x1c   : > { %197 = vst [vmem:[#allocation2 + $0x4] sm:$0xff] %v165_v5   ;;  %213 = vst [vmem:[#allocation2 + $0x64] sm:$0xff] %v181_v6   ;;  %v273_v12 = vshrl.u32 %v229_v10, 16  ;;  %v276_v13 = vshll.u32 %v229_v10, 16  ;;  %vm270_vm1 = vsmask.f32 5392 }
  0x1d   : > { %v249_v11 = vld [vmem:[#allocation2 + $0x60] sm:$0xc]  ;;  %199 = vst [vmem:[#allocation2 + $0xc] sm:$0xff] %v167_v7   ;;  %215 = vst [vmem:[#allocation2 + $0x6c] sm:$0xff] %v183_v8   ;;  %6048 = vmatpush3.bf16.msra.mxu0 %v6440_v3  ;;  %6389 = vmatpush3.bf16.msra.mxu1 %v6440_v3  ;;  %v169_v23 = vld [vmem:[%s6653_s3 + $0x10] sm:$0xff]   ;;  %vm1058_vm4 = vcmask 1044484  }
  0x1e   : > { %v465_v14 = vshrl.u32 %v249_v11, 16  ;;  %v468_v15 = vshll.u32 %v249_v11, 16  ;;  %6049 = vmatprep.subr.bf16.mxu0 %v6441_v4  ;;  %6382 = vmatprep.subr.bf16.mxu1 %v6441_v4  ;;  %v275_v16 = vrot.slane %v273_v12, 6  ;;  %v278_v17 = vrot.slane %v276_v13, 7  ;;  %201 = vst [vmem:[#allocation2 + $0x1c] sm:$0xff] %v169_v23   ;;  %vm6674_vm2 = vmor %vm269_vm0, %vm270_vm1  ;;  %v185_v52 = vld [vmem:[%s6653_s3 + $0x50] sm:$0xff]  }
  0x1f   : > { %217 = vst [vmem:[#allocation2 + $0x7c] sm:$0xff] %v185_v52   ;;  %v171_v63 = vld [vmem:[%s6653_s3 + $0x18] sm:$0xff]   ;;  %vm1590_vm5 = vsmask.f32 256  ;;  %vm1591_vm6 = vsmask.f32 4368  ;;  %vm6824_vm7 = vmor %vm1057_vm3, %vm1058_vm4 }
  0x20   : > { %v467_v18 = vrot.slane %v465_v14, 6  ;;  %v470_v19 = vrot.slane %v468_v15, 7  ;;  %v279_v21 = vor.u32 %v278_v17, %v275_v16  ;;  %v234_v5 = vld [vmem:[#allocation2 + $0x18] sm:$0xc]  ;;  %203 = vst [vmem:[#allocation2 + $0x24] sm:$0xff] %v171_v63   ;;  %vm6840_vm8 = vmor %vm1590_vm5, %vm1591_vm6  ;;  %vm3610_vm12 = vcmask 1042432  }
  0x21   : > { %6050 = vmatpush3.bf16.msra.mxu0 %v6441_v4  ;;  %6390 = vmatpush3.bf16.msra.mxu1 %v6441_v4  ;;  %v187_v7 = vld [vmem:[%s6653_s3 + $0x58] sm:$0xff]   ;;  %vm2789_vm9 = vsmask.f32 3328  ;;  %vm2790_vm10 = vsmask.f32 7440  ;;  %vm3611_vm13 = vcmask 1046532  }
  0x22   : > { %v471_v22 = vor.u32 %v470_v19, %v467_v18  ;;  %6051 = vmatprep.subr.bf16.mxu0 %v6442_v9  ;;  %6383 = vmatprep.subr.bf16.mxu1 %v6442_v9  ;;  %v280_v27 = vrot.slane %v279_v21, 4  ;;  %219 = vst [vmem:[#allocation2 + $0x84] sm:$0xff] %v187_v7   ;;  %v6447_v21 = vld [vmem:[%s8016_s1 + $0xb8] sm:$0xff]   ;;  %vm7037_vm11 = vmor %vm2789_vm9, %vm2790_vm10  ;;  %vm4143_vm15 = vsmask.f32 2304  ;;  %s6573_s24 = smov 64  }
  0x23   : > { %v230_v24 = vld [vmem:[#allocation2 + $0x4] sm:$0xf]  ;;  %v231_v25 = vld [vmem:[#allocation2 + $0x8] sm:$0xf]  ;;  %vm7145_vm14 = vmor %vm3610_vm12, %vm3611_vm13  ;;  %vm4144_vm0 = vsmask.f32 6416 }
  0x24   : > { %v250_v26 = vld [vmem:[#allocation2 + $0x64] sm:$0xf]  ;;  %v282_v28 = vshrl.u32 %v230_v24, 16  ;;  %v285_v29 = vshll.u32 %v230_v24, 16  ;;  %v292_v30 = vshrl.u32 %v231_v25, 16  ;;  %v295_v32 = vshll.u32 %v231_v25, 16  ;;  %vm7165_vm1 = vmor %vm4143_vm15, %vm4144_vm0 }
  0x25   : > { %v251_v31 = vld [vmem:[#allocation2 + $0x68] sm:$0xf]  ;;  %v472_v33 = vrot.slane %v471_v22, 4  ;;  %v474_v34 = vshrl.u32 %v250_v26, 16  ;;  %v477_v35 = vshll.u32 %v250_v26, 16  ;;  %6052 = vmatpush3.bf16.msra.mxu0 %v6442_v9  ;;  %6391 = vmatpush3.bf16.msra.mxu1 %v6442_v9  ;;  %s137_s25 = sand.u32 1, %s6562_s10  }
  0x26   : > { %v232_v36 = vld [vmem:[#allocation2 + $0xc] sm:$0xf]  ;;  %v284_v37 = vrot.slane %v282_v28, 6  ;;  %v287_v38 = vrot.slane %v285_v29, 7  ;;  %v294_v39 = vrot.slane %v292_v30, 6  ;;  %v484_v40 = vshrl.u32 %v251_v31, 16  ;;  %6053 = vmatprep.subr.bf16.mxu0 %v6443_v20  ;;  %6384 = vmatprep.subr.bf16.mxu1 %v6443_v20 }
  0x27   : > { %v233_v41 = vld [vmem:[#allocation2 + $0x10] sm:$0x7]  ;;  %v297_v44 = vrot.slane %v295_v32, 7  ;;  %v476_v45 = vrot.slane %v474_v34, 6  ;;  %v479_v46 = vrot.slane %v477_v35, 7  ;;  %v487_v47 = vshll.u32 %v251_v31, 16 }
  0x28   : > { %v288_v48 = vor.u32 %v287_v38, %v284_v37  ;;  %v486_v49 = vrot.slane %v484_v40, 6  ;;  %v302_v50 = vshrl.u32 %v232_v36, 16  ;;  %v305_v51 = vshll.u32 %v232_v36, 16  ;;  %v252_v57 = vld [vmem:[#allocation2 + $0x6c] sm:$0xf]  ;;  %v173_v40 = vld [vmem:[%s6653_s3 + $0x20] sm:$0xff]  }
  0x29   : > { %v298_v53 = vor.u32 %v297_v44, %v294_v39  ;;  %v480_v54 = vor.u32 %v479_v46, %v476_v45  ;;  %v489_v55 = vrot.slane %v487_v47, 7  ;;  %v312_v56 = vshrl.u32 %v233_v41, 16  ;;  %6054 = vmatpush3.bf16.msra.mxu0 %v6443_v20  ;;  %6392 = vmatpush3.bf16.msra.mxu1 %v6443_v20  ;;  %v253_v62 = vld [vmem:[#allocation2 + $0x70] sm:$0x7]  ;;  %v235_v6 = vld [vmem:[#allocation2 + $0x1c] sm:$0xf] }
  0x2a   : > { %v289_v58 = vsel %vm6674_vm2, %v280_v27, %v288_v48  ;;  %v290_v59 = vrot.slane %v288_v48, 4  ;;  %v304_v60 = vrot.slane %v302_v50, 6  ;;  %v307_v61 = vrot.slane %v305_v51, 7  ;;  %6055 = vmatprep.subr.bf16.mxu0 %v6444_v42  ;;  %6385 = vmatprep.subr.bf16.mxu1 %v6444_v42  ;;  %v6701_v20 = vld [vmem:[%s8016_s1 + $0x78] sm:$0xff]   ;;  %v236_v34 = vld [vmem:[#allocation2 + $0x20] sm:$0xf] }
  0x2b   : > { %v300_v1 = vrot.slane %v298_v53, 4  ;;  %v481_v2 = vsel %vm6674_vm2, %v472_v33, %v480_v54  ;;  %v482_v3 = vrot.slane %v480_v54, 4  ;;  %v6687_v4 = vor.u32 %v489_v55, %v486_v49  ;;  %v254_v30 = vld [vmem:[#allocation2 + $0x78] sm:$0xc]  ;;  %v6449_v45 = vld [vmem:[%s8016_s1 + $0xb0] sm:$0xff]   ;;  %205 = vst [vmem:[#allocation2 + $0x34] sm:$0xff] %v173_v40  }
  0x2c   : > { %v299_v8 = vsel %vm6674_vm2, %v290_v59, %v298_v53  ;;  %v308_v9 = vor.u32 %v307_v61, %v304_v60  ;;  %v314_v10 = vrot.slane %v312_v56, 6  ;;  %v315_v11 = vshll.u32 %v233_v41, 16  ;;  %v255_v47 = vld [vmem:[#allocation2 + $0x7c] sm:$0xf]  ;;  %v189_v48 = vld [vmem:[%s6653_s3 + $0x60] sm:$0xff]   ;;  %v175_v54 = vld [vmem:[%s6653_s3 + $0x28] sm:$0xff]  }
  0x2d   : > { %v5578_v12 = vcombine.low %v289_v58, %v299_v8  ;;  %v491_v13 = vsel %vm6674_vm2, %v482_v3, %v6687_v4  ;;  %v492_v14 = vrot.slane %v6687_v4, 4  ;;  %v494_v15 = vshrl.u32 %v252_v57, 16  ;;  %6056 = vmatpush3.bf16.msra.mxu0 %v6444_v42  ;;  %6393 = vmatpush3.bf16.msra.mxu1 %v6444_v42  ;;  %v256_v52 = vld [vmem:[#allocation2 + $0x80] sm:$0xf]  ;;  %221 = vst [vmem:[#allocation2 + $0x94] sm:$0xff] %v189_v48   ;;  %v6451_v59 = vld [vmem:[%s8016_s1 + $0xa8] sm:$0xff]  }
  0x2e   : > { %v5586_v16 = vcombine.low %v481_v2, %v491_v13  ;;  %v309_v17 = vsel %vm6674_vm2, %v300_v1, %v308_v9  ;;  %v310_v18 = vrot.slane %v308_v9, 4  ;;  %v317_v19 = vrot.slane %v315_v11, 7  ;;  %6057 = vmatprep.subr.bf16.mxu0 %v6445_v0  ;;  %6386 = vmatprep.subr.bf16.mxu1 %v6445_v0  ;;  %207 = vst [vmem:[#allocation2 + $0x3c] sm:$0xff] %v175_v54   ;;  %v6448_v8 = vld [vmem:[%s8016_s1 + $0x70] sm:$0xff]   ;;  %s5574_s26 = sshll.u32 %s137_s25, 8  ;;  %s5874_s28 = sshll.u32 %s6613_s13, 12 }
  0x2f   : > { %v496_v22 = vrot.slane %v494_v15, 6  ;;  %v497_v23 = vshll.u32 %v252_v57, 16  ;;  %v504_v24 = vshrl.u32 %v253_v62, 16  ;;  %v507_v25 = vshll.u32 %v253_v62, 16  ;;  %6059 = vmatprep.mubr.bf16.mxu0 %v5578_v12  ;;  %s7898_s27 = scalar_lea.vmem [#allocation4], %s5574_s26  ;;  %s7967_s5 = scalar_lea.hbm %s8017_s2, %s5874_s28 }
  0x30   : > { %6075 = vmatprep.mubr.bf16.mxu1 %v5586_v16  ;;  %v318_v26 = vor.u32 %v317_v19, %v314_v10  ;;  %v321_v27 = vshrl.u32 %v234_v5, 16  ;;  %v324_v28 = vshll.u32 %v234_v5, 16  ;;  %v330_v29 = vshrl.u32 %v235_v6, 16  ;;  %v238_v5 = vld [vmem:[#allocation2 + $0x28] sm:$0x7]  ;;  %s5508_s29 = sshll.u32 %s7898_s27, 4  ;;  %s7969_s29 = int_to_ptr.vmem [resolvable:$true] %s5508_s29 }
  0x31   : > { %v499_v31 = vrot.slane %v497_v23, 7  ;;  %v506_v32 = vrot.slane %v504_v24, 6  ;;  %v509_v33 = vrot.slane %v507_v25, 7  ;;  %v333_v35 = vshll.u32 %v235_v6, 16  ;;  %6058 = vmatpush3.bf16.msra.mxu0 %v6445_v0  ;;  %6394 = vmatpush3.bf16.msra.mxu1 %v6445_v0  ;;  %v237_v0 = vld [vmem:[#allocation2 + $0x24] sm:$0xf] }
  0x32   : > { %v319_v36 = vsel %vm6674_vm2, %v310_v18, %v318_v26  ;;  %v323_v37 = vrot.slane %v321_v27, 6  ;;  %v326_v38 = vrot.slane %v324_v28, 7  ;;  %v332_v39 = vrot.slane %v330_v29, 6  ;;  %6091 = vmatprep.subr.bf16.mxu1 %v6701_v20  ;;  %6139 = vmatprep.subr.bf16.mxu0 %v6447_v21  ;;  %v191_v6 = vld [vmem:[%s6653_s3 + $0x68] sm:$0xff]   ;;  %v6453_v26 = vld [vmem:[%s8016_s1 + $0xa0] sm:$0xff]   ;;  %s7975_s13 = scalar_lea.sflag [#allocation5], %s137_s25 }
  0x33   : > { %v5579_v41 = vcombine.low %v309_v17, %v319_v36  ;;  %v500_v42 = vor.u32 %v499_v31, %v496_v22  ;;  %v510_v44 = vor.u32 %v509_v33, %v506_v32  ;;  %v335_v46 = vrot.slane %v333_v35, 7  ;;  %223 = vst [vmem:[#allocation2 + $0x9c] sm:$0xff] %v191_v6   ;;  %v6450_v31 = vld [vmem:[%s8016_s1 + $0x68] sm:$0xff]   ;;  %s6510_s6 = scalar_lea.vmem %s7969_s29, 4096  ;;  %s6574_s7 = smov [#allocation4]  }
  0x34   : > { %v327_v49 = vor.u32 %v326_v38, %v323_v37  ;;  %v340_v50 = vshrl.u32 %v236_v34, 16  ;;  %v343_v51 = vshll.u32 %v236_v34, 16  ;;  %v513_v53 = vshrl.u32 %v254_v30, 16  ;;  %v258_v34 = vld [vmem:[#allocation2 + $0x88] sm:$0x7]  ;;  %v193_v37 = vld [vmem:[%s6653_s3 + $0x70] sm:$0xff]   ;;  %p6511_p11 = scmp.ne.s32.totalorder %s7969_s29, %s6510_s6 }
  0x35   : > { %6060 = vmatmul.mubr.bf16.vlgmr.msra.gmra.mxu0 %v5579_v41  ;;  %v501_v55 = vsel %vm6674_vm2, %v492_v14, %v500_v42  ;;  %v502_v56 = vrot.slane %v500_v42, 4  ;;  %v336_v57 = vor.u32 %v335_v46, %v332_v39  ;;  %v516_v58 = vshll.u32 %v254_v30, 16  ;;  %v239_v42 = vld [vmem:[#allocation2 + $0x30] sm:$0xc]  ;;  %225 = vst [vmem:[#allocation2 + $0xac] sm:$0xff] %v193_v37   ;;  %s6514_s8 = sshll.u32 %s6574_s7, 4  ;;  %s6515_s8 = int_to_ptr.vmem [resolvable:$false] %s6514_s8 }
  0x36   : > { %6140 = vmatpush3.bf16.msra.mxu0 %v6447_v21  ;;  %v328_v60 = vrot.slane %v327_v49, 4  ;;  %v342_v61 = vrot.slane %v340_v50, 6  ;;  %v345_v62 = vrot.slane %v343_v51, 7  ;;  %v515_v63 = vrot.slane %v513_v53, 6  ;;  %v257_v21 = vld [vmem:[#allocation2 + $0x84] sm:$0xf]  ;;  %p6512_p12 = pnand %p6511_p11, %p6630_p5  ;;  %p6517_p0 = scmp.lt.s32.totalorder %s7969_s29, %s6515_s8 }
  0x37   : > { %v511_v1 = vsel %vm6674_vm2, %v502_v56, %v510_v44  ;;  %6141 = vmatprep.subr.bf16.mxu0 %v6449_v45  ;;  %v338_v2 = vrot.slane %v336_v57, 4  ;;  %v518_v3 = vrot.slane %v516_v58, 7  ;;  %v522_v4 = vshrl.u32 %v255_v47, 16  ;;  %v179_v44 = vld [vmem:[%s6653_s3 + $0x38] sm:$0xff]   ;;  %v6452_v49 = vld [vmem:[%s8016_s1 + $0x60] sm:$0xff]   ;;  %s6516_s14 = scalar_lea.vmem %s6515_s8, 8192 }
  0x38   : > { %v5587_v7 = vcombine.low %v501_v55, %v511_v1  ;;  %v337_v9 = vsel %vm6674_vm2, %v328_v60, %v336_v57  ;;  %v6728_v10 = vor.u32 %v345_v62, %v342_v61  ;;  %v525_v11 = vshll.u32 %v255_v47, 16  ;;  %v6455_v50 = vld [vmem:[%s8016_s1 + $0x98] sm:$0xff]   ;;  %211 = vst [vmem:[#allocation2 + $0x54] sm:$0xff] %v179_v44   ;;  %v240_v55 = vld [vmem:[#allocation2 + $0x34] sm:$0xf]  ;;  %p6513_p13 = pneg %p6512_p12  ;;  %p6518_p1 = scmp.lt.s32.totalorder %s6516_s14, %s6510_s6 }
  0x39   : > { %v519_v12 = vor.u32 %v518_v3, %v515_v63  ;;  %v524_v13 = vrot.slane %v522_v4, 6  ;;  %v532_v14 = vshrl.u32 %v256_v52, 16  ;;  %v535_v15 = vshll.u32 %v256_v52, 16  ;;  %v241_v56 = vld [vmem:[#allocation2 + $0x38] sm:$0xf] }
  0x3a   : > { %6076 = vmatmul.mubr.bf16.vlgmr.msra.gmra.mxu1 %v5587_v7  ;;  %6142 = vmatpush3.bf16.msra.mxu0 %v6449_v45  ;;  %v347_v16 = vsel %vm6674_vm2, %v338_v2, %v6728_v10  ;;  %v527_v17 = vrot.slane %v525_v11, 7  ;;  %v348_v18 = vrot.slane %v6728_v10, 4  ;;  %v350_v19 = vshrl.u32 %v237_v0, 16  ;;  %v259_v61 = vld [vmem:[#allocation2 + $0x90] sm:$0xc]  ;;  %v195_v62 = vld [vmem:[%s6653_s3 + $0x78] sm:$0xff]   ;;  %p6519_p2 = por %p6518_p1, %p6517_p0 }
  0x3b   : > { %6092 = vmatpush3.bf16.msra.mxu1 %v6701_v20  ;;  %v5580_v22 = vcombine.low %v337_v9, %v347_v16  ;;  %v520_v23 = vrot.slane %v519_v12, 4  ;;  %v534_v24 = vrot.slane %v532_v14, 6  ;;  %v537_v25 = vrot.slane %v535_v15, 7  ;;  %6143 = vmatprep.subr.bf16.mxu0 %v6451_v59  ;;  %v177_v20 = vld [vmem:[%s6653_s3 + $0x30] sm:$0xff]   ;;  %227 = vst [vmem:[#allocation2 + $0xb4] sm:$0xff] %v195_v62   ;;  %v6454_v11 = vld [vmem:[%s8016_s1 + $0x58] sm:$0xff]  }
  0x3c   : > { %6093 = vmatprep.subr.bf16.mxu1 %v6448_v8  ;;  %v528_v27 = vor.u32 %v527_v17, %v524_v13  ;;  %v352_v28 = vrot.slane %v350_v19, 6  ;;  %v353_v29 = vshll.u32 %v237_v0, 16  ;;  %v360_v30 = vshrl.u32 %v238_v5, 16  ;;  %209 = vst [vmem:[#allocation2 + $0x4c] sm:$0xff] %v177_v20   ;;  %v6457_v12 = vld [vmem:[%s8016_s1 + $0x90] sm:$0xff]   ;;  %p6520_p3 = pnand %p6519_p2, %p6513_p13 }
  0x3d   : > { %6063 = vmatprep.mubr.bf16.mxu0 %v5580_v22  ;;  %v538_v32 = vor.u32 %v537_v25, %v534_v24  ;;  %v363_v33 = vshll.u32 %v238_v5, 16  ;;  %v542_v35 = vshrl.u32 %v257_v21, 16  ;;  %v545_v36 = vshll.u32 %v257_v21, 16  ;;  %v260_v17 = vld [vmem:[#allocation2 + $0x94] sm:$0xf] }
  0x3e   : > { %v529_v38 = vsel %vm6674_vm2, %v520_v23, %v528_v27  ;;  %v530_v39 = vrot.slane %v528_v27, 4  ;;  %v355_v40 = vrot.slane %v353_v29, 7  ;;  %v362_v41 = vrot.slane %v360_v30, 6  ;;  %6144 = vmatpush3.bf16.msra.mxu0 %v6451_v59  ;;  %v261_v22 = vld [vmem:[#allocation2 + $0x98] sm:$0xf] }
  0x3f   : > { %6094 = vmatpush3.bf16.msra.mxu1 %v6448_v8  ;;  %v365_v45 = vrot.slane %v363_v33, 7  ;;  %v540_v46 = vrot.slane %v538_v32, 4  ;;  %v544_v47 = vrot.slane %v542_v35, 6  ;;  %v547_v48 = vrot.slane %v545_v36, 7  ;;  %6145 = vmatprep.subr.bf16.mxu0 %v6453_v26  ;;  %v242_v37 = vld [vmem:[#allocation2 + $0x3c] sm:$0xf] }
  0x40   : > { %v539_v51 = vsel %vm6674_vm2, %v530_v39, %v538_v32  ;;  %v356_v52 = vor.u32 %v355_v40, %v352_v28  ;;  %v552_v53 = vshrl.u32 %v258_v34, 16  ;;  %v555_v54 = vshll.u32 %v258_v34, 16  ;;  %6095 = vmatprep.subr.bf16.mxu1 %v6450_v31  ;;  %v6459_v28 = vld [vmem:[%s8016_s1 + $0x88] sm:$0xff]   ;;  %v6456_v32 = vld [vmem:[%s8016_s1 + $0x50] sm:$0xff]  }
  0x41   : > { %v5588_v57 = vcombine.low %v529_v38, %v539_v51  ;;  %v366_v58 = vor.u32 %v365_v45, %v362_v41  ;;  %v548_v59 = vor.u32 %v547_v48, %v544_v47  ;;  %v369_v60 = vshrl.u32 %v239_v42, 16  ;;  %v262_v48 = vld [vmem:[#allocation2 + $0x9c] sm:$0xf] }
  0x42   : > { %v357_v63 = vsel %vm6674_vm2, %v348_v18, %v356_v52  ;;  %v358_v0 = vrot.slane %v356_v52, 4  ;;  %v554_v1 = vrot.slane %v552_v53, 6  ;;  %v557_v2 = vrot.slane %v555_v54, 7  ;;  %6146 = vmatpush3.bf16.msra.mxu0 %v6453_v26  ;;  %v263_v53 = vld [vmem:[#allocation2 + $0xa0] sm:$0x7]  ;;  %v6458_v54 = vld [vmem:[%s8016_s1 + $0x48] sm:$0xff]  }
  0x43   : > { %6079 = vmatprep.mubr.bf16.mxu1 %v5588_v57  ;;  %v549_v3 = vsel %vm6674_vm2, %v540_v46, %v548_v59  ;;  %v550_v4 = vrot.slane %v548_v59, 4  ;;  %6096 = vmatpush3.bf16.msra.mxu1 %v6450_v31  ;;  %v371_v5 = vrot.slane %v369_v60, 6  ;;  %v372_v6 = vshll.u32 %v239_v42, 16  ;;  %v243_v42 = vld [vmem:[#allocation2 + $0x40] sm:$0x7] }
  0x44   : > { %v367_v7 = vsel %vm6674_vm2, %v358_v0, %v366_v58  ;;  %v558_v8 = vor.u32 %v557_v2, %v554_v1  ;;  %6097 = vmatprep.subr.bf16.mxu1 %v6452_v49  ;;  %v378_v9 = vshrl.u32 %v240_v55, 16  ;;  %v381_v10 = vshll.u32 %v240_v55, 16  ;;  %6147 = vmatprep.subr.bf16.mxu0 %v6455_v50  ;;  %v6461_v55 = vld [vmem:[%s8016_s1 + $0x80] sm:$0xff]   ;;  %v244_v0 = vld [vmem:[#allocation2 + $0x48] sm:$0xc]  ;;  %v6788_v1 = vld [vmem:[%s8016_s1 + $0x138] sm:$0xff]  }
  0x45   : > { %v5581_v13 = vcombine.low %v357_v63, %v367_v7  ;;  %v374_v14 = vrot.slane %v372_v6, 7  ;;  %v388_v15 = vshrl.u32 %v241_v56, 16  ;;  %v391_v16 = vshll.u32 %v241_v56, 16  ;;  %v245_v6 = vld [vmem:[#allocation2 + $0x4c] sm:$0xf] }
  0x46   : > { %v559_v18 = vsel %vm6674_vm2, %v550_v4, %v558_v8  ;;  %v380_v19 = vrot.slane %v378_v9, 6  ;;  %v383_v21 = vrot.slane %v381_v10, 7  ;;  %v561_v23 = vshrl.u32 %v259_v61, 16  ;;  %6148 = vmatpush3.bf16.msra.mxu0 %v6455_v50 }
  0x47   : > { %6064 = vmatmul.mubr.bf16.gmra.mxu0 %v5581_v13  ;;  %v5589_v24 = vcombine.low %v549_v3, %v559_v18  ;;  %6098 = vmatpush3.bf16.msra.mxu1 %v6452_v49  ;;  %v375_v25 = vor.u32 %v374_v14, %v371_v5  ;;  %v390_v26 = vrot.slane %v388_v15, 6  ;;  %v393_v27 = vrot.slane %v391_v16, 7 }
  0x48   : > { %v384_v29 = vor.u32 %v383_v21, %v380_v19  ;;  %v563_v30 = vrot.slane %v561_v23, 6  ;;  %v564_v31 = vshll.u32 %v259_v61, 16  ;;  %v570_v20 = vshrl.u32 %v260_v17, 16  ;;  %6099 = vmatprep.subr.bf16.mxu1 %v6454_v11  ;;  %6149 = vmatprep.subr.bf16.mxu0 %v6457_v12  ;;  %v246_v21 = vld [vmem:[#allocation2 + $0x50] sm:$0xf] }
  0x49   : > { %6080 = vmatmul.mubr.bf16.gmra.mxu1 %v5589_v24  ;;  %v376_v33 = vrot.slane %v375_v25, 4  ;;  %v394_v34 = vor.u32 %v393_v27, %v390_v26  ;;  %v573_v35 = vshll.u32 %v260_v17, 16  ;;  %v580_v36 = vshrl.u32 %v261_v22, 16 }
  0x4a   : > { %v386_v38 = vrot.slane %v384_v29, 4  ;;  %v566_v39 = vrot.slane %v564_v31, 7  ;;  %v572_v40 = vrot.slane %v570_v20, 6  ;;  %v583_v41 = vshll.u32 %v261_v22, 16  ;;  %6150 = vmatpush3.bf16.msra.mxu0 %v6457_v12 }
  0x4b   : > { %v385_v44 = vsel %vm6674_vm2, %v376_v33, %v384_v29  ;;  %v575_v45 = vrot.slane %v573_v35, 7  ;;  %v582_v46 = vrot.slane %v580_v36, 6  ;;  %v396_v47 = vrot.slane %v394_v34, 4  ;;  %6100 = vmatpush3.bf16.msra.mxu1 %v6454_v11  ;;  %6151 = vmatprep.subr.bf16.mxu0 %v6459_v28  ;;  %v6460_v11 = vld [vmem:[%s8016_s1 + $0x40] sm:$0xff]  }
  0x4c   : > { %v395_v49 = vsel %vm6674_vm2, %v386_v38, %v394_v34  ;;  %v567_v50 = vor.u32 %v566_v39, %v563_v30  ;;  %v585_v51 = vrot.slane %v583_v41, 7  ;;  %v398_v52 = vshrl.u32 %v242_v37, 16  ;;  %6101 = vmatprep.subr.bf16.mxu1 %v6456_v32  ;;  %v6803_v30 = vld [vmem:[%s8016_s1 + $0xf8] sm:$0xff]   ;;  %v264_v34 = vld [vmem:[#allocation2 + $0xa8] sm:$0xc] }
  0x4d   : > { %v5582_v56 = vcombine.low %v385_v44, %v395_v49  ;;  %v576_v57 = vor.u32 %v575_v45, %v572_v40  ;;  %v401_v58 = vshll.u32 %v242_v37, 16  ;;  %v408_v59 = vshrl.u32 %v243_v42, 16  ;;  %v265_v39 = vld [vmem:[#allocation2 + $0xac] sm:$0xf] }
  0x4e   : > { %v568_v60 = vrot.slane %v567_v50, 4  ;;  %v586_v61 = vor.u32 %v585_v51, %v582_v46  ;;  %v400_v62 = vrot.slane %v398_v52, 6  ;;  %v411_v63 = vshll.u32 %v243_v42, 16  ;;  %6152 = vmatpush3.bf16.msra.mxu0 %v6459_v28 }
  0x4f   : > { %6067 = vmatprep.mubr.bf16.mxu0 %v5582_v56  ;;  %v578_v2 = vrot.slane %v576_v57, 4  ;;  %v403_v3 = vrot.slane %v401_v58, 7  ;;  %v410_v4 = vrot.slane %v408_v59, 6  ;;  %v590_v5 = vshrl.u32 %v262_v48, 16  ;;  %6102 = vmatpush3.bf16.msra.mxu1 %v6456_v32 }
  0x50   : > { %v577_v7 = vsel %vm6674_vm2, %v568_v60, %v576_v57  ;;  %v413_v8 = vrot.slane %v411_v63, 7  ;;  %v588_v9 = vrot.slane %v586_v61, 4  ;;  %v593_v10 = vshll.u32 %v262_v48, 16  ;;  %6103 = vmatprep.subr.bf16.mxu1 %v6458_v54  ;;  %6153 = vmatprep.subr.bf16.mxu0 %v6461_v55 }
  0x51   : > { %v587_v12 = vsel %vm6674_vm2, %v578_v2, %v586_v61  ;;  %v404_v13 = vor.u32 %v403_v3, %v400_v62  ;;  %v592_v14 = vrot.slane %v590_v5, 6  ;;  %v600_v15 = vshrl.u32 %v263_v53, 16 }
  0x52   : > { %v5590_v16 = vcombine.low %v577_v7, %v587_v12  ;;  %v414_v17 = vor.u32 %v413_v8, %v410_v4  ;;  %v595_v18 = vrot.slane %v593_v10, 7  ;;  %v603_v19 = vshll.u32 %v263_v53, 16  ;;  %6154 = vmatpush3.bf16.msra.mxu0 %v6461_v55 }
  0x53   : > { %v405_v22 = vsel %vm6674_vm2, %v396_v47, %v404_v13  ;;  %v406_v23 = vrot.slane %v404_v13, 4  ;;  %v602_v24 = vrot.slane %v600_v15, 6  ;;  %v417_v25 = vshrl.u32 %v244_v0, 16  ;;  %6104 = vmatpush3.bf16.msra.mxu1 %v6458_v54  ;;  %6235 = vmatprep.subr.bf16.mxu0 %v6788_v1  ;;  %v266_v47 = vld [vmem:[#allocation2 + $0xb0] sm:$0xf] }
  0x54   : > { %6083 = vmatprep.mubr.bf16.mxu1 %v5590_v16  ;;  %v596_v26 = vor.u32 %v595_v18, %v592_v14  ;;  %v605_v27 = vrot.slane %v603_v19, 7  ;;  %v420_v28 = vshll.u32 %v244_v0, 16  ;;  %v426_v29 = vshrl.u32 %v245_v6, 16  ;;  %6105 = vmatprep.subr.bf16.mxu1 %v6460_v11  ;;  %v247_v54 = vld [vmem:[#allocation2 + $0x54] sm:$0xf] }
  0x55   : > { %v415_v31 = vsel %vm6674_vm2, %v406_v23, %v414_v17  ;;  %v419_v20 = vrot.slane %v417_v25, 6  ;;  %v429_v32 = vshll.u32 %v245_v6, 16  ;;  %v436_v33 = vshrl.u32 %v246_v21, 16  ;;  %v248_v6 = vld [vmem:[#allocation2 + $0x58] sm:$0x7] }
  0x56   : > { %v5583_v35 = vcombine.low %v405_v22, %v415_v31  ;;  %v597_v36 = vsel %vm6674_vm2, %v588_v9, %v596_v26  ;;  %v598_v37 = vrot.slane %v596_v26, 4  ;;  %v606_v38 = vor.u32 %v605_v27, %v602_v24  ;;  %v267_v13 = vld [vmem:[#allocation2 + $0xb4] sm:$0xf]  ;;  %v268_v18 = vld [vmem:[#allocation2 + $0xb8] sm:$0x7] }
  0x57   : > { %v422_v40 = vrot.slane %v420_v28, 7  ;;  %v428_v41 = vrot.slane %v426_v29, 6  ;;  %v431_v42 = vrot.slane %v429_v32, 7  ;;  %v438_v44 = vrot.slane %v436_v33, 6  ;;  %6106 = vmatpush3.bf16.msra.mxu1 %v6460_v11  ;;  %v977_v24 = vld [vmem:[#allocation2] sm:$0x8] }
  0x58   : > { %6068 = vmatmul.mubr.bf16.gmra.mxu0 %v5583_v35  ;;  %v607_v45 = vsel %vm6674_vm2, %v598_v37, %v606_v38  ;;  %v439_v46 = vshll.u32 %v246_v21, 16  ;;  %v609_v48 = vshrl.u32 %v264_v34, 16  ;;  %v612_v49 = vshll.u32 %v264_v34, 16  ;;  %6187 = vmatprep.subr.bf16.mxu1 %v6803_v30  ;;  %v978_v25 = vld [vmem:[#allocation2 + $0x4] sm:$0xf] }
  0x59   : > { %v5591_v50 = vcombine.low %v597_v36, %v607_v45  ;;  %v423_v51 = vor.u32 %v422_v40, %v419_v20  ;;  %v432_v52 = vor.u32 %v431_v42, %v428_v41  ;;  %v618_v53 = vshrl.u32 %v265_v39, 16  ;;  %v979_v31 = vld [vmem:[#allocation2 + $0x8] sm:$0xf]  ;;  %v1550_v35 = vld [vmem:[#allocation2] sm:$0x8] }
  0x5a   : > { %v441_v55 = vrot.slane %v439_v46, 7  ;;  %v611_v56 = vrot.slane %v609_v48, 6  ;;  %v614_v57 = vrot.slane %v612_v49, 7  ;;  %v621_v58 = vshll.u32 %v265_v39, 16  ;;  %v1551_v40 = vld [vmem:[#allocation2 + $0x4] sm:$0xf] }
  0x5b   : > { %6084 = vmatmul.mubr.bf16.gmra.mxu1 %v5591_v50  ;;  %v424_v59 = vrot.slane %v423_v51, 4  ;;  %v434_v60 = vrot.slane %v432_v52, 4  ;;  %v620_v61 = vrot.slane %v618_v53, 6  ;;  %v628_v62 = vshrl.u32 %v266_v47, 16 }
  0x5c   : > { %v442_v63 = vor.u32 %v441_v55, %v438_v44  ;;  %v615_v0 = vor.u32 %v614_v57, %v611_v56  ;;  %v623_v2 = vrot.slane %v621_v58, 7  ;;  %v631_v3 = vshll.u32 %v266_v47, 16 }
  0x5d   : > { %v433_v4 = vsel %vm6674_vm2, %v424_v59, %v432_v52  ;;  %v630_v5 = vrot.slane %v628_v62, 6  ;;  %v446_v7 = vshrl.u32 %v247_v54, 16  ;;  %v449_v8 = vshll.u32 %v247_v54, 16  ;;  %v1552_v59 = vld [vmem:[#allocation2 + $0x8] sm:$0xf] }
  0x5e   : > { %v443_v9 = vsel %vm6674_vm2, %v434_v60, %v442_v63  ;;  %v616_v10 = vrot.slane %v615_v0, 4  ;;  %v624_v11 = vor.u32 %v623_v2, %v620_v61  ;;  %v633_v12 = vrot.slane %v631_v3, 7  ;;  %v980_v0 = vld [vmem:[#allocation2 + $0xc] sm:$0xf]  ;;  %v981_v2 = vld [vmem:[#allocation2 + $0x10] sm:$0x7] }
  0x5f   : > { %v5584_v14 = vcombine.low %v433_v4, %v443_v9  ;;  %v444_v15 = vrot.slane %v442_v63, 4  ;;  %v448_v16 = vrot.slane %v446_v7, 6  ;;  %v451_v17 = vrot.slane %v449_v8, 7  ;;  %v1553_v7 = vld [vmem:[#allocation2 + $0xc] sm:$0xf] }
  0x60   : > { %v625_v19 = vsel %vm6674_vm2, %v616_v10, %v624_v11  ;;  %v626_v21 = vrot.slane %v624_v11, 4  ;;  %v634_v22 = vor.u32 %v633_v12, %v630_v5  ;;  %v456_v23 = vshrl.u32 %v248_v6, 16 }
  0x61   : > { %6071 = vmatprep.mubr.bf16.mxu0 %v5584_v14  ;;  %v452_v26 = vor.u32 %v451_v17, %v448_v16  ;;  %v459_v27 = vshll.u32 %v248_v6, 16  ;;  %v638_v28 = vshrl.u32 %v267_v13, 16  ;;  %v641_v29 = vshll.u32 %v267_v13, 16  ;;  %v1554_v13 = vld [vmem:[#allocation2 + $0x10] sm:$0xf] }
  0x62   : > { %v635_v20 = vsel %vm6674_vm2, %v626_v21, %v634_v22  ;;  %v458_v32 = vrot.slane %v456_v23, 6  ;;  %v636_v33 = vrot.slane %v634_v22, 4  ;;  %v648_v34 = vshrl.u32 %v268_v18, 16  ;;  %v983_v23 = vld [vmem:[#allocation2 + $0x1c] sm:$0xf] }
  0x63   : > { %v5592_v36 = vcombine.low %v625_v19, %v635_v20  ;;  %v453_v37 = vsel %vm6674_vm2, %v444_v15, %v452_v26  ;;  %v454_v38 = vrot.slane %v452_v26, 4  ;;  %v461_v39 = vrot.slane %v459_v27, 7 }
  0x64   : > { %v640_v41 = vrot.slane %v638_v28, 6  ;;  %v643_v42 = vrot.slane %v641_v29, 7  ;;  %v650_v44 = vrot.slane %v648_v34, 6  ;;  %v651_v45 = vshll.u32 %v268_v18, 16  ;;  %v982_v18 = vld [vmem:[#allocation2 + $0x18] sm:$0x8] }
  0x65   : > { %6087 = vmatprep.mubr.bf16.mxu1 %v5592_v36  ;;  %v462_v47 = vor.u32 %v461_v39, %v458_v32  ;;  %v5602_v48 = vrot.slane %v977_v24, 11  ;;  %v1062_v49 = vrot.slane %v978_v25, 7  ;;  %v1065_v50 = vrot.slane %v979_v31, 7  ;;  %v984_v28 = vld [vmem:[#allocation2 + $0x20] sm:$0xf] }
  0x66   : > { %v644_v51 = vor.u32 %v643_v42, %v640_v41  ;;  %v653_v52 = vrot.slane %v651_v45, 7  ;;  %v1594_v53 = vshrl.u32 %v1550_v35, 16  ;;  %v1599_v54 = vshrl.u32 %v1551_v40, 16  ;;  %v1555_v29 = vld [vmem:[#allocation2 + $0x18] sm:$0x8] }
  0x67   : > { %v463_v55 = vsel %vm6674_vm2, %v454_v38, %v462_v47  ;;  %v1063_v56 = vsel %vm6824_vm7, %v5602_v48, %v1062_v49  ;;  %v1064_v57 = vrot.slane %v1062_v49, 4  ;;  %v1067_v58 = vrot.slane %v1065_v50, 4  ;;  %v1556_v31 = vld [vmem:[#allocation2 + $0x1c] sm:$0xf] }
  0x68   : > { %v5585_v60 = vcombine.low %v453_v37, %v463_v55  ;;  %v645_v61 = vsel %vm6674_vm2, %v636_v33, %v644_v51  ;;  %v646_v62 = vrot.slane %v644_v51, 4  ;;  %v654_v63 = vor.u32 %v653_v52, %v650_v44  ;;  %v1557_v44 = vld [vmem:[#allocation2 + $0x20] sm:$0xf]  ;;  %v986_v55 = vld [vmem:[#allocation2 + $0x28] sm:$0x7] }
  0x69   : > { %v1066_v3 = vsel %vm6824_vm7, %v1064_v57, %v1065_v50  ;;  %v5650_v4 = vrot.slane %v1594_v53, 11  ;;  %v1601_v5 = vrot.slane %v1599_v54, 7  ;;  %v1602_v6 = vshll.u32 %v1551_v40, 16  ;;  %v985_v50 = vld [vmem:[#allocation2 + $0x24] sm:$0xf] }
  0x6a   : > { %6072 = vmatmul.mubr.bf16.gmra.mxu0 %v5585_v60  ;;  %v655_v8 = vsel %vm6674_vm2, %v646_v62, %v654_v63  ;;  %v5626_v9 = vcombine.low %v1063_v56, %v1066_v3  ;;  %v1608_v11 = vshrl.u32 %v1552_v59, 16  ;;  %v1611_v12 = vshll.u32 %v1552_v59, 16  ;;  %v1558_v60 = vld [vmem:[#allocation2 + $0x24] sm:$0xf]  ;;  %v6464_v3 = vld [vmem:[%s8016_s1 + $0xf0] sm:$0xff]  }
  0x6b   : > { %v5593_v14 = vcombine.low %v645_v61, %v655_v8  ;;  %v1604_v15 = vor.u32 %v1602_v6, %v1601_v5  ;;  %v1606_v16 = vrot.slane %v1601_v5, 4  ;;  %v1068_v17 = vrot.slane %v980_v0, 7 }
  0x6c   : > { %v1610_v19 = vrot.slane %v1608_v11, 7  ;;  %v1071_v21 = vrot.slane %v981_v2, 7  ;;  %v1617_v22 = vshrl.u32 %v1553_v7, 16  ;;  %v1620_v43 = vshll.u32 %v1553_v7, 16  ;;  %v1559_v2 = vld [vmem:[#allocation2 + $0x28] sm:$0xf] }
  0x6d   : > { %6088 = vmatmul.mubr.bf16.gmra.mxu1 %v5593_v14  ;;  %v1605_v24 = vsel %vm6840_vm8, %v5650_v4, %v1604_v15  ;;  %v1069_v25 = vsel %vm6824_vm7, %v1067_v58, %v1068_v17  ;;  %v1070_v26 = vrot.slane %v1068_v17, 4  ;;  %v1626_v27 = vshrl.u32 %v1554_v13, 16  ;;  %v6465_v4 = vld [vmem:[%s8016_s1 + $0x130] sm:$0xff]  }
  0x6e   : > { %6107 = vmatprep.mubr.bf16.mxu1 %v5626_v9  ;;  %v1613_v20 = vor.u32 %v1611_v12, %v1610_v19  ;;  %v1615_v32 = vrot.slane %v1610_v19, 4  ;;  %v1619_v33 = vrot.slane %v1617_v22, 7  ;;  %v1629_v34 = vshll.u32 %v1554_v13, 16  ;;  %v987_v9 = vld [vmem:[#allocation2 + $0x30] sm:$0x8] }
  0x6f   : > { %v1072_v35 = vsel %vm6824_vm7, %v1070_v26, %v1071_v21  ;;  %v1628_v36 = vrot.slane %v1626_v27, 7  ;;  %v5603_v37 = vrot.slane %v982_v18, 11  ;;  %v1075_v38 = vrot.slane %v983_v23, 7  ;;  %v988_v15 = vld [vmem:[#allocation2 + $0x34] sm:$0xf]  ;;  %v6466_v18 = vld [vmem:[%s8016_s1 + $0xe8] sm:$0xff]  }
  0x70   : > { %v1614_v39 = vsel %vm6840_vm8, %v1606_v16, %v1613_v20  ;;  %v5627_v40 = vcombine.low %v1069_v25, %v1072_v35  ;;  %v1622_v41 = vor.u32 %v1620_v43, %v1619_v33  ;;  %v1624_v42 = vrot.slane %v1619_v33, 4  ;;  %v989_v16 = vld [vmem:[#allocation2 + $0x38] sm:$0xf]  ;;  %v1560_v17 = vld [vmem:[#allocation2 + $0x30] sm:$0x8] }
  0x71   : > { %v5674_v45 = vcombine.low %v1605_v24, %v1614_v39  ;;  %v1631_v47 = vor.u32 %v1629_v34, %v1628_v36  ;;  %v1076_v48 = vsel %vm6824_vm7, %v5603_v37, %v1075_v38  ;;  %v1077_v49 = vrot.slane %v1075_v38, 4  ;;  %v1561_v43 = vld [vmem:[#allocation2 + $0x34] sm:$0xf]  ;;  %v1562_v20 = vld [vmem:[#allocation2 + $0x38] sm:$0xf]  ;;  %v6468_v36 = vld [vmem:[%s8016_s1 + $0xe0] sm:$0xff]  }
  0x72   : > { %v1623_v51 = vsel %vm6840_vm8, %v1615_v32, %v1622_v41  ;;  %v1078_v52 = vrot.slane %v984_v28, 7  ;;  %v1634_v53 = vshrl.u32 %v1555_v29, 16  ;;  %v1639_v54 = vshrl.u32 %v1556_v31, 16  ;;  %v990_v41 = vld [vmem:[#allocation2 + $0x3c] sm:$0xf] }
  0x73   : > { %6155 = vmatprep.mubr.bf16.mxu0 %v5674_v45  ;;  %v1632_v56 = vsel %vm6840_vm8, %v1624_v42, %v1631_v47  ;;  %v1642_v57 = vshll.u32 %v1556_v31, 16  ;;  %v1648_v58 = vshrl.u32 %v1557_v44, 16  ;;  %v1651_v59 = vshll.u32 %v1557_v44, 16 }
  0x74   : > { %v5675_v61 = vcombine.low %v1623_v51, %v1632_v56  ;;  %v1079_v62 = vsel %vm6824_vm7, %v1077_v49, %v1078_v52  ;;  %v5651_v63 = vrot.slane %v1634_v53, 11  ;;  %v1641_v0 = vrot.slane %v1639_v54, 7  ;;  %v6469_v49 = vld [vmem:[%s8016_s1 + $0x120] sm:$0xff]  }
  0x75   : > { %6108 = vmatmul.mubr.bf16.vlgmr.msra.gmra.mxu1 %v5627_v40  ;;  %v5628_v5 = vcombine.low %v1076_v48, %v1079_v62  ;;  %v1650_v6 = vrot.slane %v1648_v58, 7  ;;  %v1080_v7 = vrot.slane %v1078_v52, 4  ;;  %v1081_v8 = vrot.slane %v985_v50, 7  ;;  %v991_v48 = vld [vmem:[#allocation2 + $0x40] sm:$0x7] }
  0x76   : > { %6156 = vmatmul.mubr.bf16.vlgmr.msra.gmra.mxu0 %v5675_v61  ;;  %6188 = vmatpush3.bf16.msra.mxu1 %v6803_v30  ;;  %v1644_v11 = vor.u32 %v1642_v57, %v1641_v0  ;;  %v1646_v12 = vrot.slane %v1641_v0, 4  ;;  %v1084_v13 = vrot.slane %v986_v55, 7  ;;  %v1657_v14 = vshrl.u32 %v1558_v60, 16  ;;  %v1563_v58 = vld [vmem:[#allocation2 + $0x3c] sm:$0xf] }
  0x77   : > { %6236 = vmatpush3.bf16.msra.mxu0 %v6788_v1  ;;  %6111 = vmatprep.mubr.bf16.mxu1 %v5628_v5  ;;  %v1653_v19 = vor.u32 %v1651_v59, %v1650_v6  ;;  %v1082_v21 = vsel %vm6824_vm7, %v1080_v7, %v1081_v8  ;;  %v1083_v22 = vrot.slane %v1081_v8, 4  ;;  %v1655_v30 = vrot.slane %v1650_v6, 4  ;;  %v6467_v1 = vld [vmem:[%s8016_s1 + $0x128] sm:$0xff]   ;;  %v6470_v59 = vld [vmem:[%s8016_s1 + $0xd8] sm:$0xff]   ;;  %v1564_v0 = vld [vmem:[#allocation2 + $0x40] sm:$0xf] }
  0x78   : > { %v1645_v23 = vsel %vm6840_vm8, %v5651_v63, %v1644_v11  ;;  %v1659_v24 = vrot.slane %v1657_v14, 7  ;;  %v1660_v25 = vshll.u32 %v1558_v60, 16  ;;  %v1666_v26 = vshrl.u32 %v1559_v2, 16  ;;  %6189 = vmatprep.subr.bf16.mxu1 %v6464_v3  ;;  %6237 = vmatprep.subr.bf16.mxu0 %v6465_v4  ;;  %v993_v7 = vld [vmem:[#allocation2 + $0x4c] sm:$0xf]  ;;  %v6471_v11 = vld [vmem:[%s8016_s1 + $0x118] sm:$0xff]  }
  0x79   : > { %v1654_v27 = vsel %vm6840_vm8, %v1646_v12, %v1653_v19  ;;  %v1085_v28 = vsel %vm6824_vm7, %v1083_v22, %v1084_v13  ;;  %v1669_v29 = vshll.u32 %v1559_v2, 16  ;;  %v5604_v31 = vrot.slane %v987_v9, 11  ;;  %v992_v2 = vld [vmem:[#allocation2 + $0x48] sm:$0x8]  ;;  %v6901_v8 = vld [vmem:[#allocation2 + $0x50] sm:$0xf] }
  0x7a   : > { %v5676_v32 = vcombine.low %v1645_v23, %v1654_v27  ;;  %v5629_v33 = vcombine.low %v1082_v21, %v1085_v28  ;;  %v1662_v34 = vor.u32 %v1660_v25, %v1659_v24  ;;  %v1664_v35 = vrot.slane %v1659_v24, 4  ;;  %6190 = vmatpush3.bf16.msra.mxu1 %v6464_v3  ;;  %v1565_v9 = vld [vmem:[#allocation2 + $0x48] sm:$0x8]  ;;  %v1566_v21 = vld [vmem:[#allocation2 + $0x4c] sm:$0xf]  ;;  %v6472_v27 = vld [vmem:[%s8016_s1 + $0xd0] sm:$0xff]  }
  0x7b   : > { %v1668_v37 = vrot.slane %v1666_v26, 7  ;;  %6238 = vmatpush3.bf16.msra.mxu0 %v6465_v4  ;;  %v1088_v38 = vrot.slane %v988_v15, 7  ;;  %v1091_v39 = vrot.slane %v989_v16, 7  ;;  %v1674_v40 = vshrl.u32 %v1560_v17, 16  ;;  %6191 = vmatprep.subr.bf16.mxu1 %v6466_v18  ;;  %v6473_v28 = vld [vmem:[%s8016_s1 + $0x110] sm:$0xff]  }
  0x7c   : > { %6159 = vmatprep.mubr.bf16.mxu0 %v5676_v32  ;;  %v1663_v42 = vsel %vm6840_vm8, %v1655_v30, %v1662_v34  ;;  %v1679_v44 = vshrl.u32 %v1561_v43, 16  ;;  %v1682_v45 = vshll.u32 %v1561_v43, 16  ;;  %v1688_v47 = vshrl.u32 %v1562_v20, 16  ;;  %6239 = vmatprep.subr.bf16.mxu0 %v6467_v1 }
  0x7d   : > { %6112 = vmatmul.mubr.bf16.gmra.mxu1 %v5629_v33  ;;  %v1671_v50 = vor.u32 %v1669_v29, %v1668_v37  ;;  %v1089_v51 = vsel %vm6824_vm7, %v5604_v31, %v1088_v38  ;;  %v1090_v52 = vrot.slane %v1088_v38, 4  ;;  %v5652_v53 = vrot.slane %v1674_v40, 11  ;;  %v995_v38 = vld [vmem:[#allocation2 + $0x54] sm:$0xf] }
  0x7e   : > { %v1681_v54 = vrot.slane %v1679_v44, 7  ;;  %v6892_v55 = vrot.slane %v1688_v47, 7  ;;  %v1691_v56 = vshll.u32 %v1562_v20, 16  ;;  %v1093_v57 = vrot.slane %v1091_v39, 4  ;;  %6192 = vmatpush3.bf16.msra.mxu1 %v6466_v18  ;;  %v1567_v20 = vld [vmem:[#allocation2 + $0x50] sm:$0xf] }
  0x7f   : > { %v1672_v60 = vsel %vm6840_vm8, %v1664_v35, %v1671_v50  ;;  %v1092_v61 = vsel %vm6824_vm7, %v1090_v52, %v1091_v39  ;;  %v1094_v62 = vrot.slane %v990_v41, 7  ;;  %v1097_v63 = vrot.slane %v991_v48, 7  ;;  %6240 = vmatpush3.bf16.msra.mxu0 %v6467_v1  ;;  %6193 = vmatprep.subr.bf16.mxu1 %v6468_v36  ;;  %v996_v39 = vld [vmem:[#allocation2 + $0x58] sm:$0x7]  ;;  %v6474_v47 = vld [vmem:[%s8016_s1 + $0xc8] sm:$0xff]  }
  0x80   : > { %v5677_v3 = vcombine.low %v1663_v42, %v1672_v60  ;;  %v5630_v4 = vcombine.low %v1089_v51, %v1092_v61  ;;  %v1684_v5 = vor.u32 %v1682_v45, %v1681_v54  ;;  %v1686_v6 = vrot.slane %v1681_v54, 4  ;;  %6241 = vmatprep.subr.bf16.mxu0 %v6469_v49  ;;  %v1568_v45 = vld [vmem:[#allocation2 + $0x54] sm:$0xf]  ;;  %v6932_v52 = vld [vmem:[#allocation2 + $0x58] sm:$0xf] }
  0x81   : > { %v1693_v12 = vor.u32 %v1691_v56, %v6892_v55  ;;  %v1095_v13 = vsel %vm6824_vm7, %v1093_v57, %v1094_v62  ;;  %v1096_v14 = vrot.slane %v1094_v62, 4  ;;  %v1695_v15 = vrot.slane %v6892_v55, 4 }
  0x82   : > { %6160 = vmatmul.mubr.bf16.gmra.mxu0 %v5677_v3  ;;  %6115 = vmatprep.mubr.bf16.mxu1 %v5630_v4  ;;  %v1685_v16 = vsel %vm6840_vm8, %v5652_v53, %v1684_v5  ;;  %v1697_v17 = vshrl.u32 %v1563_v58, 16  ;;  %v1700_v18 = vshll.u32 %v1563_v58, 16  ;;  %v1706_v19 = vshrl.u32 %v1564_v0, 16  ;;  %v997_v53 = vld [vmem:[#allocation2 + $0x60] sm:$0x8] }
  0x83   : > { %v1694_v22 = vsel %vm6840_vm8, %v1686_v6, %v1693_v12  ;;  %v1098_v30 = vsel %vm6824_vm7, %v1096_v14, %v1097_v63  ;;  %v1709_v43 = vshll.u32 %v1564_v0, 16  ;;  %v5605_v23 = vrot.slane %v992_v2, 11  ;;  %6194 = vmatpush3.bf16.msra.mxu1 %v6468_v36  ;;  %6242 = vmatpush3.bf16.msra.mxu0 %v6469_v49  ;;  %v998_v58 = vld [vmem:[#allocation2 + $0x64] sm:$0xf]  ;;  %v999_v5 = vld [vmem:[#allocation2 + $0x68] sm:$0xf] }
  0x84   : > { %v5678_v24 = vcombine.low %v1685_v16, %v1694_v22  ;;  %v5631_v25 = vcombine.low %v1095_v13, %v1098_v30  ;;  %v1699_v26 = vrot.slane %v1697_v17, 7  ;;  %v1708_v1 = vrot.slane %v1706_v19, 7  ;;  %6195 = vmatprep.subr.bf16.mxu1 %v6470_v59  ;;  %6243 = vmatprep.subr.bf16.mxu0 %v6471_v11  ;;  %v6477_v12 = vld [vmem:[%s8016_s1 + $0x100] sm:$0xff]  }
  0x85   : > { %v1101_v29 = vrot.slane %v993_v7, 7  ;;  %v1104_v31 = vrot.slane %v6901_v8, 7  ;;  %v1714_v32 = vshrl.u32 %v1565_v9, 16  ;;  %v1719_v33 = vshrl.u32 %v1566_v21, 16  ;;  %v1570_v17 = vld [vmem:[#allocation2 + $0x60] sm:$0x8] }
  0x86   : > { %6163 = vmatprep.mubr.bf16.mxu0 %v5678_v24  ;;  %6116 = vmatmul.mubr.bf16.gmra.mxu1 %v5631_v25  ;;  %v1702_v34 = vor.u32 %v1700_v18, %v1699_v26  ;;  %v1704_v35 = vrot.slane %v1699_v26, 4  ;;  %v1711_v36 = vor.u32 %v1709_v43, %v1708_v1  ;;  %v1722_v37 = vshll.u32 %v1566_v21, 16  ;;  %v1571_v30 = vld [vmem:[#allocation2 + $0x64] sm:$0xf]  ;;  %v1572_v43 = vld [vmem:[#allocation2 + $0x68] sm:$0xf] }
  0x87   : > { %v1102_v40 = vsel %vm6824_vm7, %v5605_v23, %v1101_v29  ;;  %v1103_v41 = vrot.slane %v1101_v29, 4  ;;  %v5653_v42 = vrot.slane %v1714_v32, 11  ;;  %v1721_v44 = vrot.slane %v1719_v33, 7  ;;  %6196 = vmatpush3.bf16.msra.mxu1 %v6470_v59  ;;  %6244 = vmatpush3.bf16.msra.mxu0 %v6471_v11  ;;  %v6475_v59 = vld [vmem:[%s8016_s1 + $0x108] sm:$0xff]   ;;  %v6476_v11 = vld [vmem:[%s8016_s1 + $0xc0] sm:$0xff]   ;;  %v6960_v32 = vld [vmem:[%s8016_s1 + $0x178] sm:$0xff]  }
  0x88   : > { %v1703_v48 = vsel %vm6840_vm8, %v1695_v15, %v1702_v34  ;;  %v1712_v49 = vsel %vm6840_vm8, %v1704_v35, %v1711_v36  ;;  %v1728_v50 = vshrl.u32 %v1567_v20, 16  ;;  %v1731_v51 = vshll.u32 %v1567_v20, 16  ;;  %6197 = vmatprep.subr.bf16.mxu1 %v6472_v27  ;;  %6245 = vmatprep.subr.bf16.mxu0 %v6473_v28  ;;  %v1000_v1 = vld [vmem:[#allocation2 + $0x6c] sm:$0xf]  ;;  %v1001_v20 = vld [vmem:[#allocation2 + $0x70] sm:$0x7] }
  0x89   : > { %v5679_v54 = vcombine.low %v1703_v48, %v1712_v49  ;;  %v1105_v55 = vsel %vm6824_vm7, %v1103_v41, %v1104_v31  ;;  %v1724_v56 = vor.u32 %v1722_v37, %v1721_v44  ;;  %v1726_v57 = vrot.slane %v1721_v44, 4  ;;  %v1573_v37 = vld [vmem:[#allocation2 + $0x6c] sm:$0xf]  ;;  %v1574_v44 = vld [vmem:[#allocation2 + $0x70] sm:$0xf] }
  0x8a   : > { %v5632_v60 = vcombine.low %v1102_v40, %v1105_v55  ;;  %v1730_v61 = vrot.slane %v1728_v50, 7  ;;  %v1106_v62 = vrot.slane %v1104_v31, 4  ;;  %v1107_v63 = vrot.slane %v995_v38, 7  ;;  %v6967_v38 = vld [vmem:[%s8016_s1 + $0x1b8] sm:$0xff]  }
  0x8b   : > { %6164 = vmatmul.mubr.bf16.gmra.mxu0 %v5679_v54  ;;  %v1725_v0 = vsel %vm6840_vm8, %v5653_v42, %v1724_v56  ;;  %v1110_v2 = vrot.slane %v996_v39, 7  ;;  %v1737_v3 = vshrl.u32 %v1568_v45, 16  ;;  %v1740_v4 = vshll.u32 %v1568_v45, 16  ;;  %6198 = vmatpush3.bf16.msra.mxu1 %v6472_v27 }
  0x8c   : > { %6119 = vmatprep.mubr.bf16.mxu1 %v5632_v60  ;;  %v1733_v6 = vor.u32 %v1731_v51, %v1730_v61  ;;  %v1108_v7 = vsel %vm6824_vm7, %v1106_v62, %v1107_v63  ;;  %v1109_v8 = vrot.slane %v1107_v63, 4  ;;  %v1735_v9 = vrot.slane %v1730_v61, 4  ;;  %6246 = vmatpush3.bf16.msra.mxu0 %v6473_v28 }
  0x8d   : > { %v1739_v13 = vrot.slane %v1737_v3, 7  ;;  %v1746_v14 = vshrl.u32 %v6932_v52, 16  ;;  %v1749_v15 = vshll.u32 %v6932_v52, 16  ;;  %v5606_v16 = vrot.slane %v997_v53, 11  ;;  %6199 = vmatprep.subr.bf16.mxu1 %v6474_v47  ;;  %6247 = vmatprep.subr.bf16.mxu0 %v6475_v59 }
  0x8e   : > { %v1734_v18 = vsel %vm6840_vm8, %v1726_v57, %v1733_v6  ;;  %v1111_v19 = vsel %vm6824_vm7, %v1109_v8, %v1110_v2  ;;  %v1114_v21 = vrot.slane %v998_v58, 7  ;;  %v1117_v22 = vrot.slane %v999_v5, 7  ;;  %v1002_v58 = vld [vmem:[#allocation2 + $0x78] sm:$0x8] }
  0x8f   : > { %v5680_v23 = vcombine.low %v1725_v0, %v1734_v18  ;;  %v5633_v24 = vcombine.low %v1108_v7, %v1111_v19  ;;  %v1742_v25 = vor.u32 %v1740_v4, %v1739_v13  ;;  %v1744_v26 = vrot.slane %v1739_v13, 4  ;;  %6200 = vmatpush3.bf16.msra.mxu1 %v6474_v47  ;;  %v1004_v0 = vld [vmem:[#allocation2 + $0x80] sm:$0xf]  ;;  %v1575_v6 = vld [vmem:[#allocation2 + $0x78] sm:$0x8] }
  0x90   : > { %v1748_v27 = vrot.slane %v1746_v14, 7  ;;  %v1115_v28 = vsel %vm6824_vm7, %v5606_v16, %v1114_v21  ;;  %v1116_v29 = vrot.slane %v1114_v21, 4  ;;  %v1754_v31 = vshrl.u32 %v1570_v17, 16  ;;  %6248 = vmatpush3.bf16.msra.mxu0 %v6475_v59  ;;  %6201 = vmatprep.subr.bf16.mxu1 %v6476_v11  ;;  %v1003_v59 = vld [vmem:[#allocation2 + $0x7c] sm:$0xf] }
  0x91   : > { %6167 = vmatprep.mubr.bf16.mxu0 %v5680_v23  ;;  %6120 = vmatmul.mubr.bf16.gmra.mxu1 %v5633_v24  ;;  %v1743_v33 = vsel %vm6840_vm8, %v1735_v9, %v1742_v25  ;;  %v1759_v34 = vshrl.u32 %v1571_v30, 16  ;;  %v1762_v35 = vshll.u32 %v1571_v30, 16  ;;  %v1768_v36 = vshrl.u32 %v1572_v43, 16  ;;  %v1576_v7 = vld [vmem:[#allocation2 + $0x7c] sm:$0xf] }
  0x92   : > { %v1751_v39 = vor.u32 %v1749_v15, %v1748_v27  ;;  %v1118_v40 = vsel %vm6824_vm7, %v1116_v29, %v1117_v22  ;;  %v5654_v41 = vrot.slane %v1754_v31, 11  ;;  %v1771_v42 = vshll.u32 %v1572_v43, 16  ;;  %6249 = vmatprep.subr.bf16.mxu0 %v6477_v12  ;;  %v1577_v13 = vld [vmem:[#allocation2 + $0x80] sm:$0xf]  ;;  %v1005_v30 = vld [vmem:[#allocation2 + $0x84] sm:$0xf] }
  0x93   : > { %v5634_v45 = vcombine.low %v1115_v28, %v1118_v40  ;;  %v1761_v47 = vrot.slane %v1759_v34, 7  ;;  %v1770_v48 = vrot.slane %v1768_v36, 7  ;;  %v1119_v49 = vrot.slane %v1117_v22, 4  ;;  %6202 = vmatpush3.bf16.msra.mxu1 %v6476_v11  ;;  %v1006_v43 = vld [vmem:[#allocation2 + $0x88] sm:$0x7] }
  0x94   : > { %v1752_v50 = vsel %vm6840_vm8, %v1744_v26, %v1751_v39  ;;  %v1120_v51 = vrot.slane %v1000_v1, 7  ;;  %v1123_v52 = vrot.slane %v1001_v20, 7  ;;  %v1777_v53 = vshrl.u32 %v1573_v37, 16  ;;  %6250 = vmatpush3.bf16.msra.mxu0 %v6477_v12  ;;  %6283 = vmatprep.subr.bf16.mxu1 %v6960_v32  ;;  %v1578_v1 = vld [vmem:[#allocation2 + $0x84] sm:$0xf] }
  0x95   : > { %v5681_v54 = vcombine.low %v1743_v33, %v1752_v50  ;;  %6123 = vmatprep.mubr.bf16.mxu1 %v5634_v45  ;;  %v1764_v55 = vor.u32 %v1762_v35, %v1761_v47  ;;  %v1766_v56 = vrot.slane %v1761_v47, 4  ;;  %v1773_v57 = vor.u32 %v1771_v42, %v1770_v48  ;;  %6331 = vmatprep.subr.bf16.mxu0 %v6967_v38  ;;  %v1579_v20 = vld [vmem:[#allocation2 + $0x88] sm:$0xf]  ;;  %v1009_v50 = vld [vmem:[#allocation2 + $0x98] sm:$0xf] }
  0x96   : > { %v1121_v60 = vsel %vm6824_vm7, %v1119_v49, %v1120_v51  ;;  %v1122_v61 = vrot.slane %v1120_v51, 4  ;;  %v1775_v62 = vrot.slane %v1770_v48, 4  ;;  %v1779_v63 = vrot.slane %v1777_v53, 7  ;;  %v1008_v49 = vld [vmem:[#allocation2 + $0x94] sm:$0xf] }
  0x97   : > { %6168 = vmatmul.mubr.bf16.gmra.mxu0 %v5681_v54  ;;  %v1765_v2 = vsel %vm6840_vm8, %v5654_v41, %v1764_v55  ;;  %v1774_v3 = vsel %vm6840_vm8, %v1766_v56, %v1773_v57  ;;  %v1780_v4 = vshll.u32 %v1573_v37, 16  ;;  %v1786_v5 = vshrl.u32 %v1574_v44, 16  ;;  %v1007_v37 = vld [vmem:[#allocation2 + $0x90] sm:$0x8] }
  0x98   : > { %v5682_v8 = vcombine.low %v1765_v2, %v1774_v3  ;;  %v1124_v9 = vsel %vm6824_vm7, %v1122_v61, %v1123_v52  ;;  %v1784_v11 = vrot.slane %v1779_v63, 4  ;;  %v1789_v12 = vshll.u32 %v1574_v44, 16  ;;  %v1580_v55 = vld [vmem:[#allocation2 + $0x90] sm:$0x8] }
  0x99   : > { %v5635_v14 = vcombine.low %v1121_v60, %v1124_v9  ;;  %v1782_v15 = vor.u32 %v1780_v4, %v1779_v63  ;;  %v1788_v16 = vrot.slane %v1786_v5, 7  ;;  %v5607_v17 = vrot.slane %v1002_v58, 11 }
  0x9a   : > { %6171 = vmatprep.mubr.bf16.mxu0 %v5682_v8  ;;  %v1127_v18 = vrot.slane %v1003_v59, 7  ;;  %v1130_v19 = vrot.slane %v1004_v0, 7  ;;  %v1794_v21 = vshrl.u32 %v1575_v6, 16  ;;  %v1799_v22 = vshrl.u32 %v1576_v7, 16  ;;  %v1581_v0 = vld [vmem:[#allocation2 + $0x94] sm:$0xf] }
  0x9b   : > { %6124 = vmatmul.mubr.bf16.gmra.mxu1 %v5635_v14  ;;  %v1783_v23 = vsel %vm6840_vm8, %v1775_v62, %v1782_v15  ;;  %v1791_v24 = vor.u32 %v1789_v12, %v1788_v16  ;;  %v1802_v25 = vshll.u32 %v1576_v7, 16  ;;  %v1808_v26 = vshrl.u32 %v1577_v13, 16  ;;  %v1582_v6 = vld [vmem:[#allocation2 + $0x98] sm:$0xf]  ;;  %v1010_v12 = vld [vmem:[#allocation2 + $0x9c] sm:$0xf] }
  0x9c   : > { %v1128_v27 = vsel %vm6824_vm7, %v5607_v17, %v1127_v18  ;;  %v1129_v28 = vrot.slane %v1127_v18, 4  ;;  %v5655_v29 = vrot.slane %v1794_v21, 11  ;;  %v1801_v31 = vrot.slane %v1799_v22, 7  ;;  %v1583_v18 = vld [vmem:[#allocation2 + $0x9c] sm:$0xf] }
  0x9d   : > { %v1792_v33 = vsel %vm6840_vm8, %v1784_v11, %v1791_v24  ;;  %v1810_v34 = vrot.slane %v1808_v26, 7  ;;  %v1811_v35 = vshll.u32 %v1577_v13, 16  ;;  %v1132_v36 = vrot.slane %v1130_v19, 4  ;;  %v1011_v13 = vld [vmem:[#allocation2 + $0xa0] sm:$0x7] }
  0x9e   : > { %v5683_v39 = vcombine.low %v1783_v23, %v1792_v33  ;;  %v1131_v40 = vsel %vm6824_vm7, %v1129_v28, %v1130_v19  ;;  %v1804_v41 = vor.u32 %v1802_v25, %v1801_v31  ;;  %v1806_v42 = vrot.slane %v1801_v31, 4  ;;  %v1584_v26 = vld [vmem:[#allocation2 + $0xa0] sm:$0xf]  ;;  %v1012_v31 = vld [vmem:[#allocation2 + $0xa8] sm:$0x8] }
  0x9f   : > { %v5636_v44 = vcombine.low %v1128_v27, %v1131_v40  ;;  %v1813_v45 = vor.u32 %v1811_v35, %v1810_v34  ;;  %v1133_v47 = vrot.slane %v1005_v30, 7  ;;  %v1136_v48 = vrot.slane %v1006_v43, 7 }
  0xa0   : > { %6172 = vmatmul.mubr.bf16.gmra.mxu0 %v5683_v39  ;;  %v1805_v51 = vsel %vm6840_vm8, %v5655_v29, %v1804_v41  ;;  %v1815_v52 = vrot.slane %v1810_v34, 4  ;;  %v1817_v53 = vshrl.u32 %v1578_v1, 16  ;;  %v1820_v54 = vshll.u32 %v1578_v1, 16 }
  0xa1   : > { %6127 = vmatprep.mubr.bf16.mxu1 %v5636_v44  ;;  %v1814_v56 = vsel %vm6840_vm8, %v1806_v42, %v1813_v45  ;;  %v1134_v57 = vsel %vm6824_vm7, %v1132_v36, %v1133_v47  ;;  %v1135_v58 = vrot.slane %v1133_v47, 4  ;;  %v1826_v59 = vshrl.u32 %v1579_v20, 16  ;;  %v1585_v44 = vld [vmem:[#allocation2 + $0xa8] sm:$0x8] }
  0xa2   : > { %v5684_v60 = vcombine.low %v1805_v51, %v1814_v56  ;;  %v1819_v61 = vrot.slane %v1817_v53, 7  ;;  %v1829_v62 = vshll.u32 %v1579_v20, 16  ;;  %v5608_v63 = vrot.slane %v1007_v37, 11  ;;  %v1013_v20 = vld [vmem:[#allocation2 + $0xac] sm:$0xf] }
  0xa3   : > { %v1137_v2 = vsel %vm6824_vm7, %v1135_v58, %v1136_v48  ;;  %v1828_v3 = vrot.slane %v1826_v59, 7  ;;  %v1140_v4 = vrot.slane %v1008_v49, 7  ;;  %v1143_v5 = vrot.slane %v1009_v50, 7  ;;  %v1014_v37 = vld [vmem:[#allocation2 + $0xb0] sm:$0xf] }
  0xa4   : > { %6175 = vmatprep.mubr.bf16.mxu0 %v5684_v60  ;;  %v5637_v7 = vcombine.low %v1134_v57, %v1137_v2  ;;  %v1822_v8 = vor.u32 %v1820_v54, %v1819_v61  ;;  %v1824_v9 = vrot.slane %v1819_v61, 4  ;;  %v1834_v11 = vshrl.u32 %v1580_v55, 16  ;;  %v1586_v50 = vld [vmem:[#allocation2 + $0xac] sm:$0xf]  ;;  %v1587_v51 = vld [vmem:[#allocation2 + $0xb0] sm:$0xf] }
  0xa5   : > { %v1831_v14 = vor.u32 %v1829_v62, %v1828_v3  ;;  %v1141_v15 = vsel %vm6824_vm7, %v5608_v63, %v1140_v4  ;;  %v1142_v16 = vrot.slane %v1140_v4, 4  ;;  %v1839_v17 = vshrl.u32 %v1581_v0, 16 }
  0xa6   : > { %6128 = vmatmul.mubr.bf16.gmra.mxu1 %v5637_v7  ;;  %v1823_v19 = vsel %vm6840_vm8, %v1815_v52, %v1822_v8  ;;  %v5656_v21 = vrot.slane %v1834_v11, 11  ;;  %v1842_v22 = vshll.u32 %v1581_v0, 16  ;;  %v1848_v30 = vshrl.u32 %v1582_v6, 16  ;;  %v1015_v0 = vld [vmem:[#allocation2 + $0xb4] sm:$0xf] }
  0xa7   : > { %v1832_v43 = vsel %vm6840_vm8, %v1824_v9, %v1831_v14  ;;  %v1144_v23 = vsel %vm6824_vm7, %v1142_v16, %v1143_v5  ;;  %v1841_v24 = vrot.slane %v1839_v17, 7  ;;  %v1851_v25 = vshll.u32 %v1582_v6, 16  ;;  %v1016_v6 = vld [vmem:[#allocation2 + $0xb8] sm:$0x7] }
  0xa8   : > { %v5685_v1 = vcombine.low %v1823_v19, %v1832_v43  ;;  %v5638_v27 = vcombine.low %v1141_v15, %v1144_v23  ;;  %v1850_v28 = vrot.slane %v1848_v30, 7  ;;  %v1145_v29 = vrot.slane %v1143_v5, 4  ;;  %v1589_v23 = vld [vmem:[#allocation2 + $0xb8] sm:$0xf] }
  0xa9   : > { %v1844_v33 = vor.u32 %v1842_v22, %v1841_v24  ;;  %v1846_v34 = vrot.slane %v1841_v24, 4  ;;  %v1146_v35 = vrot.slane %v1010_v12, 7  ;;  %v1149_v36 = vrot.slane %v1011_v13, 7  ;;  %v1588_v12 = vld [vmem:[#allocation2 + $0xb4] sm:$0xf] }
  0xaa   : > { %6176 = vmatmul.mubr.bf16.gmra.mxu0 %v5685_v1  ;;  %6131 = vmatprep.mubr.bf16.mxu1 %v5638_v27  ;;  %v1853_v39 = vor.u32 %v1851_v25, %v1850_v28  ;;  %v1855_v40 = vrot.slane %v1850_v28, 4  ;;  %v1857_v41 = vshrl.u32 %v1583_v18, 16  ;;  %v1860_v42 = vshll.u32 %v1583_v18, 16  ;;  %v2749_v28 = vld [vmem:[#allocation2 + $0x4] sm:$0xf] }
  0xab   : > { %v1845_v45 = vsel %vm6840_vm8, %v5656_v21, %v1844_v33  ;;  %v1147_v47 = vsel %vm6824_vm7, %v1145_v29, %v1146_v35  ;;  %v1148_v48 = vrot.slane %v1146_v35, 4  ;;  %v1866_v49 = vshrl.u32 %v1584_v26, 16  ;;  %v2750_v29 = vld [vmem:[#allocation2 + $0x8] sm:$0xf]  ;;  %v2751_v35 = vld [vmem:[#allocation2 + $0xc] sm:$0xf] }
  0xac   : > { %v1854_v52 = vsel %vm6840_vm8, %v1846_v34, %v1853_v39  ;;  %v1859_v53 = vrot.slane %v1857_v41, 7  ;;  %v1869_v54 = vshll.u32 %v1584_v26, 16  ;;  %v5609_v55 = vrot.slane %v1012_v31, 11 }
  0xad   : > { %v5686_v56 = vcombine.low %v1845_v45, %v1854_v52  ;;  %v1150_v57 = vsel %vm6824_vm7, %v1148_v48, %v1149_v36  ;;  %v1868_v58 = vrot.slane %v1866_v49, 7  ;;  %v1153_v59 = vrot.slane %v1013_v20, 7  ;;  %v2752_v48 = vld [vmem:[#allocation2 + $0x10] sm:$0xf] }
  0xae   : > { %v5639_v60 = vcombine.low %v1147_v47, %v1150_v57  ;;  %v1862_v61 = vor.u32 %v1860_v42, %v1859_v53  ;;  %v1864_v62 = vrot.slane %v1859_v53, 4  ;;  %v1156_v63 = vrot.slane %v1014_v37, 7  ;;  %v6478_v47 = vld [vmem:[#allocation2 + $0x4] sm:$0xff]  }
  0xaf   : > { %6179 = vmatprep.mubr.bf16.mxu0 %v5686_v56  ;;  %v1871_v2 = vor.u32 %v1869_v54, %v1868_v58  ;;  %v1154_v3 = vsel %vm6824_vm7, %v5609_v55, %v1153_v59  ;;  %v1155_v4 = vrot.slane %v1153_v59, 4  ;;  %v1874_v5 = vshrl.u32 %v1585_v44, 16  ;;  %v2753_v55 = vld [vmem:[#allocation2 + $0x14] sm:$0x1]  ;;  %v2754_v56 = vld [vmem:[#allocation2 + $0x1c] sm:$0xf] }
  0xb0   : > { %6132 = vmatmul.mubr.bf16.gmra.mxu1 %v5639_v60  ;;  %v1863_v7 = vsel %vm6840_vm8, %v1855_v40, %v1862_v61  ;;  %v1879_v8 = vshrl.u32 %v1586_v50, 16  ;;  %v1882_v9 = vshll.u32 %v1586_v50, 16  ;;  %v1888_v11 = vshrl.u32 %v1587_v51, 16  ;;  %v2755_v60 = vld [vmem:[#allocation2 + $0x20] sm:$0xf] }
  0xb1   : > { %v1872_v13 = vsel %vm6840_vm8, %v1864_v62, %v1871_v2  ;;  %v1157_v14 = vsel %vm6824_vm7, %v1155_v4, %v1156_v63  ;;  %v5657_v15 = vrot.slane %v1874_v5, 11  ;;  %v1891_v16 = vshll.u32 %v1587_v51, 16 }
  0xb2   : > { %v5687_v17 = vcombine.low %v1863_v7, %v1872_v13  ;;  %v5640_v18 = vcombine.low %v1154_v3, %v1157_v14  ;;  %v1881_v19 = vrot.slane %v1879_v8, 7  ;;  %v1890_v21 = vrot.slane %v1888_v11, 7  ;;  %v6479_v8 = vld [vmem:[#allocation2 + $0xc] sm:$0xff]   ;;  %v2756_v13 = vld [vmem:[#allocation2 + $0x24] sm:$0xf] }
  0xb3   : > { %v1158_v22 = vrot.slane %v1156_v63, 4  ;;  %v1159_v30 = vrot.slane %v1015_v0, 7  ;;  %v1162_v43 = vrot.slane %v1016_v6, 7  ;;  %v1897_v24 = vshrl.u32 %v1588_v12, 16 }
  0xb4   : > { %6180 = vmatmul.mubr.bf16.gmra.mxu0 %v5687_v17  ;;  %6135 = vmatprep.mubr.bf16.mxu1 %v5640_v18  ;;  %v1884_v25 = vor.u32 %v1882_v9, %v1881_v19  ;;  %v1886_v26 = vrot.slane %v1881_v19, 4  ;;  %v1893_v1 = vor.u32 %v1891_v16, %v1890_v21  ;;  %v1895_v27 = vrot.slane %v1890_v21, 4  ;;  %v6484_v18 = vld [vmem:[%s8016_s1 + $0x170] sm:$0xff]  }
  0xb5   : > { %v1160_v31 = vsel %vm6824_vm7, %v1158_v22, %v1159_v30  ;;  %v1161_v20 = vrot.slane %v1159_v30, 4  ;;  %v1899_v33 = vrot.slane %v1897_v24, 7  ;;  %v1900_v34 = vshll.u32 %v1588_v12, 16  ;;  %v6482_v12 = vld [vmem:[#allocation2 + $0x1c] sm:$0xff]  }
  0xb6   : > { %v1885_v36 = vsel %vm6840_vm8, %v5657_v15, %v1884_v25  ;;  %v1894_v37 = vsel %vm6840_vm8, %v1886_v26, %v1893_v1  ;;  %v1906_v39 = vshrl.u32 %v1589_v23, 16  ;;  %v1909_v40 = vshll.u32 %v1589_v23, 16 }
  0xb7   : > { %v5688_v41 = vcombine.low %v1885_v36, %v1894_v37  ;;  %v1163_v42 = vsel %vm6824_vm7, %v1161_v20, %v1162_v43  ;;  %v1902_v44 = vor.u32 %v1900_v34, %v1899_v33  ;;  %v1904_v45 = vrot.slane %v1899_v33, 4  ;;  %v2757_v43 = vld [vmem:[#allocation2 + $0x28] sm:$0xf] }
  0xb8   : > { %v5641_v49 = vcombine.low %v1160_v31, %v1163_v42  ;;  %v1908_v50 = vrot.slane %v1906_v39, 7  ;;  %v2793_v52 = vshrl.u32 %v2749_v28, 16  ;;  %v2796_v53 = vshll.u32 %v2749_v28, 16  ;;  %v6488_v36 = vld [vmem:[%s8016_s1 + $0x168] sm:$0xff]   ;;  %v2759_v42 = vld [vmem:[#allocation2 + $0x34] sm:$0xf] }
  0xb9   : > { %6183 = vmatprep.mubr.bf16.mxu0 %v5688_v41  ;;  %v1903_v51 = vsel %vm6840_vm8, %v1895_v27, %v1902_v44  ;;  %v2802_v54 = vshll.u32 %v2750_v29, 16  ;;  %v2806_v57 = vshrl.u32 %v2750_v29, 16  ;;  %v2812_v58 = vshll.u32 %v2751_v35, 16 }
  0xba   : > { %6136 = vmatmul.mubr.bf16.gmra.mxu1 %v5641_v49  ;;  %v1911_v46 = vor.u32 %v1909_v40, %v1908_v50  ;;  %v2816_v59 = vshrl.u32 %v2751_v35, 16  ;;  %v2795_v61 = vrot.slane %v2793_v52, 4  ;;  %v2798_v62 = vrot.slane %v2796_v53, 5  ;;  %v2758_v35 = vld [vmem:[#allocation2 + $0x2c] sm:$0x1]  ;;  %v6485_v50 = vld [vmem:[%s8016_s1 + $0x1b0] sm:$0xff]  }
  0xbb   : > { %6203 = vmatprep.mubr.bf16.mxu1 %v6478_v47  ;;  %v2804_v63 = vrot.slane %v2802_v54, 5  ;;  %v2822_v0 = vshll.u32 %v2752_v48, 16  ;;  %v2808_v3 = vrot.slane %v2806_v57, 4  ;;  %v2814_v4 = vrot.slane %v2812_v58, 5  ;;  %v6483_v47 = vld [vmem:[#allocation2 + $0x24] sm:$0xff]   ;;  %v6486_v54 = vld [vmem:[#allocation2 + $0x34] sm:$0xff]  }
  0xbc   : > { %v1912_v2 = vsel %vm6840_vm8, %v1904_v45, %v1911_v46  ;;  %v2818_v5 = vrot.slane %v2816_v59, 4  ;;  %v2799_v7 = vor.u32 %v2798_v62, %v2795_v61  ;;  %v2826_v11 = vshrl.u32 %v2752_v48, 16  ;;  %v2761_v59 = vld [vmem:[#allocation2 + $0x3c] sm:$0xf] }
  0xbd   : > { %v5689_v6 = vcombine.low %v1903_v51, %v1912_v2  ;;  %v2824_v9 = vrot.slane %v2822_v0, 5  ;;  %v2809_v15 = vor.u32 %v2808_v3, %v2804_v63  ;;  %v2832_v10 = vshll.u32 %v2753_v55, 16  ;;  %v2760_v55 = vld [vmem:[#allocation2 + $0x38] sm:$0xf]  ;;  %v2762_v0 = vld [vmem:[#allocation2 + $0x40] sm:$0xf] }
  0xbe   : > { %v2819_v16 = vor.u32 %v2818_v5, %v2814_v4  ;;  %v2837_v17 = vshrl.u32 %v2754_v56, 16  ;;  %v2800_v19 = vrot.slane %v2799_v7, 4  ;;  %v2828_v21 = vrot.slane %v2826_v11, 4  ;;  %v6492_v7 = vld [vmem:[%s8016_s1 + $0x160] sm:$0xff]  }
  0xbf   : > { %6184 = vmatmul.mubr.bf16.gmra.mxu0 %v5689_v6  ;;  %v2840_v22 = vshll.u32 %v2754_v56, 16  ;;  %v2846_v30 = vshll.u32 %v2755_v60, 16  ;;  %v2810_v23 = vrot.slane %v2809_v15, 4  ;;  %v2834_v25 = vrot.slane %v2832_v10, 5  ;;  %v2763_v6 = vld [vmem:[#allocation2 + $0x44] sm:$0x1] }
  0xc0   : > { %v2820_v24 = vrot.slane %v2819_v16, 4  ;;  %v2839_v26 = vrot.slane %v2837_v17, 4  ;;  %v2805_v1 = vsel %vm7037_vm11, %v2800_v19, %v2804_v63  ;;  %v2829_v27 = vor.u32 %v2828_v21, %v2824_v9  ;;  %v6489_v17 = vld [vmem:[%s8016_s1 + $0x1a8] sm:$0xff]  }
  0xc1   : > { %v2842_v28 = vrot.slane %v2840_v22, 5  ;;  %v2848_v29 = vrot.slane %v2846_v30, 5  ;;  %v2815_v31 = vsel %vm7037_vm11, %v2810_v23, %v2814_v4  ;;  %v2850_v33 = vshrl.u32 %v2755_v60, 16  ;;  %v2764_v22 = vld [vmem:[#allocation2 + $0x4c] sm:$0xf] }
  0xc2   : > { %6204 = vmatmul.mubr.bf16.vlgmr.msra.gmra.mxu1 %v6479_v8  ;;  %v2825_v20 = vsel %vm7037_vm11, %v2820_v24, %v2824_v9  ;;  %v2856_v34 = vshll.u32 %v2756_v13, 16  ;;  %v5754_v37 = vcombine.low %v2805_v1, %v2815_v31  ;;  %v2830_v39 = vrot.slane %v2829_v27, 4  ;;  %v6487_v24 = vld [vmem:[#allocation2 + $0x3c] sm:$0xff]  }
  0xc3   : > { %6284 = vmatpush3.bf16.msra.mxu1 %v6960_v32  ;;  %6207 = vmatprep.mubr.bf16.mxu1 %v6482_v12  ;;  %v2843_v40 = vor.u32 %v2842_v28, %v2839_v26  ;;  %v2860_v41 = vshrl.u32 %v2756_v13, 16  ;;  %v2852_v44 = vrot.slane %v2850_v33, 4  ;;  %v2866_v48 = vshll.u32 %v2757_v43, 16  ;;  %v6493_v26 = vld [vmem:[%s8016_s1 + $0x1a0] sm:$0xff]   ;;  %v6496_v1 = vld [vmem:[%s8016_s1 + $0x158] sm:$0xff]  }
  0xc4   : > { %v2858_v45 = vrot.slane %v2856_v34, 5  ;;  %v2870_v49 = vshrl.u32 %v2757_v43, 16  ;;  %6285 = vmatprep.subr.bf16.mxu1 %v6484_v18  ;;  %6251 = vmatprep.mubr.bf16.mxu0 %v5754_v37  ;;  %v2835_v51 = vsel %vm7037_vm11, %v2830_v39, %v2834_v25  ;;  %v2876_v53 = vshll.u32 %v2758_v35, 16  ;;  %v2765_v33 = vld [vmem:[#allocation2 + $0x50] sm:$0xf] }
  0xc5   : > { %v2844_v52 = vrot.slane %v2843_v40, 4  ;;  %v2862_v32 = vrot.slane %v2860_v41, 4  ;;  %v5755_v56 = vcombine.low %v2825_v20, %v2835_v51  ;;  %v2853_v46 = vor.u32 %v2852_v44, %v2848_v29  ;;  %v6490_v20 = vld [vmem:[#allocation2 + $0x4c] sm:$0xff]   ;;  %v2766_v37 = vld [vmem:[#allocation2 + $0x54] sm:$0xf] }
  0xc6   : > { %v2868_v57 = vrot.slane %v2866_v48, 5  ;;  %v2872_v58 = vrot.slane %v2870_v49, 4  ;;  %v2878_v62 = vrot.slane %v2876_v53, 5  ;;  %v2881_v63 = vshrl.u32 %v2759_v42, 16  ;;  %v6500_v40 = vld [vmem:[%s8016_s1 + $0x150] sm:$0xff]  }
  0xc7   : > { %v2849_v60 = vsel %vm7037_vm11, %v2844_v52, %v2848_v29  ;;  %v2863_v61 = vor.u32 %v2862_v32, %v2858_v45  ;;  %6286 = vmatpush3.bf16.msra.mxu1 %v6484_v18  ;;  %6252 = vmatmul.mubr.bf16.vlgmr.msra.gmra.mxu0 %v5755_v56  ;;  %v2854_v2 = vrot.slane %v2853_v46, 4  ;;  %v2884_v4 = vshll.u32 %v2759_v42, 16 }
  0xc8   : > { %v2873_v3 = vor.u32 %v2872_v58, %v2868_v57  ;;  %v2890_v5 = vshll.u32 %v2760_v55, 16  ;;  %6287 = vmatprep.subr.bf16.mxu1 %v6488_v36  ;;  %6332 = vmatpush3.bf16.msra.mxu0 %v6967_v38  ;;  %v2883_v9 = vrot.slane %v2881_v63, 4  ;;  %v2894_v11 = vshrl.u32 %v2760_v55, 16  ;;  %v6497_v58 = vld [vmem:[%s8016_s1 + $0x198] sm:$0xff]  }
  0xc9   : > { %v2864_v8 = vrot.slane %v2863_v61, 4  ;;  %v2900_v12 = vshll.u32 %v2761_v59, 16  ;;  %v2859_v13 = vsel %vm7037_vm11, %v2854_v2, %v2858_v45  ;;  %6333 = vmatprep.subr.bf16.mxu0 %v6485_v50  ;;  %v2886_v16 = vrot.slane %v2884_v4, 5  ;;  %v2768_v63 = vld [vmem:[#allocation2 + $0x5c] sm:$0x1] }
  0xca   : > { %6208 = vmatmul.mubr.bf16.gmra.mxu1 %v6483_v47  ;;  %v2874_v15 = vrot.slane %v2873_v3, 4  ;;  %v2892_v10 = vrot.slane %v2890_v5, 5  ;;  %v5756_v18 = vcombine.low %v2849_v60, %v2859_v13  ;;  %v2896_v19 = vrot.slane %v2894_v11, 4  ;;  %v2767_v47 = vld [vmem:[#allocation2 + $0x58] sm:$0xf]  ;;  %v6494_v13 = vld [vmem:[#allocation2 + $0x64] sm:$0xff]  }
  0xcb   : > { %v2869_v38 = vsel %vm7037_vm11, %v2864_v8, %v2868_v57  ;;  %6211 = vmatprep.mubr.bf16.mxu1 %v6486_v54  ;;  %v2902_v21 = vrot.slane %v2900_v12, 5  ;;  %6288 = vmatpush3.bf16.msra.mxu1 %v6488_v36  ;;  %v2887_v43 = vor.u32 %v2886_v16, %v2883_v9  ;;  %v2904_v23 = vshrl.u32 %v2761_v59, 16  ;;  %v6491_v3 = vld [vmem:[#allocation2 + $0x54] sm:$0xff]  }
  0xcc   : > { %v2879_v30 = vsel %vm7037_vm11, %v2874_v15, %v2878_v62  ;;  %v2910_v25 = vshll.u32 %v2762_v0, 16  ;;  %6289 = vmatprep.subr.bf16.mxu1 %v6492_v7  ;;  %6255 = vmatprep.mubr.bf16.mxu0 %v5756_v18  ;;  %v2897_v28 = vor.u32 %v2896_v19, %v2892_v10  ;;  %v2914_v29 = vshrl.u32 %v2762_v0, 16  ;;  %v2770_v15 = vld [vmem:[#allocation2 + $0x68] sm:$0xf] }
  0xcd   : > { %v5757_v27 = vcombine.low %v2869_v38, %v2879_v30  ;;  %6334 = vmatpush3.bf16.msra.mxu0 %v6485_v50  ;;  %v2920_v31 = vshll.u32 %v2763_v6, 16  ;;  %v2888_v34 = vrot.slane %v2887_v43, 4  ;;  %v2906_v35 = vrot.slane %v2904_v23, 4  ;;  %v2769_v6 = vld [vmem:[#allocation2 + $0x64] sm:$0xf]  ;;  %v6501_v38 = vld [vmem:[%s8016_s1 + $0x190] sm:$0xff]  }
  0xce   : > { %v2912_v36 = vrot.slane %v2910_v25, 5  ;;  %6335 = vmatprep.subr.bf16.mxu0 %v6489_v17  ;;  %v2925_v39 = vshrl.u32 %v2764_v22, 16  ;;  %v2898_v41 = vrot.slane %v2897_v28, 4  ;;  %v2916_v42 = vrot.slane %v2914_v29, 4  ;;  %v2771_v30 = vld [vmem:[#allocation2 + $0x6c] sm:$0xf] }
  0xcf   : > { %v2922_v44 = vrot.slane %v2920_v31, 5  ;;  %v2928_v45 = vshll.u32 %v2764_v22, 16  ;;  %6290 = vmatpush3.bf16.msra.mxu1 %v6492_v7  ;;  %6256 = vmatmul.mubr.bf16.gmra.mxu0 %v5757_v27  ;;  %v2893_v48 = vsel %vm7037_vm11, %v2888_v34, %v2892_v10  ;;  %v2907_v49 = vor.u32 %v2906_v35, %v2902_v21  ;;  %v6504_v7 = vld [vmem:[%s8016_s1 + $0x148] sm:$0xff]   ;;  %v2772_v23 = vld [vmem:[#allocation2 + $0x70] sm:$0xf]  ;;  %v6508_v27 = vld [vmem:[%s8016_s1 + $0x140] sm:$0xff]  }
  0xd0   : > { %v2927_v50 = vrot.slane %v2925_v39, 4  ;;  %v2934_v51 = vshll.u32 %v2765_v33, 16  ;;  %6291 = vmatprep.subr.bf16.mxu1 %v6496_v1  ;;  %v2903_v52 = vsel %vm7037_vm11, %v2898_v41, %v2902_v21  ;;  %v2917_v32 = vor.u32 %v2916_v42, %v2912_v36  ;;  %v2774_v39 = vld [vmem:[#allocation2 + $0x7c] sm:$0xf] }
  0xd1   : > { %6336 = vmatpush3.bf16.msra.mxu0 %v6489_v17  ;;  %v2930_v53 = vrot.slane %v2928_v45, 5  ;;  %v2938_v54 = vshrl.u32 %v2765_v33, 16  ;;  %v5758_v55 = vcombine.low %v2893_v48, %v2903_v52  ;;  %v2908_v56 = vrot.slane %v2907_v49, 4  ;;  %v2773_v33 = vld [vmem:[#allocation2 + $0x74] sm:$0x1] }
  0xd2   : > { %6212 = vmatmul.mubr.bf16.gmra.mxu1 %v6487_v24  ;;  %v2936_v46 = vrot.slane %v2934_v51, 5  ;;  %v2944_v57 = vshll.u32 %v2766_v37, 16  ;;  %6337 = vmatprep.subr.bf16.mxu0 %v6493_v26  ;;  %v2918_v59 = vrot.slane %v2917_v32, 4  ;;  %v2948_v62 = vshrl.u32 %v2766_v37, 16 }
  0xd3   : > { %6215 = vmatprep.mubr.bf16.mxu1 %v6490_v20  ;;  %v2931_v60 = vor.u32 %v2930_v53, %v2927_v50  ;;  %v2940_v61 = vrot.slane %v2938_v54, 4  ;;  %6292 = vmatpush3.bf16.msra.mxu1 %v6496_v1  ;;  %v2913_v0 = vsel %vm7037_vm11, %v2908_v56, %v2912_v36  ;;  %v2954_v4 = vshll.u32 %v2767_v47, 16  ;;  %v6495_v53 = vld [vmem:[#allocation2 + $0x6c] sm:$0xff]   ;;  %v6509_v56 = vld [vmem:[%s8016_s1 + $0x180] sm:$0xff]  }
  0xd4   : > { %6259 = vmatprep.mubr.bf16.mxu0 %v5758_v55  ;;  %v2946_v2 = vrot.slane %v2944_v57, 5  ;;  %v2958_v5 = vshrl.u32 %v2767_v47, 16  ;;  %6293 = vmatprep.subr.bf16.mxu1 %v6500_v40  ;;  %v2923_v8 = vsel %vm7037_vm11, %v2918_v59, %v2922_v44  ;;  %v2950_v12 = vrot.slane %v2948_v62, 4  ;;  %v2775_v55 = vld [vmem:[#allocation2 + $0x80] sm:$0xf] }
  0xd5   : > { %v2932_v9 = vrot.slane %v2931_v60, 4  ;;  %v2941_v11 = vor.u32 %v2940_v61, %v2936_v46  ;;  %6338 = vmatpush3.bf16.msra.mxu0 %v6493_v26  ;;  %v5759_v16 = vcombine.low %v2913_v0, %v2923_v8  ;;  %v2956_v10 = vrot.slane %v2954_v4, 5  ;;  %v2776_v60 = vld [vmem:[#allocation2 + $0x84] sm:$0xf] }
  0xd6   : > { %v2960_v17 = vrot.slane %v2958_v5, 4  ;;  %v2964_v18 = vshll.u32 %v2768_v63, 16  ;;  %6339 = vmatprep.subr.bf16.mxu0 %v6497_v58  ;;  %v2951_v22 = vor.u32 %v2950_v12, %v2946_v2  ;;  %v2969_v43 = vshrl.u32 %v2769_v6, 16  ;;  %v6498_v63 = vld [vmem:[#allocation2 + $0x7c] sm:$0xff]  }
  0xd7   : > { %v2937_v19 = vsel %vm7037_vm11, %v2932_v9, %v2936_v46  ;;  %v2942_v21 = vrot.slane %v2941_v11, 4  ;;  %6294 = vmatpush3.bf16.msra.mxu1 %v6500_v40  ;;  %6260 = vmatmul.mubr.bf16.gmra.mxu0 %v5759_v16  ;;  %v2972_v26 = vshll.u32 %v2769_v6, 16  ;;  %v2978_v1 = vshll.u32 %v2770_v15, 16  ;;  %v6505_v40 = vld [vmem:[%s8016_s1 + $0x188] sm:$0xff]  }
  0xd8   : > { %v2961_v24 = vor.u32 %v2960_v17, %v2956_v10  ;;  %v2966_v25 = vrot.slane %v2964_v18, 5  ;;  %6295 = vmatprep.subr.bf16.mxu1 %v6504_v7  ;;  %v2952_v29 = vrot.slane %v2951_v22, 4  ;;  %v2971_v31 = vrot.slane %v2969_v43, 4  ;;  %v2779_v18 = vld [vmem:[#allocation2 + $0x94] sm:$0xf] }
  0xd9   : > { %v2947_v28 = vsel %vm7037_vm11, %v2942_v21, %v2946_v2  ;;  %v2982_v20 = vshrl.u32 %v2770_v15, 16  ;;  %6340 = vmatpush3.bf16.msra.mxu0 %v6497_v58  ;;  %v2974_v36 = vrot.slane %v2972_v26, 5  ;;  %v2980_v37 = vrot.slane %v2978_v1, 5 }
  0xda   : > { %v5760_v34 = vcombine.low %v2937_v19, %v2947_v28  ;;  %6216 = vmatmul.mubr.bf16.gmra.mxu1 %v6491_v3  ;;  %v2962_v35 = vrot.slane %v2961_v24, 4  ;;  %6341 = vmatprep.subr.bf16.mxu0 %v6501_v38  ;;  %v2957_v41 = vsel %vm7037_vm11, %v2952_v29, %v2956_v10  ;;  %v2988_v44 = vshll.u32 %v2771_v30, 16  ;;  %v2780_v28 = vld [vmem:[#allocation2 + $0x98] sm:$0xf] }
  0xdb   : > { %6219 = vmatprep.mubr.bf16.mxu1 %v6494_v13  ;;  %v2984_v42 = vrot.slane %v2982_v20, 4  ;;  %v2992_v45 = vshrl.u32 %v2771_v30, 16  ;;  %6296 = vmatpush3.bf16.msra.mxu1 %v6504_v7  ;;  %v2975_v48 = vor.u32 %v2974_v36, %v2971_v31  ;;  %v2998_v49 = vshll.u32 %v2772_v23, 16  ;;  %v2777_v7 = vld [vmem:[#allocation2 + $0x88] sm:$0xf] }
  0xdc   : > { %6263 = vmatprep.mubr.bf16.mxu0 %v5760_v34  ;;  %v2967_v47 = vsel %vm7037_vm11, %v2962_v35, %v2966_v25  ;;  %v3002_v50 = vshrl.u32 %v2772_v23, 16  ;;  %6297 = vmatprep.subr.bf16.mxu1 %v6508_v27  ;;  %v2990_v32 = vrot.slane %v2988_v44, 5  ;;  %v3008_v59 = vshll.u32 %v2773_v33, 16  ;;  %v2778_v13 = vld [vmem:[#allocation2 + $0x8c] sm:$0x1]  ;;  %v6499_v31 = vld [vmem:[#allocation2 + $0x84] sm:$0xff]  }
  0xdd   : > { %v5761_v51 = vcombine.low %v2957_v41, %v2967_v47  ;;  %v2985_v52 = vor.u32 %v2984_v42, %v2980_v37  ;;  %v2994_v54 = vrot.slane %v2992_v45, 4  ;;  %6342 = vmatpush3.bf16.msra.mxu0 %v6501_v38  ;;  %v2976_v46 = vrot.slane %v2975_v48, 4 }
  0xde   : > { %v3000_v57 = vrot.slane %v2998_v49, 5  ;;  %v3004_v58 = vrot.slane %v3002_v50, 4  ;;  %6343 = vmatprep.subr.bf16.mxu0 %v6505_v40  ;;  %v3013_v0 = vshrl.u32 %v2774_v39, 16  ;;  %v3016_v2 = vshll.u32 %v2774_v39, 16  ;;  %v2781_v39 = vld [vmem:[#allocation2 + $0x9c] sm:$0xf] }
  0xdf   : > { %v2986_v61 = vrot.slane %v2985_v52, 4  ;;  %v2995_v62 = vor.u32 %v2994_v54, %v2990_v32  ;;  %6298 = vmatpush3.bf16.msra.mxu1 %v6508_v27  ;;  %6264 = vmatmul.mubr.bf16.gmra.mxu0 %v5761_v51  ;;  %v2981_v3 = vsel %vm7037_vm11, %v2976_v46, %v2980_v37  ;;  %v3010_v5 = vrot.slane %v3008_v59, 5  ;;  %v6502_v37 = vld [vmem:[#allocation2 + $0x94] sm:$0xff]   ;;  %v2782_v52 = vld [vmem:[#allocation2 + $0xa0] sm:$0xf] }
  0xe0   : > { %v3005_v4 = vor.u32 %v3004_v58, %v3000_v57  ;;  %v3022_v6 = vshll.u32 %v2775_v55, 16  ;;  %v3015_v11 = vrot.slane %v3013_v0, 4  ;;  %v3018_v12 = vrot.slane %v3016_v2, 5  ;;  %v2783_v59 = vld [vmem:[#allocation2 + $0xa4] sm:$0x1] }
  0xe1   : > { %v2991_v8 = vsel %vm7037_vm11, %v2986_v61, %v2990_v32  ;;  %v2996_v9 = vrot.slane %v2995_v62, 4  ;;  %6344 = vmatpush3.bf16.msra.mxu0 %v6505_v40  ;;  %v3026_v17 = vshrl.u32 %v2775_v55, 16  ;;  %v3032_v21 = vshll.u32 %v2776_v60, 16 }
  0xe2   : > { %v5762_v15 = vcombine.low %v2981_v3, %v2991_v8  ;;  %6220 = vmatmul.mubr.bf16.gmra.mxu1 %v6495_v53  ;;  %v3006_v16 = vrot.slane %v3005_v4, 4  ;;  %v3024_v10 = vrot.slane %v3022_v6, 5  ;;  %6345 = vmatprep.subr.bf16.mxu0 %v6509_v56  ;;  %v3019_v19 = vor.u32 %v3018_v12, %v3015_v11  ;;  %v2785_v6 = vld [vmem:[#allocation2 + $0xb0] sm:$0xf] }
  0xe3   : > { %v3001_v38 = vsel %vm7037_vm11, %v2996_v9, %v3000_v57  ;;  %6223 = vmatprep.mubr.bf16.mxu1 %v6498_v63  ;;  %v3036_v22 = vshrl.u32 %v2776_v60, 16  ;;  %v3028_v43 = vrot.slane %v3026_v17, 4  ;;  %v3042_v23 = vshll.u32 %v2777_v7, 16  ;;  %v2784_v60 = vld [vmem:[#allocation2 + $0xac] sm:$0xf] }
  0xe4   : > { %6267 = vmatprep.mubr.bf16.mxu0 %v5762_v15  ;;  %v3011_v30 = vsel %vm7037_vm11, %v3006_v16, %v3010_v5  ;;  %v3046_v24 = vshrl.u32 %v2777_v7, 16  ;;  %v3020_v26 = vrot.slane %v3019_v19, 4  ;;  %v3034_v1 = vrot.slane %v3032_v21, 5  ;;  %v6503_v7 = vld [vmem:[#allocation2 + $0x9c] sm:$0xff]   ;;  %v2786_v17 = vld [vmem:[#allocation2 + $0xb4] sm:$0xf] }
  0xe5   : > { %v5763_v25 = vcombine.low %v3001_v38, %v3011_v30  ;;  %v3038_v27 = vrot.slane %v3036_v22, 4  ;;  %6346 = vmatpush3.bf16.msra.mxu0 %v6509_v56  ;;  %v3029_v29 = vor.u32 %v3028_v43, %v3024_v10  ;;  %v3044_v20 = vrot.slane %v3042_v23, 5 }
  0xe6   : > { %v3048_v33 = vrot.slane %v3046_v24, 4  ;;  %v3052_v34 = vshll.u32 %v2778_v13, 16  ;;  %v3025_v35 = vsel %vm7037_vm11, %v3020_v26, %v3024_v10  ;;  %v3057_v40 = vshrl.u32 %v2779_v18, 16  ;;  %v6506_v10 = vld [vmem:[#allocation2 + $0xac] sm:$0xff]  }
  0xe7   : > { %v3039_v36 = vor.u32 %v3038_v27, %v3034_v1  ;;  %v3060_v41 = vshll.u32 %v2779_v18, 16  ;;  %6268 = vmatmul.mubr.bf16.gmra.mxu0 %v5763_v25  ;;  %v3030_v42 = vrot.slane %v3029_v29, 4  ;;  %v3066_v47 = vshll.u32 %v2780_v28, 16  ;;  %v2787_v25 = vld [vmem:[#allocation2 + $0xb8] sm:$0xf] }
  0xe8   : > { %v3049_v44 = vor.u32 %v3048_v33, %v3044_v20  ;;  %v3054_v45 = vrot.slane %v3052_v34, 5  ;;  %v3059_v49 = vrot.slane %v3057_v40, 4  ;;  %v3070_v51 = vshrl.u32 %v2780_v28, 16  ;;  %v2788_v34 = vld [vmem:[#allocation2 + $0xbc] sm:$0x1] }
  0xe9   : > { %v3040_v48 = vrot.slane %v3039_v36, 4  ;;  %v3062_v50 = vrot.slane %v3060_v41, 5  ;;  %v3035_v32 = vsel %vm7037_vm11, %v3030_v42, %v3034_v1  ;;  %v3068_v54 = vrot.slane %v3066_v47, 5  ;;  %v3531_v47 = vld [vmem:[#allocation2 + $0x8] sm:$0xf] }
  0xea   : > { %6224 = vmatmul.mubr.bf16.gmra.mxu1 %v6499_v31  ;;  %v3050_v53 = vrot.slane %v3049_v44, 4  ;;  %v3076_v55 = vshll.u32 %v2781_v39, 16  ;;  %v5764_v56 = vcombine.low %v3025_v35, %v3035_v32  ;;  %v3072_v58 = vrot.slane %v3070_v51, 4  ;;  %v3532_v32 = vld [vmem:[#allocation2 + $0xc] sm:$0xf] }
  0xeb   : > { %v3045_v46 = vsel %vm7037_vm11, %v3040_v48, %v3044_v20  ;;  %6227 = vmatprep.mubr.bf16.mxu1 %v6502_v37  ;;  %v3063_v57 = vor.u32 %v3062_v50, %v3059_v49  ;;  %v3080_v63 = vshrl.u32 %v2781_v39, 16  ;;  %v3086_v0 = vshll.u32 %v2782_v52, 16  ;;  %v6507_v49 = vld [vmem:[#allocation2 + $0xb4] sm:$0xff]  }
  0xec   : > { %v3055_v61 = vsel %vm7037_vm11, %v3050_v53, %v3054_v45  ;;  %v3078_v62 = vrot.slane %v3076_v55, 5  ;;  %6271 = vmatprep.mubr.bf16.mxu0 %v5764_v56  ;;  %v3073_v4 = vor.u32 %v3072_v58, %v3068_v54  ;;  %v3090_v5 = vshrl.u32 %v2782_v52, 16  ;;  %v3530_v45 = vld [vmem:[#allocation2 + $0x4] sm:$0xe] }
  0xed   : > { %v5765_v2 = vcombine.low %v3045_v46, %v3055_v61  ;;  %v3064_v3 = vrot.slane %v3063_v57, 4  ;;  %v3082_v8 = vrot.slane %v3080_v63, 4  ;;  %v3088_v9 = vrot.slane %v3086_v0, 5  ;;  %v4103_v56 = vld [vmem:[#allocation2 + $0x4] sm:$0xe] }
  0xee   : > { %v3096_v11 = vshll.u32 %v2783_v59, 16  ;;  %v3101_v12 = vshrl.u32 %v2784_v60, 16  ;;  %v3074_v15 = vrot.slane %v3073_v4, 4  ;;  %v3092_v16 = vrot.slane %v3090_v5, 4  ;;  %v4104_v59 = vld [vmem:[#allocation2 + $0x8] sm:$0xf] }
  0xef   : > { %v3069_v13 = vsel %vm7037_vm11, %v3064_v3, %v3068_v54  ;;  %v3104_v18 = vshll.u32 %v2784_v60, 16  ;;  %6272 = vmatmul.mubr.bf16.gmra.mxu0 %v5765_v2  ;;  %v3083_v38 = vor.u32 %v3082_v8, %v3078_v62  ;;  %v3110_v22 = vshll.u32 %v2785_v6, 16  ;;  %v4105_v2 = vld [vmem:[#allocation2 + $0xc] sm:$0xf] }
  0xf0   : > { %v3098_v19 = vrot.slane %v3096_v11, 5  ;;  %v3103_v21 = vrot.slane %v3101_v12, 4  ;;  %v3079_v30 = vsel %vm7037_vm11, %v3074_v15, %v3078_v62  ;;  %v3093_v43 = vor.u32 %v3092_v16, %v3088_v9  ;;  %v3533_v16 = vld [vmem:[#allocation2 + $0x10] sm:$0xf] }
  0xf1   : > { %v3106_v23 = vrot.slane %v3104_v18, 5  ;;  %v3114_v24 = vshrl.u32 %v2785_v6, 16  ;;  %v5766_v26 = vcombine.low %v3069_v13, %v3079_v30  ;;  %v3084_v1 = vrot.slane %v3083_v38, 4 }
  0xf2   : > { %6228 = vmatmul.mubr.bf16.gmra.mxu1 %v6503_v7  ;;  %v3112_v27 = vrot.slane %v3110_v22, 5  ;;  %v3120_v28 = vshll.u32 %v2786_v17, 16  ;;  %v3094_v29 = vrot.slane %v3093_v43, 4  ;;  %v3124_v33 = vshrl.u32 %v2786_v17, 16 }
  0xf3   : > { %6231 = vmatprep.mubr.bf16.mxu1 %v6506_v10  ;;  %v3107_v31 = vor.u32 %v3106_v23, %v3103_v21  ;;  %v3116_v20 = vrot.slane %v3114_v24, 4  ;;  %6275 = vmatprep.mubr.bf16.mxu0 %v5766_v26  ;;  %v3089_v35 = vsel %vm7037_vm11, %v3084_v1, %v3088_v9  ;;  %v3130_v37 = vshll.u32 %v2787_v25, 16  ;;  %v4106_v21 = vld [vmem:[#allocation2 + $0x10] sm:$0xf] }
  0xf4   : > { %v3122_v36 = vrot.slane %v3120_v28, 5  ;;  %v3134_v39 = vshrl.u32 %v2787_v25, 16  ;;  %v3099_v40 = vsel %vm7037_vm11, %v3094_v29, %v3098_v19  ;;  %v3126_v44 = vrot.slane %v3124_v33, 4  ;;  %v3534_v19 = vld [vmem:[#allocation2 + $0x14] sm:$0x1] }
  0xf5   : > { %v3108_v41 = vrot.slane %v3107_v31, 4  ;;  %v3117_v42 = vor.u32 %v3116_v20, %v3112_v27  ;;  %v5767_v48 = vcombine.low %v3089_v35, %v3099_v40  ;;  %v3132_v50 = vrot.slane %v3130_v37, 5  ;;  %v7149_v5 = vpop.f32.mrf.mxu0  ;;  %v4107_v28 = vld [vmem:[#allocation2 + $0x14] sm:$0x3] }
  0xf6   : > { %v3136_v51 = vrot.slane %v3134_v39, 4  ;;  %v3140_v52 = vshll.u32 %v2788_v34, 16  ;;  %v3127_v55 = vor.u32 %v3126_v44, %v3122_v36  ;;  %v5778_v58 = vrot.slane %v3530_v45, 9 }
  0xf7   : > { %v3113_v53 = vsel %vm7037_vm11, %v3108_v41, %v3112_v27  ;;  %v3118_v54 = vrot.slane %v3117_v42, 4  ;;  %6276 = vmatmul.mubr.bf16.gmra.mxu0 %v5767_v48  ;;  %v3615_v63 = vrot.slane %v3531_v47, 5  ;;  %v3618_v0 = vrot.slane %v3532_v32, 5  ;;  %v7161_v14 = vpop.f32.mrf.mxu0  ;;  %v3535_v47 = vld [vmem:[#allocation2 + $0x1c] sm:$0xe] }
  0xf8   : > { %v3137_v46 = vor.u32 %v3136_v51, %v3132_v50  ;;  %v3142_v57 = vrot.slane %v3140_v52, 5  ;;  %v3128_v61 = vrot.slane %v3127_v55, 4  ;;  %v4147_v12 = vshrl.u32 %v4103_v56, 16  ;;  %v3536_v32 = vld [vmem:[#allocation2 + $0x20] sm:$0xf] }
  0xf9   : > { %v3123_v60 = vsel %vm7037_vm11, %v3118_v54, %v3122_v36  ;;  %v3616_v7 = vsel %vm7145_vm14, %v5778_v58, %v3615_v63  ;;  %v3617_v8 = vrot.slane %v3615_v63, 4  ;;  %v3620_v9 = vrot.slane %v3618_v0, 4  ;;  %v7173_v48 = vpop.f32.mrf.mxu0  ;;  %v4109_v63 = vld [vmem:[#allocation2 + $0x20] sm:$0xf] }
  0xfa   : > { %v5768_v3 = vcombine.low %v3113_v53, %v3123_v60  ;;  %6232 = vmatmul.mubr.bf16.gmra.mxu1 %v6507_v49  ;;  %v3138_v4 = vrot.slane %v3137_v46, 4  ;;  %v3133_v6 = vsel %vm7037_vm11, %v3128_v61, %v3132_v50  ;;  %v4150_v13 = vshll.u32 %v4103_v56, 16  ;;  %v7159_v22 = vpop.f32.mrf.mxu1  ;;  %v3537_v53 = vld [vmem:[#allocation2 + $0x24] sm:$0xf] }
  0xfb   : > { %v4156_v15 = vshrl.u32 %v4104_v59, 16  ;;  %v3619_v17 = vsel %vm7145_vm14, %v3617_v8, %v3618_v0  ;;  %v4159_v18 = vshll.u32 %v4104_v59, 16  ;;  %v4166_v38 = vshrl.u32 %v4105_v2, 16  ;;  %8030 = vst [vmem:[#allocation7_spill] sm:$0xff] %v7159_v22  ;;  %v7183_v8 = vpop.f32.mrf.mxu0  ;;  %v3565_v22 = vld [vmem:[#allocation2 + $0xac] sm:$0xe] }
  0xfc   : > { %6279 = vmatprep.mubr.bf16.mxu0 %v5768_v3  ;;  %v3143_v11 = vsel %vm7037_vm11, %v3138_v4, %v3142_v57  ;;  %v5802_v30 = vcombine.low %v3616_v7, %v3619_v17  ;;  %v4149_v43 = vrot.slane %v4147_v12, 5  ;;  %v4152_v23 = vrot.slane %v4150_v13, 6  ;;  %v7171_v40 = vpop.f32.mrf.mxu1  ;;  %v4108_v57 = vld [vmem:[#allocation2 + $0x1c] sm:$0xe]  ;;  %v4110_v7 = vld [vmem:[#allocation2 + $0x24] sm:$0xf] }
  0xfd   : > { %v5769_v10 = vcombine.low %v3133_v6, %v3143_v11  ;;  %v4158_v24 = vrot.slane %v4156_v15, 5  ;;  %v4161_v25 = vrot.slane %v4159_v18, 6  ;;  %v4168_v26 = vrot.slane %v4166_v38, 5  ;;  %8033 = vst [vmem:[#allocation8_spill] sm:$0xff] %v7171_v40  ;;  %v3538_v18 = vld [vmem:[#allocation2 + $0x28] sm:$0xf] }
  0xfe   : > { %v4169_v1 = vshll.u32 %v4105_v2, 16  ;;  %v3621_v27 = vrot.slane %v3533_v16, 5  ;;  %6299 = vmatprep.mubr.bf16.mxu1 %v5802_v30  ;;  %v4153_v29 = vor.u32 %v4152_v23, %v4149_v43  ;;  %v3624_v31 = vrot.slane %v3534_v19, 5  ;;  %v7181_v0 = vpop.f32.mrf.mxu1  ;;  %v3539_v43 = vld [vmem:[#allocation2 + $0x2c] sm:$0x1] }
  0xff   : > { %6280 = vmatmul.mubr.bf16.gmra.mxu0 %v5769_v10  ;;  %v4176_v20 = vshrl.u32 %v4106_v21, 16  ;;  %v4179_v33 = vshll.u32 %v4106_v21, 16  ;;  %v4162_v35 = vor.u32 %v4161_v25, %v4158_v24  ;;  %v4186_v45 = vshrl.u32 %v4107_v28, 16  ;;  %8034 = vst [vmem:[#allocation9_spill] sm:$0xff] %v7181_v0 }
 0x100   : > { %v4171_v36 = vrot.slane %v4169_v1, 6  ;;  %v3622_v37 = vsel %vm7145_vm14, %v3620_v9, %v3621_v27  ;;  %v3623_v39 = vrot.slane %v3621_v27, 4  ;;  %v4154_v41 = vrot.slane %v4153_v29, 4  ;;  %v7191_v23 = vpop.f32.mrf.mxu1  ;;  %v4111_v27 = vld [vmem:[#allocation2 + $0x28] sm:$0xf] }
 0x101   : > { %v4178_v42 = vrot.slane %v4176_v20, 5  ;;  %v4181_v44 = vrot.slane %v4179_v33, 6  ;;  %v4164_v49 = vrot.slane %v4162_v35, 4  ;;  %v4189_v52 = vshll.u32 %v4107_v28, 16  ;;  %8035 = vst [vmem:[#allocation10_spill] sm:$0xff] %v7191_v23 }
 0x102   : > { %v4172_v50 = vor.u32 %v4171_v36, %v4168_v26  ;;  %v3625_v51 = vsel %vm7145_vm14, %v3623_v39, %v3624_v31  ;;  %v4163_v54 = vsel %vm7165_vm1, %v4154_v41, %v4162_v35  ;;  %v4188_v46 = vrot.slane %v4186_v45, 5  ;;  %v4112_v35 = vld [vmem:[#allocation2 + $0x2c] sm:$0x3] }
 0x103   : > { %v5803_v55 = vcombine.low %v3622_v37, %v3625_v51  ;;  %v4182_v56 = vor.u32 %v4181_v44, %v4178_v42  ;;  %v4191_v60 = vrot.slane %v4189_v52, 6  ;;  %v5779_v61 = vrot.slane %v3535_v47, 9 }
 0x104   : > { %v4173_v58 = vsel %vm7165_vm1, %v4164_v49, %v4172_v50  ;;  %v4174_v59 = vrot.slane %v4172_v50, 4  ;;  %v3628_v4 = vrot.slane %v3536_v32, 5  ;;  %v3631_v6 = vrot.slane %v3537_v53, 5  ;;  %v3540_v49 = vld [vmem:[#allocation2 + $0x34] sm:$0xe] }
 0x105   : > { %v5842_v2 = vcombine.low %v4163_v54, %v4173_v58  ;;  %6300 = vmatmul.mubr.bf16.vlgmr.msra.gmra.mxu1 %v5803_v55  ;;  %v4184_v3 = vrot.slane %v4182_v56, 4  ;;  %v4192_v11 = vor.u32 %v4191_v60, %v4188_v46  ;;  %v4195_v12 = vshrl.u32 %v4108_v57, 16  ;;  %v3541_v58 = vld [vmem:[#allocation2 + $0x38] sm:$0xf] }
 0x106   : > { %v4183_v9 = vsel %vm7165_vm1, %v4174_v59, %v4182_v56  ;;  %v4198_v13 = vshll.u32 %v4108_v57, 16  ;;  %v3629_v15 = vsel %vm7145_vm14, %v5779_v61, %v3628_v4  ;;  %v3630_v16 = vrot.slane %v3628_v4, 4  ;;  %v3542_v59 = vld [vmem:[#allocation2 + $0x3c] sm:$0xf] }
 0x107   : > { %6347 = vmatprep.mubr.bf16.mxu0 %v5842_v2  ;;  %v4204_v10 = vshrl.u32 %v4109_v63, 16  ;;  %v4207_v17 = vshll.u32 %v4109_v63, 16  ;;  %v4193_v38 = vsel %vm7165_vm1, %v4184_v3, %v4192_v11  ;;  %v4197_v19 = vrot.slane %v4195_v12, 5  ;;  %v7195_v28 = vpop.f32.mrf.mxu0  ;;  %v4113_v3 = vld [vmem:[#allocation2 + $0x34] sm:$0xe] }
 0x108   : > { %v4200_v21 = vrot.slane %v4198_v13, 6  ;;  %v4214_v30 = vshrl.u32 %v4110_v7, 16  ;;  %v5843_v24 = vcombine.low %v4183_v9, %v4193_v38  ;;  %v3632_v25 = vsel %vm7145_vm14, %v3630_v16, %v3631_v6  ;;  %v4114_v11 = vld [vmem:[#allocation2 + $0x38] sm:$0xf] }
 0x109   : > { %v4206_v26 = vrot.slane %v4204_v10, 5  ;;  %v4209_v1 = vrot.slane %v4207_v17, 6  ;;  %v5804_v29 = vcombine.low %v3629_v15, %v3632_v25  ;;  %v4217_v33 = vshll.u32 %v4110_v7, 16  ;;  %v7197_v50 = vpop.f32.mrf.mxu1  ;;  %v7201_v54 = vpop.f32.mrf.mxu0  ;;  %v4115_v17 = vld [vmem:[#allocation2 + $0x3c] sm:$0xf] }
 0x10a   : > { %v4201_v31 = vor.u32 %v4200_v21, %v4197_v19  ;;  %v4216_v20 = vrot.slane %v4214_v30, 5  ;;  %6348 = vmatmul.mubr.bf16.vlgmr.msra.gmra.mxu0 %v5843_v24  ;;  %v3633_v37 = vrot.slane %v3631_v6, 4  ;;  %v3634_v39 = vrot.slane %v3538_v18, 5  ;;  %8036 = vst [vmem:[#allocation11_spill] sm:$0xff] %v7197_v50 }
 0x10b   : > { %v4210_v36 = vor.u32 %v4209_v1, %v4206_v26  ;;  %v3637_v41 = vrot.slane %v3539_v43, 5  ;;  %6303 = vmatprep.mubr.bf16.mxu1 %v5804_v29  ;;  %v4219_v44 = vrot.slane %v4217_v33, 6  ;;  %v4224_v45 = vshrl.u32 %v4111_v27, 16  ;;  %v7209_v12 = vpop.f32.mrf.mxu1  ;;  %v7211_v18 = vpop.f32.mrf.mxu0 }
 0x10c   : > { %v4202_v42 = vrot.slane %v4201_v31, 4  ;;  %v4227_v47 = vshll.u32 %v4111_v27, 16  ;;  %v3635_v52 = vsel %vm7145_vm14, %v3633_v37, %v3634_v39  ;;  %v3636_v32 = vrot.slane %v3634_v39, 4  ;;  %8037 = vst [vmem:[#allocation12_spill] sm:$0xff] %v7209_v12 }
 0x10d   : > { %v4212_v51 = vrot.slane %v4210_v36, 4  ;;  %v4234_v53 = vshrl.u32 %v4112_v35, 16  ;;  %v4220_v56 = vor.u32 %v4219_v44, %v4216_v20  ;;  %v4226_v46 = vrot.slane %v4224_v45, 5  ;;  %v3543_v20 = vld [vmem:[#allocation2 + $0x40] sm:$0xf]  ;;  %v7217_v33 = vpop.f32.mrf.mxu1  ;;  %v7223_v44 = vpop.f32.mrf.mxu0 }
 0x10e   : > { %v4211_v55 = vsel %vm7165_vm1, %v4202_v42, %v4210_v36  ;;  %v4229_v57 = vrot.slane %v4227_v47, 6  ;;  %v3638_v60 = vsel %vm7145_vm14, %v3636_v32, %v3637_v41  ;;  %v4237_v63 = vshll.u32 %v4112_v35, 16  ;;  %8038 = vst [vmem:[#allocation13_spill] sm:$0xff] %v7217_v33  ;;  %v3544_v41 = vld [vmem:[#allocation2 + $0x44] sm:$0x1] }
 0x10f   : > { %v4236_v61 = vrot.slane %v4234_v53, 5  ;;  %v5780_v2 = vrot.slane %v3540_v49, 9  ;;  %v4221_v4 = vsel %vm7165_vm1, %v4212_v51, %v4220_v56  ;;  %v5805_v6 = vcombine.low %v3635_v52, %v3638_v60  ;;  %v4116_v42 = vld [vmem:[#allocation2 + $0x40] sm:$0xf]  ;;  %v3545_v60 = vld [vmem:[#allocation2 + $0x4c] sm:$0xe] }
 0x110   : > { %v4222_v7 = vrot.slane %v4220_v56, 4  ;;  %v4230_v9 = vor.u32 %v4229_v57, %v4226_v46  ;;  %v5844_v13 = vcombine.low %v4211_v55, %v4221_v4  ;;  %v4239_v15 = vrot.slane %v4237_v63, 6  ;;  %v4117_v56 = vld [vmem:[#allocation2 + $0x44] sm:$0x3]  ;;  %v4135_v33 = vld [vmem:[#allocation2 + $0x9c] sm:$0xf] }
 0x111   : > { %v3641_v16 = vrot.slane %v3541_v58, 5  ;;  %v3644_v10 = vrot.slane %v3542_v59, 5  ;;  %6304 = vmatmul.mubr.bf16.gmra.mxu1 %v5805_v6  ;;  %v4243_v21 = vshrl.u32 %v4113_v3, 16  ;;  %v4246_v30 = vshll.u32 %v4113_v3, 16  ;;  %v3546_v6 = vld [vmem:[#allocation2 + $0x50] sm:$0xf] }
 0x112   : > { %v4231_v38 = vsel %vm7165_vm1, %v4222_v7, %v4230_v9  ;;  %v4232_v19 = vrot.slane %v4230_v9, 4  ;;  %6351 = vmatprep.mubr.bf16.mxu0 %v5844_v13  ;;  %v4240_v43 = vor.u32 %v4239_v15, %v4236_v61  ;;  %v4252_v26 = vshrl.u32 %v4114_v11, 16  ;;  %v7225_v61 = vpop.f32.mrf.mxu1  ;;  %v3547_v7 = vld [vmem:[#allocation2 + $0x54] sm:$0xf] }
 0x113   : > { %v3642_v24 = vsel %vm7145_vm14, %v5780_v2, %v3641_v16  ;;  %v3643_v25 = vrot.slane %v3641_v16, 4  ;;  %v4245_v1 = vrot.slane %v4243_v21, 5  ;;  %v4248_v27 = vrot.slane %v4246_v30, 6  ;;  %8039 = vst [vmem:[#allocation14_spill] sm:$0xff] %v7225_v61  ;;  %v4119_v30 = vld [vmem:[#allocation2 + $0x50] sm:$0xf] }
 0x114   : > { %v4255_v29 = vshll.u32 %v4114_v11, 16  ;;  %v4262_v31 = vshrl.u32 %v4115_v17, 16  ;;  %v4241_v35 = vsel %vm7165_vm1, %v4232_v19, %v4240_v43  ;;  %v4254_v37 = vrot.slane %v4252_v26, 5 }
 0x115   : > { %v3645_v36 = vsel %vm7145_vm14, %v3643_v25, %v3644_v10  ;;  %v4265_v39 = vshll.u32 %v4115_v17, 16  ;;  %v5845_v45 = vcombine.low %v4231_v38, %v4241_v35  ;;  %v4249_v49 = vor.u32 %v4248_v27, %v4245_v1 }
 0x116   : > { %v5806_v47 = vcombine.low %v3642_v24, %v3645_v36  ;;  %v4257_v51 = vrot.slane %v4255_v29, 6  ;;  %v4264_v52 = vrot.slane %v4262_v31, 5  ;;  %v3646_v53 = vrot.slane %v3644_v10, 4  ;;  %v4118_v10 = vld [vmem:[#allocation2 + $0x4c] sm:$0xe] }
 0x117   : > { %v4267_v32 = vrot.slane %v4265_v39, 6  ;;  %v3647_v55 = vrot.slane %v3543_v20, 5  ;;  %6352 = vmatmul.mubr.bf16.gmra.mxu0 %v5845_v45  ;;  %v4250_v46 = vrot.slane %v4249_v49, 4  ;;  %v3650_v58 = vrot.slane %v3544_v41, 5 }
 0x118   : > { %6307 = vmatprep.mubr.bf16.mxu1 %v5806_v47  ;;  %v4258_v57 = vor.u32 %v4257_v51, %v4254_v37  ;;  %v4272_v59 = vshrl.u32 %v4116_v42, 16  ;;  %v4275_v4 = vshll.u32 %v4116_v42, 16  ;;  %v7229_v9 = vpop.f32.mrf.mxu0  ;;  %v4282_v16 = vshrl.u32 %v4117_v56, 16  ;;  %v4120_v37 = vld [vmem:[#allocation2 + $0x54] sm:$0xf] }
 0x119   : > { %v4268_v63 = vor.u32 %v4267_v32, %v4264_v52  ;;  %v3648_v2 = vsel %vm7145_vm14, %v3646_v53, %v3647_v55  ;;  %v3649_v3 = vrot.slane %v3647_v55, 4  ;;  %v4285_v21 = vshll.u32 %v4117_v56, 16  ;;  %v3548_v52 = vld [vmem:[#allocation2 + $0x58] sm:$0xf] }
 0x11a   : > { %v4259_v11 = vsel %vm7165_vm1, %v4250_v46, %v4258_v57  ;;  %v4260_v13 = vrot.slane %v4258_v57, 4  ;;  %v4274_v15 = vrot.slane %v4272_v59, 5  ;;  %v4277_v19 = vrot.slane %v4275_v4, 6  ;;  %v7239_v35 = vpop.f32.mrf.mxu0  ;;  %v3549_v46 = vld [vmem:[#allocation2 + $0x5c] sm:$0x1] }
 0x11b   : > { %v3651_v17 = vsel %vm7145_vm14, %v3649_v3, %v3650_v58  ;;  %v4270_v38 = vrot.slane %v4268_v63, 4  ;;  %v4284_v25 = vrot.slane %v4282_v16, 5  ;;  %v5781_v26 = vrot.slane %v3545_v60, 9  ;;  %v7237_v1 = vpop.f32.mrf.mxu1 }
 0x11c   : > { %v4269_v43 = vsel %vm7165_vm1, %v4260_v13, %v4268_v63  ;;  %v5807_v24 = vcombine.low %v3648_v2, %v3651_v17  ;;  %8040 = vst [vmem:[#allocation15_spill] sm:$0xff] %v7237_v1  ;;  %v4278_v29 = vor.u32 %v4277_v19, %v4274_v15  ;;  %v4287_v31 = vrot.slane %v4285_v21, 6  ;;  %v4121_v2 = vld [vmem:[#allocation2 + $0x58] sm:$0xf]  ;;  %v7249_v3 = vpop.f32.mrf.mxu0  ;;  %v4122_v13 = vld [vmem:[#allocation2 + $0x5c] sm:$0x3] }
 0x11d   : > { %v5846_v27 = vcombine.low %v4259_v11, %v4269_v43  ;;  %v3654_v20 = vrot.slane %v3546_v6, 5  ;;  %v3657_v36 = vrot.slane %v3547_v7, 5  ;;  %v4291_v39 = vshrl.u32 %v4118_v10, 16  ;;  %v7245_v57 = vpop.f32.mrf.mxu1 }
 0x11e   : > { %6308 = vmatmul.mubr.bf16.gmra.mxu1 %v5807_v24  ;;  %v4294_v41 = vshll.u32 %v4118_v10, 16  ;;  %v4300_v42 = vshrl.u32 %v4119_v30, 16  ;;  %v4279_v45 = vsel %vm7165_vm1, %v4270_v38, %v4278_v29  ;;  %v4280_v47 = vrot.slane %v4278_v29, 4  ;;  %8041 = vst [vmem:[#allocation16_spill] sm:$0xff] %v7245_v57  ;;  %v3550_v29 = vld [vmem:[#allocation2 + $0x64] sm:$0xe] }
 0x11f   : > { %6355 = vmatprep.mubr.bf16.mxu0 %v5846_v27  ;;  %v4288_v49 = vor.u32 %v4287_v31, %v4284_v25  ;;  %v3655_v51 = vsel %vm7145_vm14, %v5781_v26, %v3654_v20  ;;  %v3656_v32 = vrot.slane %v3654_v20, 4  ;;  %v4293_v53 = vrot.slane %v4291_v39, 5  ;;  %v7253_v43 = vpop.f32.mrf.mxu1  ;;  %v3551_v31 = vld [vmem:[#allocation2 + $0x68] sm:$0xf]  ;;  %v7255_v20 = vpop.f32.mrf.mxu0 }
 0x120   : > { %v4296_v55 = vrot.slane %v4294_v41, 6  ;;  %v4302_v56 = vrot.slane %v4300_v42, 5  ;;  %v4303_v59 = vshll.u32 %v4119_v30, 16  ;;  %v4310_v60 = vshrl.u32 %v4120_v37, 16  ;;  %8042 = vst [vmem:[#allocation17_spill] sm:$0xff] %v7253_v43 }
 0x121   : > { %v4289_v58 = vsel %vm7165_vm1, %v4280_v47, %v4288_v49  ;;  %v4313_v63 = vshll.u32 %v4120_v37, 16  ;;  %v3658_v6 = vsel %vm7145_vm14, %v3656_v32, %v3657_v36  ;;  %v3659_v11 = vrot.slane %v3657_v36, 4  ;;  %v3552_v42 = vld [vmem:[#allocation2 + $0x6c] sm:$0xf] }
 0x122   : > { %v5847_v4 = vcombine.low %v4279_v45, %v4289_v58  ;;  %v4297_v7 = vor.u32 %v4296_v55, %v4293_v53  ;;  %v5808_v15 = vcombine.low %v3655_v51, %v3658_v6  ;;  %v4305_v16 = vrot.slane %v4303_v59, 6 }
 0x123   : > { %v4312_v10 = vrot.slane %v4310_v60, 5  ;;  %v4315_v17 = vrot.slane %v4313_v63, 6  ;;  %v3660_v19 = vrot.slane %v3548_v52, 5  ;;  %v3663_v21 = vrot.slane %v3549_v46, 5  ;;  %v4123_v52 = vld [vmem:[#allocation2 + $0x64] sm:$0xe]  ;;  %v7263_v46 = vpop.f32.mrf.mxu1 }
 0x124   : > { %6356 = vmatmul.mubr.bf16.gmra.mxu0 %v5847_v4  ;;  %v4298_v38 = vrot.slane %v4297_v7, 4  ;;  %v4320_v30 = vshrl.u32 %v4121_v2, 16  ;;  %6311 = vmatprep.mubr.bf16.mxu1 %v5808_v15  ;;  %v4306_v24 = vor.u32 %v4305_v16, %v4302_v56  ;;  %v4323_v26 = vshll.u32 %v4121_v2, 16  ;;  %8043 = vst [vmem:[#allocation18_spill] sm:$0xff] %v7263_v46  ;;  %v4124_v2 = vld [vmem:[#allocation2 + $0x68] sm:$0xf] }
 0x125   : > { %v4316_v25 = vor.u32 %v4315_v17, %v4312_v10  ;;  %v4330_v27 = vshrl.u32 %v4122_v13, 16  ;;  %v3661_v36 = vsel %vm7145_vm14, %v3659_v11, %v3660_v19  ;;  %v3662_v37 = vrot.slane %v3660_v19, 4 }
 0x126   : > { %v4322_v39 = vrot.slane %v4320_v30, 5  ;;  %v4333_v41 = vshll.u32 %v4122_v13, 16  ;;  %v4307_v45 = vsel %vm7165_vm1, %v4298_v38, %v4306_v24  ;;  %v4308_v47 = vrot.slane %v4306_v24, 4  ;;  %v4125_v13 = vld [vmem:[#allocation2 + $0x6c] sm:$0xf] }
 0x127   : > { %v4318_v49 = vrot.slane %v4316_v25, 4  ;;  %v4325_v51 = vrot.slane %v4323_v26, 6  ;;  %v3664_v32 = vsel %vm7145_vm14, %v3662_v37, %v3663_v21  ;;  %v4332_v53 = vrot.slane %v4330_v27, 5  ;;  %v3553_v26 = vld [vmem:[#allocation2 + $0x70] sm:$0xf] }
 0x128   : > { %v4335_v55 = vrot.slane %v4333_v41, 6  ;;  %v5782_v56 = vrot.slane %v3550_v29, 9  ;;  %v4317_v58 = vsel %vm7165_vm1, %v4308_v47, %v4316_v25  ;;  %v5809_v59 = vcombine.low %v3661_v36, %v3664_v32  ;;  %v4126_v41 = vld [vmem:[#allocation2 + $0x70] sm:$0xf] }
 0x129   : > { %v4326_v60 = vor.u32 %v4325_v51, %v4322_v39  ;;  %v3667_v63 = vrot.slane %v3551_v31, 5  ;;  %v5848_v6 = vcombine.low %v4307_v45, %v4317_v58  ;;  %v3670_v11 = vrot.slane %v3552_v42, 5  ;;  %v3554_v39 = vld [vmem:[#allocation2 + $0x74] sm:$0x1] }
 0x12a   : > { %v7267_v4 = vpop.f32.mrf.mxu0  ;;  %v4336_v7 = vor.u32 %v4335_v55, %v4332_v53  ;;  %v4339_v15 = vshrl.u32 %v4123_v52, 16  ;;  %6312 = vmatmul.mubr.bf16.gmra.mxu1 %v5809_v59  ;;  %v4342_v30 = vshll.u32 %v4123_v52, 16  ;;  %v4348_v24 = vshrl.u32 %v4124_v2, 16  ;;  %v4127_v52 = vld [vmem:[#allocation2 + $0x74] sm:$0x3] }
 0x12b   : > { %8044 = vst [vmem:[#allocation19_spill] sm:$0xff] %v7267_v4  ;;  %v4327_v16 = vsel %vm7165_vm1, %v4318_v49, %v4326_v60  ;;  %v4328_v10 = vrot.slane %v4326_v60, 4  ;;  %v3668_v17 = vsel %vm7145_vm14, %v5782_v56, %v3667_v63  ;;  %v3669_v38 = vrot.slane %v3667_v63, 4  ;;  %6359 = vmatprep.mubr.bf16.mxu0 %v5848_v6 }
 0x12c   : > { %v7273_v19 = vpop.f32.mrf.mxu0  ;;  %v4341_v21 = vrot.slane %v4339_v15, 5  ;;  %v4351_v25 = vshll.u32 %v4124_v2, 16  ;;  %v4358_v36 = vshrl.u32 %v4125_v13, 16  ;;  %v4361_v37 = vshll.u32 %v4125_v13, 16 }
 0x12d   : > { %8045 = vst [vmem:[#allocation20_spill] sm:$0xff] %v7273_v19  ;;  %v7275_v27 = vpop.f32.mrf.mxu1  ;;  %v4337_v29 = vsel %vm7165_vm1, %v4328_v10, %v4336_v7  ;;  %v3671_v31 = vsel %vm7145_vm14, %v3669_v38, %v3670_v11  ;;  %v4344_v49 = vrot.slane %v4342_v30, 6  ;;  %v4350_v51 = vrot.slane %v4348_v24, 5  ;;  %v3555_v10 = vld [vmem:[#allocation2 + $0x7c] sm:$0xe] }
 0x12e   : > { %8046 = vst [vmem:[#allocation21_spill] sm:$0xff] %v7275_v27  ;;  %v7281_v42 = vpop.f32.mrf.mxu0  ;;  %v5849_v45 = vcombine.low %v4327_v16, %v4337_v29  ;;  %v5810_v47 = vcombine.low %v3668_v17, %v3671_v31  ;;  %v4353_v53 = vrot.slane %v4351_v25, 6  ;;  %v4360_v55 = vrot.slane %v4358_v36, 5  ;;  %v3556_v17 = vld [vmem:[#allocation2 + $0x80] sm:$0xf] }
 0x12f   : > { %8047 = vst [vmem:[#allocation22_spill] sm:$0xff] %v7281_v42  ;;  %v7283_v32 = vpop.f32.mrf.mxu1  ;;  %v4363_v56 = vrot.slane %v4361_v37, 6  ;;  %v3672_v58 = vrot.slane %v3670_v11, 4  ;;  %v4345_v59 = vor.u32 %v4344_v49, %v4341_v21  ;;  %v3673_v60 = vrot.slane %v3553_v26, 5  ;;  %v3557_v21 = vld [vmem:[#allocation2 + $0x84] sm:$0xf] }
 0x130   : > { %8048 = vst [vmem:[#allocation23_spill] sm:$0xff] %v7283_v32  ;;  %6360 = vmatmul.mubr.bf16.gmra.mxu0 %v5849_v45  ;;  %6315 = vmatprep.mubr.bf16.mxu1 %v5810_v47  ;;  %v3676_v63 = vrot.slane %v3554_v39, 5  ;;  %v4368_v2 = vshrl.u32 %v4126_v41, 16  ;;  %v4354_v7 = vor.u32 %v4353_v53, %v4350_v51  ;;  %v4371_v15 = vshll.u32 %v4126_v41, 16  ;;  %v7287_v38 = vpop.f32.mrf.mxu0  ;;  %v4128_v39 = vld [vmem:[#allocation2 + $0x7c] sm:$0xe] }
 0x131   : > { %v7285_v6 = vpop.f32.mrf.mxu1  ;;  %v4364_v13 = vor.u32 %v4363_v56, %v4360_v55  ;;  %v4378_v16 = vshrl.u32 %v4127_v52, 16  ;;  %8050 = vst [vmem:[#allocation25_spill] sm:$0xff] %v7287_v38  ;;  %v4346_v30 = vrot.slane %v4345_v59, 4  ;;  %v3674_v11 = vsel %vm7145_vm14, %v3672_v58, %v3673_v60  ;;  %v4129_v59 = vld [vmem:[#allocation2 + $0x80] sm:$0xf] }
 0x132   : > { %8049 = vst [vmem:[#allocation24_spill] sm:$0xff] %v7285_v6  ;;  %v3675_v24 = vrot.slane %v3673_v60, 4  ;;  %v4370_v25 = vrot.slane %v4368_v2, 5  ;;  %v4356_v29 = vrot.slane %v4354_v7, 4  ;;  %v4373_v36 = vrot.slane %v4371_v15, 6 }
 0x133   : > { %v7291_v26 = vpop.f32.mrf.mxu1  ;;  %v4366_v31 = vrot.slane %v4364_v13, 4  ;;  %v4380_v37 = vrot.slane %v4378_v16, 5  ;;  %v4355_v41 = vsel %vm7165_vm1, %v4346_v30, %v4354_v7  ;;  %v4381_v47 = vshll.u32 %v4127_v52, 16  ;;  %v4130_v7 = vld [vmem:[#allocation2 + $0x84] sm:$0xf] }
 0x134   : > { %8051 = vst [vmem:[#allocation26_spill] sm:$0xff] %v7291_v26  ;;  %v3677_v45 = vsel %vm7145_vm14, %v3675_v24, %v3676_v63  ;;  %v5783_v49 = vrot.slane %v3555_v10, 9  ;;  %v4365_v53 = vsel %vm7165_vm1, %v4356_v29, %v4364_v13  ;;  %v4374_v56 = vor.u32 %v4373_v36, %v4370_v25  ;;  %v3558_v29 = vld [vmem:[#allocation2 + $0x88] sm:$0xf] }
 0x135   : > { %v7297_v51 = vpop.f32.mrf.mxu1  ;;  %v5811_v55 = vcombine.low %v3674_v11, %v3677_v45  ;;  %v3680_v58 = vrot.slane %v3556_v17, 5  ;;  %v5850_v2 = vcombine.low %v4355_v41, %v4365_v53  ;;  %v4383_v15 = vrot.slane %v4381_v47, 6  ;;  %v3559_v53 = vld [vmem:[#allocation2 + $0x8c] sm:$0x1] }
 0x136   : > { %v7301_v60 = vpop.f32.mrf.mxu0  ;;  %v3683_v16 = vrot.slane %v3557_v21, 5  ;;  %v4387_v30 = vshrl.u32 %v4128_v39, 16  ;;  %v4375_v52 = vsel %vm7165_vm1, %v4366_v31, %v4374_v56  ;;  %v4376_v63 = vrot.slane %v4374_v56, 4 }
 0x137   : > { %v7303_v26 = vpop.f32.mrf.mxu1  ;;  %6316 = vmatmul.mubr.bf16.gmra.mxu1 %v5811_v55  ;;  %v3681_v13 = vsel %vm7145_vm14, %v5783_v49, %v3680_v58  ;;  %v3682_v10 = vrot.slane %v3680_v58, 4  ;;  %6363 = vmatprep.mubr.bf16.mxu0 %v5850_v2  ;;  %v4384_v11 = vor.u32 %v4383_v15, %v4380_v37  ;;  %v4390_v25 = vshll.u32 %v4128_v39, 16  ;;  %v4131_v39 = vld [vmem:[#allocation2 + $0x88] sm:$0xf] }
 0x138   : > { %v7309_v17 = vpop.f32.mrf.mxu0  ;;  %v4389_v24 = vrot.slane %v4387_v30, 5  ;;  %v4396_v21 = vshrl.u32 %v4129_v59, 16  ;;  %v4399_v45 = vshll.u32 %v4129_v59, 16  ;;  %v4406_v31 = vshrl.u32 %v4130_v7, 16 }
 0x139   : > { %v7311_v36 = vpop.f32.mrf.mxu1  ;;  %v3684_v41 = vsel %vm7145_vm14, %v3682_v10, %v3683_v16  ;;  %v4409_v47 = vshll.u32 %v4130_v7, 16  ;;  %v4385_v49 = vsel %vm7165_vm1, %v4376_v63, %v4384_v11  ;;  %v4392_v37 = vrot.slane %v4390_v25, 6  ;;  %v4132_v10 = vld [vmem:[#allocation2 + $0x8c] sm:$0x3] }
 0x13a   : > { %v7315_v55 = vpop.f32.mrf.mxu0  ;;  %v5812_v56 = vcombine.low %v3681_v13, %v3684_v41  ;;  %v4398_v58 = vrot.slane %v4396_v21, 5  ;;  %v5851_v15 = vcombine.low %v4375_v52, %v4385_v49  ;;  %v4401_v30 = vrot.slane %v4399_v45, 6  ;;  %v3560_v21 = vld [vmem:[#allocation2 + $0x94] sm:$0xe] }
 0x13b   : > { %v7319_v2 = vpop.f32.mrf.mxu1  ;;  %v4408_v6 = vrot.slane %v4406_v31, 5  ;;  %v4411_v32 = vrot.slane %v4409_v47, 6  ;;  %v4393_v59 = vor.u32 %v4392_v37, %v4389_v24  ;;  %v3685_v7 = vrot.slane %v3683_v16, 4  ;;  %v3561_v24 = vld [vmem:[#allocation2 + $0x98] sm:$0xf] }
 0x13c   : > { %6319 = vmatprep.mubr.bf16.mxu1 %v5812_v56  ;;  %v3686_v27 = vrot.slane %v3558_v29, 5  ;;  %v3689_v46 = vrot.slane %v3559_v53, 5  ;;  %6364 = vmatmul.mubr.bf16.gmra.mxu0 %v5851_v15  ;;  %v4402_v63 = vor.u32 %v4401_v30, %v4398_v58  ;;  %v4416_v11 = vshrl.u32 %v4131_v39, 16  ;;  %v7323_v41 = vpop.f32.mrf.mxu0  ;;  %v3562_v37 = vld [vmem:[#allocation2 + $0x9c] sm:$0xf] }
 0x13d   : > { %v7321_v43 = vpop.f32.mrf.mxu1  ;;  %v4412_v13 = vor.u32 %v4411_v32, %v4408_v6  ;;  %v4419_v25 = vshll.u32 %v4131_v39, 16  ;;  %v4394_v52 = vrot.slane %v4393_v59, 4  ;;  %v4426_v47 = vshrl.u32 %v4132_v10, 16  ;;  %v4133_v15 = vld [vmem:[#allocation2 + $0x94] sm:$0xe] }
 0x13e   : > { %v3687_v45 = vsel %vm7145_vm14, %v3685_v7, %v3686_v27  ;;  %v3688_v31 = vrot.slane %v3686_v27, 4  ;;  %v4404_v29 = vrot.slane %v4402_v63, 4  ;;  %v4418_v49 = vrot.slane %v4416_v11, 5  ;;  %v4134_v11 = vld [vmem:[#allocation2 + $0x98] sm:$0xf] }
 0x13f   : > { %v7327_v16 = vpop.f32.mrf.mxu1  ;;  %v4414_v53 = vrot.slane %v4412_v13, 4  ;;  %v4421_v56 = vrot.slane %v4419_v25, 6  ;;  %v4403_v32 = vsel %vm7165_vm1, %v4394_v52, %v4402_v63  ;;  %v4428_v58 = vrot.slane %v4426_v47, 5 }
 0x140   : > { %v3690_v6 = vsel %vm7145_vm14, %v3688_v31, %v3689_v46  ;;  %v4429_v39 = vshll.u32 %v4132_v10, 16  ;;  %v4413_v27 = vsel %vm7165_vm1, %v4404_v29, %v4412_v13  ;;  %v5784_v57 = vrot.slane %v3560_v21, 9 }
 0x141   : > { %v7333_v30 = vpop.f32.mrf.mxu1  ;;  %v5813_v59 = vcombine.low %v3687_v45, %v3690_v6  ;;  %v4422_v7 = vor.u32 %v4421_v56, %v4418_v49  ;;  %v5852_v1 = vcombine.low %v4403_v32, %v4413_v27  ;;  %v3693_v63 = vrot.slane %v3561_v24, 5 }
 0x142   : > { %v7337_v25 = vpop.f32.mrf.mxu0  ;;  %v4431_v61 = vrot.slane %v4429_v39, 6  ;;  %v3696_v52 = vrot.slane %v3562_v37, 5  ;;  %v4435_v47 = vshrl.u32 %v4133_v15, 16  ;;  %v4438_v13 = vshll.u32 %v4133_v15, 16  ;;  %v3563_v39 = vld [vmem:[#allocation2 + $0xa0] sm:$0xf] }
 0x143   : > { %v7339_v46 = vpop.f32.mrf.mxu1  ;;  %6320 = vmatmul.mubr.bf16.gmra.mxu1 %v5813_v59  ;;  %v4423_v10 = vsel %vm7165_vm1, %v4414_v53, %v4422_v7  ;;  %v4424_v31 = vrot.slane %v4422_v7, 4  ;;  %6367 = vmatprep.mubr.bf16.mxu0 %v5852_v1  ;;  %v3694_v29 = vsel %vm7145_vm14, %v5784_v57, %v3693_v63  ;;  %v3695_v49 = vrot.slane %v3693_v63, 4  ;;  %v3564_v57 = vld [vmem:[#allocation2 + $0xa4] sm:$0x1]  ;;  %v4136_v59 = vld [vmem:[#allocation2 + $0xa0] sm:$0xf] }
 0x144   : > { %v7343_v45 = vpop.f32.mrf.mxu0  ;;  %v4432_v21 = vor.u32 %v4431_v61, %v4428_v58  ;;  %v4444_v24 = vshrl.u32 %v4134_v11, 16  ;;  %v4437_v56 = vrot.slane %v4435_v47, 5  ;;  %v4440_v37 = vrot.slane %v4438_v13, 6 }
 0x145   : > { %v4447_v32 = vshll.u32 %v4134_v11, 16  ;;  %v4454_v6 = vshrl.u32 %v4135_v33, 16  ;;  %v3697_v61 = vsel %vm7145_vm14, %v3695_v49, %v3696_v52  ;;  %v4457_v58 = vshll.u32 %v4135_v33, 16 }
 0x146   : > { %v7347_v27 = vpop.f32.mrf.mxu0  ;;  %v7349_v53 = vpop.f32.mrf.mxu1  ;;  %v4433_v15 = vsel %vm7165_vm1, %v4424_v31, %v4432_v21  ;;  %v4446_v1 = vrot.slane %v4444_v24, 5  ;;  %v5814_v63 = vcombine.low %v3694_v29, %v3697_v61  ;;  %v4441_v47 = vor.u32 %v4440_v37, %v4437_v56  ;;  %v4137_v31 = vld [vmem:[#allocation2 + $0xa4] sm:$0x3] }
 0x147   : > { %v5853_v7 = vcombine.low %v4423_v10, %v4433_v15  ;;  %v4449_v11 = vrot.slane %v4447_v32, 6  ;;  %v4456_v50 = vrot.slane %v4454_v6, 5  ;;  %v4459_v23 = vrot.slane %v4457_v58, 6  ;;  %v3566_v6 = vld [vmem:[#allocation2 + $0xb0] sm:$0xf] }
 0x148   : > { %v7355_v13 = vpop.f32.mrf.mxu0  ;;  %v7357_v12 = vpop.f32.mrf.mxu1  ;;  %v3698_v0 = vrot.slane %v3696_v52, 4  ;;  %v3699_v40 = vrot.slane %v3563_v39, 5  ;;  %6323 = vmatprep.mubr.bf16.mxu1 %v5814_v63  ;;  %v4442_v21 = vrot.slane %v4441_v47, 4  ;;  %v3702_v33 = vrot.slane %v3564_v57, 5  ;;  %v3567_v15 = vld [vmem:[#allocation2 + $0xb4] sm:$0xf] }
 0x149   : > { %6368 = vmatmul.mubr.bf16.gmra.mxu0 %v5853_v7  ;;  %v4450_v49 = vor.u32 %v4449_v11, %v4446_v1  ;;  %v4464_v24 = vshrl.u32 %v4136_v59, 16  ;;  %v4460_v29 = vor.u32 %v4459_v23, %v4456_v50  ;;  %v4467_v32 = vshll.u32 %v4136_v59, 16  ;;  %v4138_v57 = vld [vmem:[#allocation2 + $0xac] sm:$0xe] }
 0x14a   : > { %v7359_v10 = vpop.f32.mrf.mxu1  ;;  %v3700_v56 = vsel %vm7145_vm14, %v3698_v0, %v3699_v40  ;;  %v3701_v37 = vrot.slane %v3699_v40, 4  ;;  %v4474_v58 = vshrl.u32 %v4137_v31, 16  ;;  %v4477_v63 = vshll.u32 %v4137_v31, 16  ;;  %v4139_v0 = vld [vmem:[#allocation2 + $0xb0] sm:$0xf] }
 0x14b   : > { %v7363_v52 = vpop.f32.mrf.mxu0  ;;  %v4451_v39 = vsel %vm7165_vm1, %v4442_v21, %v4450_v49  ;;  %v4452_v61 = vrot.slane %v4450_v49, 4  ;;  %v4466_v1 = vrot.slane %v4464_v24, 5  ;;  %v4462_v23 = vrot.slane %v4460_v29, 4  ;;  %v4140_v31 = vld [vmem:[#allocation2 + $0xb4] sm:$0xf] }
 0x14c   : > { %v3703_v7 = vsel %vm7145_vm14, %v3701_v37, %v3702_v33  ;;  %v4469_v50 = vrot.slane %v4467_v32, 6  ;;  %v7371_v59 = vpop.f32.mrf.mxu1  ;;  %v4476_v21 = vrot.slane %v4474_v58, 5  ;;  %v5785_v49 = vrot.slane %v3565_v22, 9 }
 0x14d   : > { %v7369_v40 = vpop.f32.mrf.mxu0  ;;  %8053 = vst [vmem:[#allocation28_spill] sm:$0xff] %v7371_v59  ;;  %v4461_v47 = vsel %vm7165_vm1, %v4452_v61, %v4460_v29  ;;  %v5815_v11 = vcombine.low %v3700_v56, %v3703_v7  ;;  %v4479_v42 = vrot.slane %v4477_v63, 6  ;;  %v3706_v19 = vrot.slane %v3566_v6, 5  ;;  %v3569_v7 = vld [vmem:[#allocation2 + $0xbc] sm:$0x1] }
 0x14e   : > { %8052 = vst [vmem:[#allocation27_spill] sm:$0xff] %v7369_v40  ;;  %v5854_v24 = vcombine.low %v4451_v39, %v4461_v47  ;;  %v4470_v38 = vor.u32 %v4469_v50, %v4466_v1  ;;  %v3709_v33 = vrot.slane %v3567_v15, 5  ;;  %v4483_v37 = vshrl.u32 %v4138_v57, 16  ;;  %v3568_v39 = vld [vmem:[#allocation2 + $0xb8] sm:$0xf] }
 0x14f   : > { %v7375_v4 = vpop.f32.mrf.mxu0  ;;  %6324 = vmatmul.mubr.bf16.gmra.mxu1 %v5815_v11  ;;  %v4486_v32 = vshll.u32 %v4138_v57, 16  ;;  %v4492_v40 = vshrl.u32 %v4139_v0, 16  ;;  %v4480_v56 = vor.u32 %v4479_v42, %v4476_v21  ;;  %v3707_v22 = vsel %vm7145_vm14, %v5785_v49, %v3706_v19 }
 0x150   : > { %8054 = vst [vmem:[#allocation29_spill] sm:$0xff] %v7375_v4  ;;  %6371 = vmatprep.mubr.bf16.mxu0 %v5854_v24  ;;  %v4471_v59 = vsel %vm7165_vm1, %v4462_v23, %v4470_v38  ;;  %v4472_v29 = vrot.slane %v4470_v38, 4  ;;  %v3708_v6 = vrot.slane %v3706_v19, 4  ;;  %v4485_v1 = vrot.slane %v4483_v37, 5  ;;  %v4141_v23 = vld [vmem:[#allocation2 + $0xb8] sm:$0xf] }
 0x151   : > { %v7381_v61 = vpop.f32.mrf.mxu1  ;;  %v4488_v58 = vrot.slane %v4486_v32, 6  ;;  %v4494_v15 = vrot.slane %v4492_v40, 5  ;;  %v4495_v50 = vshll.u32 %v4139_v0, 16  ;;  %v4502_v63 = vshrl.u32 %v4140_v31, 16  ;;  %v7385_v38 = vpop.f32.mrf.mxu0  ;;  %v4142_v24 = vld [vmem:[#allocation2 + $0xbc] sm:$0x3] }
 0x152   : > { %8055 = vst [vmem:[#allocation30_spill] sm:$0xff] %v7381_v61  ;;  %v4481_v57 = vsel %vm7165_vm1, %v4472_v29, %v4480_v56  ;;  %v4505_v47 = vshll.u32 %v4140_v31, 16  ;;  %8056 = vst [vmem:[#allocation31_spill] sm:$0xff] %v7385_v38  ;;  %v3710_v21 = vsel %vm7145_vm14, %v3708_v6, %v3709_v33  ;;  %v3711_v49 = vrot.slane %v3709_v33, 4 }
 0x153   : > { %v7387_v42 = vpop.f32.mrf.mxu1  ;;  %v5855_v11 = vcombine.low %v4471_v59, %v4481_v57  ;;  %v4489_v19 = vor.u32 %v4488_v58, %v4485_v1  ;;  %v5816_v40 = vcombine.low %v3707_v22, %v3710_v21  ;;  %v4497_v37 = vrot.slane %v4495_v50, 6 }
 0x154   : > { %8057 = vst [vmem:[#allocation32_spill] sm:$0xff] %v7387_v42  ;;  %v4504_v32 = vrot.slane %v4502_v63, 5  ;;  %v4507_v4 = vrot.slane %v4505_v47, 6  ;;  %v3712_v31 = vrot.slane %v3568_v39, 5  ;;  %v3715_v56 = vrot.slane %v3569_v7, 5 }
 0x155   : > { %v7391_v29 = vpop.f32.mrf.mxu1  ;;  %6372 = vmatmul.mubr.bf16.gmra.mxu0 %v5855_v11  ;;  %v4490_v0 = vrot.slane %v4489_v19, 4  ;;  %v4512_v38 = vshrl.u32 %v4141_v23, 16  ;;  %6327 = vmatprep.mubr.bf16.mxu1 %v5816_v40  ;;  %v4498_v42 = vor.u32 %v4497_v37, %v4494_v15  ;;  %v4515_v57 = vshll.u32 %v4141_v23, 16 }
 0x156   : > { %v4508_v59 = vor.u32 %v4507_v4, %v4504_v32  ;;  %v4522_v61 = vshrl.u32 %v4142_v24, 16  ;;  %v3713_v22 = vsel %vm7145_vm14, %v3711_v49, %v3712_v31  ;;  %v3714_v1 = vrot.slane %v3712_v31, 4 }
 0x157   : > { %v7393_v6 = vpop.f32.mrf.mxu0  ;;  %v1378_v33 = vpop.f32.mrf.mxu1  ;;  %v4514_v58 = vrot.slane %v4512_v38, 5  ;;  %v4525_v50 = vshll.u32 %v4142_v24, 16  ;;  %v4499_v63 = vsel %vm7165_vm1, %v4490_v0, %v4498_v42  ;;  %v4500_v39 = vrot.slane %v4498_v42, 4 }
 0x158   : > { %v4510_v7 = vrot.slane %v4508_v59, 4  ;;  %v4517_v47 = vrot.slane %v4515_v57, 6  ;;  %v3716_v4 = vsel %vm7145_vm14, %v3714_v1, %v3715_v56  ;;  %v4524_v15 = vrot.slane %v4522_v61, 5 }
 0x159   : > { %v2124_v11 = vpop.f32.mrf.mxu0  ;;  %v4527_v23 = vrot.slane %v4525_v50, 6  ;;  %v1488_v21 = vadd.f32 %v7297_v51, %v7149_v5  ;;  %v4509_v19 = vsel %vm7165_vm1, %v4500_v39, %v4508_v59  ;;  %v5817_v38 = vcombine.low %v3713_v22, %v3716_v4  ;;  %v8063_v22 = vld [vmem:[#allocation22_spill] sm:$0xff]  ;;  %v8064_v50 = vld [vmem:[#allocation27_spill] sm:$0xff] }
 0x15a   : > { %v4518_v49 = vor.u32 %v4517_v47, %v4514_v58  ;;  %v1486_v24 = vadd.f32 %v7303_v26, %v7161_v14  ;;  %v5856_v37 = vcombine.low %v4499_v63, %v4509_v19  ;;  %v1489_v61 = vadd.f32 %v7311_v36, %v7173_v48 }
 0x15b   : > { %v6170_v42 = vpop.f32.mrf.mxu0  ;;  %v6125_v40 = vpop.f32.mrf.mxu1  ;;  %v4528_v32 = vor.u32 %v4527_v23, %v4524_v15  ;;  %v7408_v62 = vadd.f32 %v7301_v60, %v1488_v21  ;;  %6328 = vmatmul.mubr.bf16.gmra.mxu1 %v5817_v38  ;;  %v1487_v14 = vadd.f32 %v7319_v2, %v7183_v8  ;;  %v1492_v48 = vadd.f32 %v7321_v43, %v7195_v28  ;;  %v8062_v57 = vld [vmem:[#allocation32_spill] sm:$0xff] }
 0x15c   : > { %v4519_v5 = vsel %vm7165_vm1, %v4510_v7, %v4518_v49  ;;  %v4520_v51 = vrot.slane %v4518_v49, 4  ;;  %v7415_v0 = vadd.f32 %v7309_v17, %v1486_v24  ;;  %6375 = vmatprep.mubr.bf16.mxu0 %v5856_v37  ;;  %v7420_v60 = vadd.f32 %v7315_v55, %v1489_v61  ;;  %v8068_v7 = vld [vmem:[#allocation31_spill] sm:$0xff]  ;;  %v8069_v38 = vld [vmem:[#allocation8_spill] sm:$0xff] }
 0x15d   : > { %v2127_v26 = vpop.f32.mrf.mxu0  ;;  %v1391_v31 = vpop.f32.mrf.mxu1  ;;  %v1490_v36 = vadd.f32 %v7327_v16, %v7201_v54  ;;  %v1493_v56 = vadd.f32 %v7333_v30, %v7211_v18  ;;  %v7431_v8 = vadd.f32 %v7323_v41, %v1487_v14  ;;  %v1491_v2 = vadd.f32 %v7339_v46, %v7223_v44  ;;  %v8058_v30 = vld [vmem:[#allocation28_spill] sm:$0xff]  ;;  %v8059_v46 = vld [vmem:[#allocation19_spill] sm:$0xff] }
 0x15e   : > { %v4529_v17 = vsel %vm7165_vm1, %v4520_v51, %v4528_v32  ;;  %v1496_v55 = vadd.f32 %v7349_v53, %v7229_v9  ;;  %v7438_v43 = vadd.f32 %v7337_v25, %v1492_v48  ;;  %v1494_v9 = vadd.f32 %v7357_v12, %v7239_v35  ;;  %v8061_v53 = vld [vmem:[#allocation20_spill] sm:$0xff]  ;;  %v8065_v35 = vld [vmem:[#allocation29_spill] sm:$0xff] }
 0x15f   : > { %v6126_v59 = vpop.f32.mrf.mxu1  ;;  %v5857_v28 = vcombine.low %v4519_v5, %v4529_v17  ;;  %v7441_v54 = vadd.f32 %v7343_v45, %v1490_v36  ;;  %v7444_v34 = vadd.f32 %v7347_v27, %v1493_v56  ;;  %v7447_v41 = vadd.f32 %v7355_v13, %v1491_v2  ;;  %v8060_v45 = vld [vmem:[#allocation30_spill] sm:$0xff]  ;;  %v8074_v17 = vld [vmem:[#allocation13_spill] sm:$0xff] }
 0x160   : > { %v6173_v18 = vpop.f32.mrf.mxu0  ;;  %v7450_v44 = vadd.f32 %v7363_v52, %v1496_v55  ;;  %v1497_v16 = vadd.f32 %v7359_v10, %v7249_v3  ;;  %v1495_v25 = vadd.f32 %v8058_v30, %v7255_v20  ;;  %v1500_v27 = vadd.f32 %v8060_v45, %v8059_v46  ;;  %v8066_v10 = vld [vmem:[#allocation25_spill] sm:$0xff]  ;;  %v8067_v20 = vld [vmem:[#allocation7_spill] sm:$0xff] }
 0x161   : > { %6376 = vmatmul.mubr.bf16.gmra.mxu0 %v5857_v28  ;;  %v1498_v13 = vadd.f32 %v8062_v57, %v8061_v53  ;;  %v1501_v52 = vadd.f32 %v7391_v29, %v8063_v22  ;;  %v1394_v58 = vpop.f32.mrf.mxu1  ;;  %v7465_v12 = vadd.f32 %v8064_v50, %v1494_v9  ;;  %v1499_v63 = vadd.f32 %v1378_v33, %v8066_v10  ;;  %v8070_v33 = vld [vmem:[#allocation9_spill] sm:$0xff] }
 0x162   : > { %v2140_v1 = vpop.f32.mrf.mxu0  ;;  %v7468_v3 = vadd.f32 %v8065_v35, %v1497_v16  ;;  %v1504_v39 = vadd.f32 %v6125_v40, %v8067_v20  ;;  %v7473_v47 = vadd.f32 %v8068_v7, %v1495_v25  ;;  %v7476_v4 = vadd.f32 %v7393_v6, %v1500_v27  ;;  %v8071_v40 = vld [vmem:[#allocation10_spill] sm:$0xff]  ;;  %v8076_v27 = vld [vmem:[#allocation15_spill] sm:$0xff]  ;;  %v8078_v50 = vld [vmem:[#allocation17_spill] sm:$0xff] }
 0x163   : > { %v7478_v15 = vadd.f32 %v2124_v11, %v1498_v13  ;;  %v7480_v29 = vadd.f32 %v6170_v42, %v1501_v52  ;;  %v7482_v21 = vadd.f32 %v2127_v26, %v1499_v63  ;;  %v1502_v49 = vadd.f32 %v1391_v31, %v8069_v38  ;;  %v8072_v11 = vld [vmem:[#allocation11_spill] sm:$0xff]  ;;  %v8073_v26 = vld [vmem:[#allocation12_spill] sm:$0xff] }
 0x164   : > { %v6174_v23 = vpop.f32.mrf.mxu0  ;;  %v7484_v19 = vadd.f32 %v6173_v18, %v1504_v39  ;;  %v1505_v24 = vadd.f32 %v6126_v59, %v8070_v33  ;;  %v1503_v37 = vadd.f32 %v1394_v58, %v8071_v40  ;;  %v8075_v18 = vld [vmem:[#allocation14_spill] sm:$0xff]  ;;  %v8077_v13 = vld [vmem:[#allocation16_spill] sm:$0xff]  ;;  %v8080_v40 = vld [vmem:[#allocation21_spill] sm:$0xff]  ;;  %vm5460_vm2 = vcmask 523264  }
 0x165   : > { %v7489_v5 = vadd.f32 %v2140_v1, %v1502_v49  ;;  %v8079_v39 = vld [vmem:[#allocation18_spill] sm:$0xff] }
 0x166   : > { %v2143_v32 = vpop.f32.mrf.mxu0  ;;  %v6129_v61 = vpop.f32.mrf.mxu1  ;;  %v7491_v6 = vadd.f32 %v6174_v23, %v1505_v24 }
 0x167   : > { %v1508_v42 = vadd.f32 %v6129_v61, %v8072_v11  ;;  %v7494_v51 = vadd.f32 %v2143_v32, %v1503_v37  ;;  %v8081_v61 = vld [vmem:[#allocation23_spill] sm:$0xff] }
 0x168   : > { %v1407_v14 = vpop.f32.mrf.mxu1 }
 0x169   : > { %v1506_v48 = vadd.f32 %v1407_v14, %v8073_v26 }
 0x16a   : > { %v6177_v36 = vpop.f32.mrf.mxu0  ;;  %v6130_v56 = vpop.f32.mrf.mxu1 }
 0x16b   : > { %v7497_v31 = vadd.f32 %v6177_v36, %v1508_v42  ;;  %v1509_v2 = vadd.f32 %v6130_v56, %v8074_v17 }
 0x16c   : > { %v2156_v55 = vpop.f32.mrf.mxu0  ;;  %v1410_v59 = vpop.f32.mrf.mxu1 }
 0x16d   : > { %v7500_v28 = vadd.f32 %v2156_v55, %v1506_v48  ;;  %v1507_v9 = vadd.f32 %v1410_v59, %v8075_v18  ;;  %v8082_v48 = vld [vmem:[#allocation24_spill] sm:$0xff]  ;;  %v8083_v55 = vld [vmem:[#allocation26_spill] sm:$0xff] }
 0x16e   : > { %v6178_v16 = vpop.f32.mrf.mxu0 }
 0x16f   : > { %v7503_v30 = vadd.f32 %v6178_v16, %v1509_v2 }
 0x170   : > { %v2159_v25 = vpop.f32.mrf.mxu0  ;;  %v6133_v46 = vpop.f32.mrf.mxu1 }
 0x171   : > { %v7505_v45 = vadd.f32 %v2159_v25, %v1507_v9  ;;  %v1512_v53 = vadd.f32 %v6133_v46, %v8076_v27 }
 0x172   : > { %v1423_v57 = vpop.f32.mrf.mxu1 }
 0x173   : > { %v1510_v22 = vadd.f32 %v1423_v57, %v8077_v13 }
 0x174   : > { %v6181_v52 = vpop.f32.mrf.mxu0  ;;  %v6134_v1 = vpop.f32.mrf.mxu1 }
 0x175   : > { %v7509_v58 = vadd.f32 %v6181_v52, %v1512_v53  ;;  %v1513_v35 = vadd.f32 %v6134_v1, %v8078_v50 }
 0x176   : > { %v2172_v10 = vpop.f32.mrf.mxu0  ;;  %v1426_v63 = vpop.f32.mrf.mxu1 }
 0x177   : > { %v7512_v20 = vadd.f32 %v2172_v10, %v1510_v22  ;;  %v1511_v7 = vadd.f32 %v1426_v63, %v8079_v39 }
 0x178   : > { %v6182_v23 = vpop.f32.mrf.mxu0 }
 0x179   : > { %v7515_v38 = vadd.f32 %v6182_v23, %v1513_v35 }
 0x17a   : > { %v2175_v49 = vpop.f32.mrf.mxu0  ;;  %v6137_v33 = vpop.f32.mrf.mxu1 }
 0x17b   : > { %v7517_v24 = vadd.f32 %v2175_v49, %v1511_v7  ;;  %v1516_v37 = vadd.f32 %v6137_v33, %v8080_v40 }
 0x17c   : > { %v1439_v32 = vpop.f32.mrf.mxu1 }
 0x17d   : > { %v1514_v11 = vadd.f32 %v1439_v32, %v8081_v61 }
 0x17e   : > { %v6138_v42 = vpop.f32.mrf.mxu1 }
 0x17f   : > { %v6185_v14 = vpop.f32.mrf.mxu0  ;;  %v1517_v36 = vadd.f32 %v6138_v42, %v8082_v48 }
 0x180   : > { %v7521_v26 = vadd.f32 %v6185_v14, %v1516_v37  ;;  %v1442_v56 = vpop.f32.mrf.mxu1 }
 0x181   : > { %v2188_v17 = vpop.f32.mrf.mxu0  ;;  %v1515_v59 = vadd.f32 %v1442_v56, %v8083_v55 }
 0x182   : > { %v7524_v2 = vadd.f32 %v2188_v17, %v1514_v11  ;;  %v7527_v18 = vpop.f32.mrf.mxu1 }
 0x183   : > { %v6186_v9 = vpop.f32.mrf.mxu0 }
 0x184   : > { %v7529_v16 = vadd.f32 %v6186_v9, %v1517_v36  ;;  %v7531_v25 = vpop.f32.mrf.mxu1 }
 0x185   : > { %v2191_v46 = vpop.f32.mrf.mxu0 }
 0x186   : > { %v7533_v27 = vadd.f32 %v2191_v46, %v1515_v59  ;;  %v7535_v53 = vpop.f32.mrf.mxu1 }
 0x187   : > { %v7537_v57 = vpop.f32.mrf.mxu0 }
 0x188   : > { %v7539_v13 = vpop.f32.mrf.mxu1 }
 0x189   : > { %v7541_v22 = vpop.f32.mrf.mxu0 }
 0x18a   : > { %v6209_v52 = vpop.f32.mrf.mxu1 }
 0x18b   : > { %v2691_v1 = vadd.f32 %v6209_v52, %v7438_v43  ;;  %v7544_v50 = vpop.f32.mrf.mxu0 }
 0x18c   : > { %v2542_v35 = vpop.f32.mrf.mxu1 }
 0x18d   : > { %v2689_v10 = vadd.f32 %v2542_v35, %v7441_v54  ;;  %v7547_v63 = vpop.f32.mrf.mxu0 }
 0x18e   : > { %v6210_v39 = vpop.f32.mrf.mxu1 }
 0x18f   : > { %v2692_v7 = vadd.f32 %v6210_v39, %v7444_v34  ;;  %v6257_v23 = vpop.f32.mrf.mxu0 }
 0x190   : > { %v2545_v49 = vpop.f32.mrf.mxu1  ;;  %v7550_v33 = vadd.f32 %v6257_v23, %v2691_v1 }
 0x191   : > { %v2690_v40 = vadd.f32 %v2545_v49, %v7447_v41  ;;  %v3323_v37 = vpop.f32.mrf.mxu0 }
 0x192   : > { %v6213_v32 = vpop.f32.mrf.mxu1  ;;  %v7553_v61 = vadd.f32 %v3323_v37, %v2689_v10 }
 0x193   : > { %v2695_v43 = vadd.f32 %v6213_v32, %v7450_v44  ;;  %v6258_v11 = vpop.f32.mrf.mxu0 }
 0x194   : > { %v2558_v42 = vpop.f32.mrf.mxu1  ;;  %v7556_v54 = vadd.f32 %v6258_v11, %v2692_v7 }
 0x195   : > { %v2693_v14 = vadd.f32 %v2558_v42, %v7465_v12  ;;  %v3326_v48 = vpop.f32.mrf.mxu0 }
 0x196   : > { %v6214_v34 = vpop.f32.mrf.mxu1  ;;  %v7559_v36 = vadd.f32 %v3326_v48, %v2690_v40 }
 0x197   : > { %v2696_v56 = vadd.f32 %v6214_v34, %v7468_v3  ;;  %v6261_v17 = vpop.f32.mrf.mxu0 }
 0x198   : > { %v2561_v41 = vpop.f32.mrf.mxu1  ;;  %v7562_v55 = vadd.f32 %v6261_v17, %v2695_v43 }
 0x199   : > { %v2694_v59 = vadd.f32 %v2561_v41, %v7473_v47  ;;  %v3339_v9 = vpop.f32.mrf.mxu0 }
 0x19a   : > { %v6217_v44 = vpop.f32.mrf.mxu1  ;;  %v7565_v46 = vadd.f32 %v3339_v9, %v2693_v14 }
 0x19b   : > { %v2699_v52 = vadd.f32 %v6217_v44, %v7476_v4  ;;  %v6262_v1 = vpop.f32.mrf.mxu0 }
 0x19c   : > { %v2574_v12 = vpop.f32.mrf.mxu1  ;;  %v7568_v35 = vadd.f32 %v6262_v1, %v2696_v56 }
 0x19d   : > { %v2697_v10 = vadd.f32 %v2574_v12, %v7478_v15  ;;  %v3342_v39 = vpop.f32.mrf.mxu0 }
 0x19e   : > { %v6218_v3 = vpop.f32.mrf.mxu1  ;;  %v7571_v7 = vadd.f32 %v3342_v39, %v2694_v59 }
 0x19f   : > { %v2700_v23 = vadd.f32 %v6218_v3, %v7480_v29  ;;  %v6265_v49 = vpop.f32.mrf.mxu0 }
 0x1a0   : > { %v2577_v47 = vpop.f32.mrf.mxu1  ;;  %v7574_v40 = vadd.f32 %v6265_v49, %v2699_v52 }
 0x1a1   : > { %v2698_v37 = vadd.f32 %v2577_v47, %v7482_v21  ;;  %v3355_v32 = vpop.f32.mrf.mxu0 }
 0x1a2   : > { %v6221_v4 = vpop.f32.mrf.mxu1  ;;  %v7577_v43 = vadd.f32 %v3355_v32, %v2697_v10 }
 0x1a3   : > { %v2703_v11 = vadd.f32 %v6221_v4, %v7484_v19  ;;  %v6266_v42 = vpop.f32.mrf.mxu0 }
 0x1a4   : > { %v2590_v15 = vpop.f32.mrf.mxu1  ;;  %v7580_v14 = vadd.f32 %v6266_v42, %v2700_v23 }
 0x1a5   : > { %v2701_v48 = vadd.f32 %v2590_v15, %v7489_v5  ;;  %v3358_v34 = vpop.f32.mrf.mxu0 }
 0x1a6   : > { %v6222_v29 = vpop.f32.mrf.mxu1  ;;  %v7583_v56 = vadd.f32 %v3358_v34, %v2698_v37 }
 0x1a7   : > { %v2704_v17 = vadd.f32 %v6222_v29, %v7491_v6  ;;  %v6269_v41 = vpop.f32.mrf.mxu0 }
 0x1a8   : > { %v2593_v21 = vpop.f32.mrf.mxu1  ;;  %v7586_v59 = vadd.f32 %v6269_v41, %v2703_v11 }
 0x1a9   : > { %v2702_v9 = vadd.f32 %v2593_v21, %v7494_v51  ;;  %v3371_v44 = vpop.f32.mrf.mxu0 }
 0x1aa   : > { %v6225_v19 = vpop.f32.mrf.mxu1  ;;  %v7589_v52 = vadd.f32 %v3371_v44, %v2701_v48 }
 0x1ab   : > { %v2707_v1 = vadd.f32 %v6225_v19, %v7497_v31  ;;  %v6270_v12 = vpop.f32.mrf.mxu0 }
 0x1ac   : > { %v2606_v5 = vpop.f32.mrf.mxu1  ;;  %v7592_v10 = vadd.f32 %v6270_v12, %v2704_v17 }
 0x1ad   : > { %v2705_v39 = vadd.f32 %v2606_v5, %v7500_v28  ;;  %v3374_v3 = vpop.f32.mrf.mxu0 }
 0x1ae   : > { %v6226_v6 = vpop.f32.mrf.mxu1  ;;  %v7595_v23 = vadd.f32 %v3374_v3, %v2702_v9 }
 0x1af   : > { %v2708_v49 = vadd.f32 %v6226_v6, %v7503_v30  ;;  %v6273_v47 = vpop.f32.mrf.mxu0 }
 0x1b0   : > { %v2609_v51 = vpop.f32.mrf.mxu1  ;;  %v7598_v37 = vadd.f32 %v6273_v47, %v2707_v1 }
 0x1b1   : > { %v2706_v32 = vadd.f32 %v2609_v51, %v7505_v45  ;;  %v3387_v4 = vpop.f32.mrf.mxu0 }
 0x1b2   : > { %v6229_v31 = vpop.f32.mrf.mxu1  ;;  %v7601_v11 = vadd.f32 %v3387_v4, %v2705_v39 }
 0x1b3   : > { %v2711_v42 = vadd.f32 %v6229_v31, %v7509_v58  ;;  %v6274_v15 = vpop.f32.mrf.mxu0 }
 0x1b4   : > { %v2622_v28 = vpop.f32.mrf.mxu1  ;;  %v7604_v48 = vadd.f32 %v6274_v15, %v2708_v49 }
 0x1b5   : > { %v2709_v34 = vadd.f32 %v2622_v28, %v7512_v20  ;;  %v3390_v29 = vpop.f32.mrf.mxu0 }
 0x1b6   : > { %v6230_v30 = vpop.f32.mrf.mxu1  ;;  %v7607_v17 = vadd.f32 %v3390_v29, %v2706_v32 }
 0x1b7   : > { %v2712_v41 = vadd.f32 %v6230_v30, %v7515_v38  ;;  %v6277_v21 = vpop.f32.mrf.mxu0  ;;  %v2688_v30 = vadd.f32 %v7535_v53, %v7420_v60 }
 0x1b8   : > { %v2625_v45 = vpop.f32.mrf.mxu1  ;;  %v7610_v9 = vadd.f32 %v6277_v21, %v2711_v42 }
 0x1b9   : > { %v2710_v44 = vadd.f32 %v2625_v45, %v7517_v24  ;;  %v3403_v19 = vpop.f32.mrf.mxu0 }
 0x1ba   : > { %v6233_v58 = vpop.f32.mrf.mxu1  ;;  %v7613_v1 = vadd.f32 %v3403_v19, %v2709_v34 }
 0x1bb   : > { %v2715_v12 = vadd.f32 %v6233_v58, %v7521_v26  ;;  %v6278_v5 = vpop.f32.mrf.mxu0  ;;  %v2687_v26 = vadd.f32 %v7527_v18, %v7408_v62  ;;  %v2686_v18 = vadd.f32 %v7539_v13, %v7431_v8 }
 0x1bc   : > { %v2638_v20 = vpop.f32.mrf.mxu1  ;;  %v7616_v39 = vadd.f32 %v6278_v5, %v2712_v41 }
 0x1bd   : > { %v2713_v3 = vadd.f32 %v2638_v20, %v7524_v2  ;;  %v3406_v6 = vpop.f32.mrf.mxu0  ;;  %v2685_v2 = vadd.f32 %v7531_v25, %v7415_v0  ;;  %v3468_v29 = vadd.f32 %v7537_v57, %v2687_v26  ;;  %v3469_v0 = vadd.f32 %v7544_v50, %v2688_v30 }
 0x1be   : > { %v6234_v38 = vpop.f32.mrf.mxu1  ;;  %v7619_v49 = vadd.f32 %v3406_v6, %v2710_v44  ;;  %v3467_v57 = vadd.f32 %v7547_v63, %v2686_v18 }
 0x1bf   : > { %v2716_v47 = vadd.f32 %v6234_v38, %v7529_v16  ;;  %v6281_v51 = vpop.f32.mrf.mxu0  ;;  %v3466_v62 = vadd.f32 %v7541_v22, %v2685_v2 }
 0x1c0   : > { %v2641_v24 = vpop.f32.mrf.mxu1  ;;  %v7622_v32 = vadd.f32 %v6281_v51, %v2715_v12 }
 0x1c1   : > { %v2714_v4 = vadd.f32 %v2641_v24, %v7533_v27  ;;  %v3419_v31 = vpop.f32.mrf.mxu0 }
 0x1c2   : > { %v7627_v42 = vadd.f32 %v3419_v31, %v2713_v3 }
 0x1c3   : > { %v6282_v15 = vpop.f32.mrf.mxu0 }
 0x1c4   : > { %v7631_v28 = vadd.f32 %v6282_v15, %v2716_v47 }
 0x1c5   : > { %v3422_v34 = vpop.f32.mrf.mxu0  ;;  %v6301_v16 = vpop.f32.mrf.mxu1 }
 0x1c6   : > { %v7636_v27 = vadd.f32 %v3422_v34, %v2714_v4  ;;  %v4041_v21 = vadd.f32 %v6301_v16, %v3468_v29 }
 0x1c7   : > { %v3880_v41 = vpop.f32.mrf.mxu1 }
 0x1c8   : > { %v4039_v25 = vadd.f32 %v3880_v41, %v3466_v62 }
 0x1c9   : > { %v6302_v45 = vpop.f32.mrf.mxu1 }
 0x1ca   : > { %v6349_v44 = vpop.f32.mrf.mxu0  ;;  %v4042_v60 = vadd.f32 %v6302_v45, %v3469_v0 }
 0x1cb   : > { %v3883_v19 = vpop.f32.mrf.mxu1  ;;  %v7643_v58 = vadd.f32 %v6349_v44, %v4041_v21 }
 0x1cc   : > { %v4693_v53 = vpop.f32.mrf.mxu0  ;;  %v4040_v8 = vadd.f32 %v3883_v19, %v3467_v57 }
 0x1cd   : > { %v7645_v12 = vadd.f32 %v4693_v53, %v4039_v25  ;;  %4984 = vrot.lane.b32.xlu1 %v7643_v58, %s6573_s24 }
 0x1ce   : > { %v6350_v13 = vpop.f32.mrf.mxu0 }
 0x1cf   : > { %v7649_v22 = vadd.f32 %v6350_v13, %v4042_v60  ;;  %4980 = vrot.lane.b32.xlu0 %v7645_v12, %s6573_s24 }
 0x1d0   : > { %v4696_v50 = vpop.f32.mrf.mxu0 }
 0x1d1   : > { %v7653_v5 = vadd.f32 %v4696_v50, %v4040_v8  ;;  %v6305_v63 = vpop.f32.mrf.mxu1  ;;  %4986 = vrot.lane.b32.xlu1 %v7649_v22, %s6573_s24 }
 0x1d2   : > { %v4045_v3 = vadd.f32 %v6305_v63, %v7550_v33 }
 0x1d3   : > { %v3896_v20 = vpop.f32.mrf.mxu1  ;;  %4982 = vrot.lane.b32.xlu0 %v7653_v5, %s6573_s24 }
 0x1d4   : > { %v4043_v51 = vadd.f32 %v3896_v20, %v7553_v61 }
 0x1d5   : > { %v6306_v6 = vpop.f32.mrf.mxu1 }
 0x1d6   : > { %v4046_v24 = vadd.f32 %v6306_v6, %v7556_v54 }
 0x1d7   : > { %v6353_v38 = vpop.f32.mrf.mxu0  ;;  %v3899_v31 = vpop.f32.mrf.mxu1 }
 0x1d8   : > { %v7660_v47 = vadd.f32 %v6353_v38, %v4045_v3  ;;  %v4044_v33 = vadd.f32 %v3899_v31, %v7559_v36 }
 0x1d9   : > { %v4709_v4 = vpop.f32.mrf.mxu0 }
 0x1da   : > { %4992 = vrot.lane.b32.xlu0 %v7660_v47, %s6573_s24  ;;  %v7666_v15 = vadd.f32 %v4709_v4, %v4043_v51 }
 0x1db   : > { %v6354_v26 = vpop.f32.mrf.mxu0 }
 0x1dc   : > { %v7668_v2 = vadd.f32 %v6354_v26, %v4046_v24 }
 0x1dd   : > { %v4712_v61 = vpop.f32.mrf.mxu0 }
 0x1de   : > { %v6309_v34 = vpop.f32.mrf.mxu1  ;;  %4994 = vrot.lane.b32.xlu1 %v7668_v2, %s6573_s24  ;;  %4988 = vrot.lane.b32.xlu0 %v7666_v15, %s6573_s24  ;;  %v7675_v16 = vadd.f32 %v4712_v61, %v4044_v33 }
 0x1df   : > { %v4049_v29 = vadd.f32 %v6309_v34, %v7562_v55 }
 0x1e0   : > { %v3912_v54 = vpop.f32.mrf.mxu1 }
 0x1e1   : > { %v4047_v36 = vadd.f32 %v3912_v54, %v7565_v46 }
 0x1e2   : > { %v6310_v30 = vpop.f32.mrf.mxu1  ;;  %4990 = vrot.lane.b32.xlu1 %v7675_v16, %s6573_s24 }
 0x1e3   : > { %v4050_v18 = vadd.f32 %v6310_v30, %v7568_v35 }
 0x1e4   : > { %v6357_v41 = vpop.f32.mrf.mxu0  ;;  %v3915_v45 = vpop.f32.mrf.mxu1 }
 0x1e5   : > { %v7680_v62 = vadd.f32 %v6357_v41, %v4049_v29  ;;  %v4048_v44 = vadd.f32 %v3915_v45, %v7571_v7 }
 0x1e6   : > { %v4725_v21 = vpop.f32.mrf.mxu0 }
 0x1e7   : > { %5000 = vrot.lane.b32.xlu0 %v7680_v62, %s6573_s24  ;;  %v7686_v25 = vadd.f32 %v4725_v21, %v4047_v36 }
 0x1e8   : > { %v6358_v0 = vpop.f32.mrf.mxu0 }
 0x1e9   : > { %v7688_v55 = vadd.f32 %v6358_v0, %v4050_v18 }
 0x1ea   : > { %v6313_v19 = vpop.f32.mrf.mxu1  ;;  %v4728_v46 = vpop.f32.mrf.mxu0 }
 0x1eb   : > { %5002 = vrot.lane.b32.xlu1 %v7688_v55, %s6573_s24  ;;  %4996 = vrot.lane.b32.xlu0 %v7686_v25, %s6573_s24  ;;  %v7695_v35 = vadd.f32 %v4728_v46, %v4048_v44  ;;  %v4053_v57 = vadd.f32 %v6313_v19, %v7574_v40 }
 0x1ec   : > { %v3928_v60 = vpop.f32.mrf.mxu1 }
 0x1ed   : > { %v4051_v7 = vadd.f32 %v3928_v60, %v7577_v43 }
 0x1ee   : > { %v6314_v53 = vpop.f32.mrf.mxu1 }
 0x1ef   : > { %4998 = vrot.lane.b32.xlu1 %v7695_v35, %s6573_s24  ;;  %v4054_v50 = vadd.f32 %v6314_v53, %v7580_v14 }
 0x1f0   : > { %v6361_v8 = vpop.f32.mrf.mxu0  ;;  %v3931_v20 = vpop.f32.mrf.mxu1 }
 0x1f1   : > { %v7700_v13 = vadd.f32 %v6361_v8, %v4053_v57  ;;  %v4052_v38 = vadd.f32 %v3931_v20, %v7583_v56 }
 0x1f2   : > { %v4741_v63 = vpop.f32.mrf.mxu0 }
 0x1f3   : > { %5008 = vrot.lane.b32.xlu0 %v7700_v13, %s6573_s24  ;;  %v7706_v6 = vadd.f32 %v4741_v63, %v4051_v7 }
 0x1f4   : > { %v6362_v3 = vpop.f32.mrf.mxu0 }
 0x1f5   : > { %v7708_v40 = vadd.f32 %v6362_v3, %v4054_v50 }
 0x1f6   : > { %v4744_v43 = vpop.f32.mrf.mxu0 }
 0x1f7   : > { %v6317_v51 = vpop.f32.mrf.mxu1  ;;  %5010 = vrot.lane.b32.xlu1 %v7708_v40, %s6573_s24  ;;  %5004 = vrot.lane.b32.xlu0 %v7706_v6, %s6573_s24  ;;  %v7715_v14 = vadd.f32 %v4744_v43, %v4052_v38 }
 0x1f8   : > { %v4057_v4 = vadd.f32 %v6317_v51, %v7586_v59 }
 0x1f9   : > { %v3944_v24 = vpop.f32.mrf.mxu1 }
 0x1fa   : > { %v4055_v56 = vadd.f32 %v3944_v24, %v7589_v52 }
 0x1fb   : > { %v6318_v31 = vpop.f32.mrf.mxu1  ;;  %5006 = vrot.lane.b32.xlu1 %v7715_v14, %s6573_s24 }
 0x1fc   : > { %v6365_v26 = vpop.f32.mrf.mxu0  ;;  %v4058_v34 = vadd.f32 %v6318_v31, %v7592_v10 }
 0x1fd   : > { %v7720_v33 = vadd.f32 %v6365_v26, %v4057_v4  ;;  %v3947_v54 = vpop.f32.mrf.mxu1 }
 0x1fe   : > { %v4757_v61 = vpop.f32.mrf.mxu0  ;;  %v4056_v41 = vadd.f32 %v3947_v54, %v7595_v23 }
 0x1ff   : > { %5016 = vrot.lane.b32.xlu0 %v7720_v33, %s6573_s24  ;;  %v7726_v30 = vadd.f32 %v4757_v61, %v4055_v56 }
 0x200   : > { %v6366_v29 = vpop.f32.mrf.mxu0 }
 0x201   : > { %v7728_v59 = vadd.f32 %v6366_v29, %v4058_v34 }
 0x202   : > { %v4760_v52 = vpop.f32.mrf.mxu0 }
 0x203   : > { %v6321_v36 = vpop.f32.mrf.mxu1  ;;  %5018 = vrot.lane.b32.xlu1 %v7728_v59, %s6573_s24  ;;  %5012 = vrot.lane.b32.xlu0 %v7726_v30, %s6573_s24  ;;  %v7735_v18 = vadd.f32 %v4760_v52, %v4056_v41 }
 0x204   : > { %v4061_v21 = vadd.f32 %v6321_v36, %v7598_v37 }
 0x205   : > { %v3960_v10 = vpop.f32.mrf.mxu1 }
 0x206   : > { %v4059_v23 = vadd.f32 %v3960_v10, %v7601_v11 }
 0x207   : > { %v6322_v45 = vpop.f32.mrf.mxu1  ;;  %5014 = vrot.lane.b32.xlu1 %v7735_v18, %s6573_s24 }
 0x208   : > { %v4062_v19 = vadd.f32 %v6322_v45, %v7604_v48 }
 0x209   : > { %v6369_v0 = vpop.f32.mrf.mxu0  ;;  %v3963_v57 = vpop.f32.mrf.mxu1 }
 0x20a   : > { %v7740_v44 = vadd.f32 %v6369_v0, %v4061_v21  ;;  %v4060_v8 = vadd.f32 %v3963_v57, %v7607_v17 }
 0x20b   : > { %v4773_v46 = vpop.f32.mrf.mxu0 }
 0x20c   : > { %5024 = vrot.lane.b32.xlu0 %v7740_v44, %s6573_s24  ;;  %v7746_v53 = vadd.f32 %v4773_v46, %v4059_v23 }
 0x20d   : > { %v6370_v60 = vpop.f32.mrf.mxu0 }
 0x20e   : > { %v7748_v37 = vadd.f32 %v6370_v60, %v4062_v19 }
 0x20f   : > { %v6325_v7 = vpop.f32.mrf.mxu1  ;;  %v4776_v11 = vpop.f32.mrf.mxu0 }
 0x210   : > { %5026 = vrot.lane.b32.xlu1 %v7748_v37, %s6573_s24  ;;  %5020 = vrot.lane.b32.xlu0 %v7746_v53, %s6573_s24  ;;  %v7755_v50 = vadd.f32 %v4776_v11, %v4060_v8  ;;  %v4065_v63 = vadd.f32 %v6325_v7, %v7610_v9 }
 0x211   : > { %v3976_v48 = vpop.f32.mrf.mxu1 }
 0x212   : > { %v4063_v17 = vadd.f32 %v3976_v48, %v7613_v1 }
 0x213   : > { %v6326_v20 = vpop.f32.mrf.mxu1 }
 0x214   : > { %5022 = vrot.lane.b32.xlu1 %v7755_v50, %s6573_s24  ;;  %v4066_v51 = vadd.f32 %v6326_v20, %v7616_v39 }
 0x215   : > { %v6373_v3 = vpop.f32.mrf.mxu0  ;;  %v3979_v24 = vpop.f32.mrf.mxu1 }
 0x216   : > { %v7760_v38 = vadd.f32 %v6373_v3, %v4065_v63  ;;  %v4064_v26 = vadd.f32 %v3979_v24, %v7619_v49 }
 0x217   : > { %v4789_v43 = vpop.f32.mrf.mxu0 }
 0x218   : > { %5032 = vrot.lane.b32.xlu0 %v7760_v38, %s6573_s24  ;;  %v7766_v31 = vadd.f32 %v4789_v43, %v4063_v17 }
 0x219   : > { %v6374_v4 = vpop.f32.mrf.mxu0 }
 0x21a   : > { %v7768_v9 = vadd.f32 %v6374_v4, %v4066_v51 }
 0x21b   : > { %v6329_v56 = vpop.f32.mrf.mxu1  ;;  %v4792_v1 = vpop.f32.mrf.mxu0 }
 0x21c   : > { %5034 = vrot.lane.b32.xlu1 %v7768_v9, %s6573_s24  ;;  %5028 = vrot.lane.b32.xlu0 %v7766_v31, %s6573_s24  ;;  %v7775_v39 = vadd.f32 %v4792_v1, %v4064_v26  ;;  %v4069_v36 = vadd.f32 %v6329_v56, %v7622_v32 }
 0x21d   : > { %v3992_v34 = vpop.f32.mrf.mxu1 }
 0x21e   : > { %v4067_v61 = vadd.f32 %v3992_v34, %v7627_v42 }
 0x21f   : > { %v6330_v54 = vpop.f32.mrf.mxu1 }
 0x220   : > { %5030 = vrot.lane.b32.xlu1 %v7775_v39, %s6573_s24  ;;  %v4070_v42 = vadd.f32 %v6330_v54, %v7631_v28 }
 0x221   : > { %v6377_v29 = vpop.f32.mrf.mxu0  ;;  %v3995_v41 = vpop.f32.mrf.mxu1 }
 0x222   : > { %v4068_v10 = vadd.f32 %v3995_v41, %v7636_v27  ;;  %v7786_v0 = vadd.f32 %v6377_v29, %v4069_v36 }
 0x223   : > { %v4805_v49 = vpop.f32.mrf.mxu0 }
 0x224   : > { %v7781_v52 = vadd.f32 %v4805_v49, %v4067_v61 }
 0x225   : > { %v6378_v21 = vpop.f32.mrf.mxu0 }
 0x226   : > { %5036 = vrot.lane.b32.xlu0 %v7781_v52, %s6573_s24  ;;  %v7795_v32 = vadd.f32 %v6378_v21, %v4070_v42 }
 0x227   : > { %v4808_v45 = vpop.f32.mrf.mxu0 }
 0x228   : > { %v7789_v23 = vadd.f32 %v4808_v45, %v4068_v10 }
 0x22a   : > { %5040 = vrot.lane.b32.xlu0 %v7786_v0, %s6573_s24  ;;  %5038 = vrot.lane.b32.xlu1 %v7789_v23, %s6573_s24 }
 0x22e   : > { %5042 = vrot.lane.b32.xlu1 %v7795_v32, %s6573_s24 }
 0x23f   : > { %v4985_v27 = vpop.permute.xlu1 %4984 }
 0x240   : > { %v5078_v19 = vadd.f32 %v4985_v27, %v7643_v58  ;;  %v5174_v46 = vsub.f32 %v7643_v58, %v4985_v27 }
 0x241   : > { %v4981_v57 = vpop.permute.xlu0 %4980 }
 0x242   : > { %v5110_v28 = vmax.f32 %v5078_v19, 0.0  ;;  %v5206_v60 = vmax.f32 %v5174_v46, 0.0  ;;  %v5076_v8 = vadd.f32 %v4981_v57, %v7645_v12  ;;  %v5172_v7 = vsub.f32 %v7645_v12, %v4981_v57 }
 0x243   : > { %v4987_v11 = vpop.permute.xlu1 %4986 }
 0x244   : > { %v5142_v48 = vmin.f32 %v5110_v28, 6.0  ;;  %v5238_v63 = vmin.f32 %v5206_v60, 6.0  ;;  %v5108_v20 = vmax.f32 %v5076_v8, 0.0  ;;  %v5204_v3 = vmax.f32 %v5172_v7, 0.0 }
 0x245   : > { %v5079_v17 = vadd.f32 %v4987_v11, %v7649_v22  ;;  %v5175_v51 = vsub.f32 %v7649_v22, %v4987_v11  ;;  %v4983_v43 = vpop.permute.xlu0 %4982 }
 0x246   : > { %v5140_v24 = vmin.f32 %v5108_v20, 6.0  ;;  %v5236_v4 = vmin.f32 %v5204_v3, 6.0  ;;  %v5077_v58 = vadd.f32 %v4983_v43, %v7653_v5  ;;  %v5173_v26 = vsub.f32 %v7653_v5, %v4983_v43 }
 0x247   : > { %v5111_v56 = vmax.f32 %v5079_v17, 0.0  ;;  %v5207_v1 = vmax.f32 %v5175_v51, 0.0  ;;  %v5270_v34 = vmul.f32 %v5238_v63, %v5142_v48 }
 0x248   : > { %v5109_v12 = vmax.f32 %v5077_v58, 0.0  ;;  %v5205_v61 = vmax.f32 %v5173_v26, 0.0  ;;  %v5268_v49 = vmul.f32 %v5236_v4, %v5140_v24 }
 0x249   : > { %v5143_v54 = vmin.f32 %v5111_v56, 6.0  ;;  %v5239_v29 = vmin.f32 %v5207_v1, 6.0  ;;  %v5302_v41 = vmul.f32 0.16666667, %v5270_v34 }
 0x24a   : > { %v5141_v36 = vmin.f32 %v5109_v12, 6.0  ;;  %v5237_v10 = vmin.f32 %v5205_v61, 6.0  ;;  %v5300_v27 = vmul.f32 0.16666667, %v5268_v49 }
 0x24b   : > { %5368 = vrot.lane.b32.xlu0 %v5302_v41, %s6573_s24  ;;  %v5271_v22 = vmul.f32 %v5239_v29, %v5143_v54 }
 0x24c   : > { %v4993_v21 = vpop.permute.xlu0 %4992  ;;  %v5269_v45 = vmul.f32 %v5237_v10, %v5141_v36 }
 0x24d   : > { %v5082_v42 = vadd.f32 %v4993_v21, %v7660_v47  ;;  %v5178_v5 = vsub.f32 %v7660_v47, %v4993_v21  ;;  %v5303_v19 = vmul.f32 0.16666667, %v5271_v22 }
 0x24e   : > { %v5301_v8 = vmul.f32 0.16666667, %v5269_v45 }
 0x24f   : > { %v5114_v46 = vmax.f32 %v5082_v42, 0.0  ;;  %v5210_v57 = vmax.f32 %v5178_v5, 0.0  ;;  %5364 = vrot.lane.b32.xlu0 %v5300_v27, %s6573_s24  ;;  %5370 = vrot.lane.b32.xlu1 %v5303_v19, %s6573_s24 }
 0x250   : > { %v4995_v28 = vpop.permute.xlu1 %4994  ;;  %v4989_v60 = vpop.permute.xlu0 %4988 }
 0x251   : > { %v5146_v7 = vmin.f32 %v5114_v46, 6.0  ;;  %v5242_v11 = vmin.f32 %v5210_v57, 6.0  ;;  %v5083_v48 = vadd.f32 %v4995_v28, %v7668_v2  ;;  %v5179_v63 = vsub.f32 %v7668_v2, %v4995_v28 }
 0x252   : > { %v5080_v20 = vadd.f32 %v4989_v60, %v7666_v15  ;;  %v5176_v47 = vsub.f32 %v7666_v15, %v4989_v60 }
 0x253   : > { %v5115_v3 = vmax.f32 %v5083_v48, 0.0  ;;  %v5211_v17 = vmax.f32 %v5179_v63, 0.0  ;;  %5366 = vrot.lane.b32.xlu1 %v5301_v8, %s6573_s24  ;;  %v5274_v51 = vmul.f32 %v5242_v11, %v5146_v7 }
 0x254   : > { %v5112_v43 = vmax.f32 %v5080_v20, 0.0  ;;  %v5208_v24 = vmax.f32 %v5176_v47, 0.0  ;;  %v4991_v4 = vpop.permute.xlu1 %4990 }
 0x255   : > { %v5147_v58 = vmin.f32 %v5115_v3, 6.0  ;;  %v5243_v26 = vmin.f32 %v5211_v17, 6.0  ;;  %v5081_v56 = vadd.f32 %v4991_v4, %v7675_v16  ;;  %v5177_v1 = vsub.f32 %v7675_v16, %v4991_v4 }
 0x256   : > { %v5144_v34 = vmin.f32 %v5112_v43, 6.0  ;;  %v5240_v2 = vmin.f32 %v5208_v24, 6.0  ;;  %v5306_v12 = vmul.f32 0.16666667, %v5274_v51 }
 0x257   : > { %v5113_v61 = vmax.f32 %v5081_v56, 0.0  ;;  %v5209_v54 = vmax.f32 %v5177_v1, 0.0  ;;  %v5275_v15 = vmul.f32 %v5243_v26, %v5147_v58 }
 0x258   : > { %5376 = vrot.lane.b32.xlu0 %v5306_v12, %s6573_s24  ;;  %v5272_v41 = vmul.f32 %v5240_v2, %v5144_v34 }
 0x259   : > { %v5001_v29 = vpop.permute.xlu0 %5000  ;;  %v5145_v49 = vmin.f32 %v5113_v61, 6.0  ;;  %v5241_v36 = vmin.f32 %v5209_v54, 6.0  ;;  %v5307_v21 = vmul.f32 0.16666667, %v5275_v15 }
 0x25a   : > { %v5086_v10 = vadd.f32 %v5001_v29, %v7680_v62  ;;  %v5182_v22 = vsub.f32 %v7680_v62, %v5001_v29  ;;  %v5304_v45 = vmul.f32 0.16666667, %v5272_v41 }
 0x25b   : > { %v5273_v5 = vmul.f32 %v5241_v36, %v5145_v49  ;;  %5378 = vrot.lane.b32.xlu1 %v5307_v21, %s6573_s24 }
 0x25c   : > { %v5118_v42 = vmax.f32 %v5086_v10, 0.0  ;;  %v5214_v16 = vmax.f32 %v5182_v22, 0.0  ;;  %5372 = vrot.lane.b32.xlu0 %v5304_v45, %s6573_s24 }
 0x25d   : > { %v5003_v27 = vpop.permute.xlu1 %5002  ;;  %v4997_v19 = vpop.permute.xlu0 %4996  ;;  %v5305_v7 = vmul.f32 0.16666667, %v5273_v5 }
 0x25e   : > { %v5150_v46 = vmin.f32 %v5118_v42, 6.0  ;;  %v5246_v57 = vmin.f32 %v5214_v16, 6.0  ;;  %v5087_v28 = vadd.f32 %v5003_v27, %v7688_v55  ;;  %v5183_v60 = vsub.f32 %v7688_v55, %v5003_v27 }
 0x25f   : > { %v5084_v8 = vadd.f32 %v4997_v19, %v7686_v25  ;;  %v5180_v62 = vsub.f32 %v7686_v25, %v4997_v19  ;;  %5374 = vrot.lane.b32.xlu1 %v5305_v7, %s6573_s24 }
 0x260   : > { %v5119_v11 = vmax.f32 %v5087_v28, 0.0  ;;  %v5215_v48 = vmax.f32 %v5183_v60, 0.0  ;;  %v5278_v63 = vmul.f32 %v5246_v57, %v5150_v46 }
 0x261   : > { %v5116_v20 = vmax.f32 %v5084_v8, 0.0  ;;  %v5212_v47 = vmax.f32 %v5180_v62, 0.0  ;;  %v4999_v3 = vpop.permute.xlu1 %4998 }
 0x262   : > { %v5151_v17 = vmin.f32 %v5119_v11, 6.0  ;;  %v5247_v51 = vmin.f32 %v5215_v48, 6.0  ;;  %v5085_v43 = vadd.f32 %v4999_v3, %v7695_v35  ;;  %v5181_v24 = vsub.f32 %v7695_v35, %v4999_v3 }
 0x263   : > { %v5148_v55 = vmin.f32 %v5116_v20, 6.0  ;;  %v5244_v4 = vmin.f32 %v5212_v47, 6.0  ;;  %v5310_v58 = vmul.f32 0.16666667, %v5278_v63 }
 0x264   : > { %v5117_v26 = vmax.f32 %v5085_v43, 0.0  ;;  %v5213_v25 = vmax.f32 %v5181_v24, 0.0  ;;  %v5279_v56 = vmul.f32 %v5247_v51, %v5151_v17 }
 0x265   : > { %v5009_v1 = vpop.permute.xlu0 %5008  ;;  %5384 = vrot.lane.b32.xlu0 %v5310_v58, %s6573_s24  ;;  %v5276_v34 = vmul.f32 %v5244_v4, %v5148_v55 }
 0x266   : > { %v5149_v2 = vmin.f32 %v5117_v26, 6.0  ;;  %v5245_v12 = vmin.f32 %v5213_v25, 6.0  ;;  %v5090_v61 = vadd.f32 %v5009_v1, %v7700_v13  ;;  %v5186_v54 = vsub.f32 %v7700_v13, %v5009_v1 }
 0x267   : > { %v5311_v15 = vmul.f32 0.16666667, %v5279_v56  ;;  %v5308_v29 = vmul.f32 0.16666667, %v5276_v34 }
 0x268   : > { %v5122_v41 = vmax.f32 %v5090_v61, 0.0  ;;  %v5218_v35 = vmax.f32 %v5186_v54, 0.0  ;;  %v5277_v49 = vmul.f32 %v5245_v12, %v5149_v2 }
 0x269   : > { %v5011_v36 = vpop.permute.xlu1 %5010  ;;  %v5005_v10 = vpop.permute.xlu0 %5004  ;;  %5386 = vrot.lane.b32.xlu1 %v5311_v15, %s6573_s24  ;;  %5380 = vrot.lane.b32.xlu0 %v5308_v29, %s6573_s24 }
 0x26a   : > { %v5154_v22 = vmin.f32 %v5122_v41, 6.0  ;;  %v5250_v21 = vmin.f32 %v5218_v35, 6.0  ;;  %v5091_v45 = vadd.f32 %v5011_v36, %v7708_v40  ;;  %v5187_v42 = vsub.f32 %v7708_v40, %v5011_v36 }
 0x26b   : > { %v5088_v16 = vadd.f32 %v5005_v10, %v7706_v6  ;;  %v5184_v13 = vsub.f32 %v7706_v6, %v5005_v10  ;;  %v5309_v5 = vmul.f32 0.16666667, %v5277_v49 }
 0x26c   : > { %v5123_v27 = vmax.f32 %v5091_v45, 0.0  ;;  %v5219_v19 = vmax.f32 %v5187_v42, 0.0  ;;  %v5282_v46 = vmul.f32 %v5250_v21, %v5154_v22 }
 0x26d   : > { %v5120_v57 = vmax.f32 %v5088_v16, 0.0  ;;  %v5216_v28 = vmax.f32 %v5184_v13, 0.0  ;;  %v5007_v60 = vpop.permute.xlu1 %5006  ;;  %5382 = vrot.lane.b32.xlu1 %v5309_v5, %s6573_s24 }
 0x26e   : > { %v5155_v8 = vmin.f32 %v5123_v27, 6.0  ;;  %v5251_v62 = vmin.f32 %v5219_v19, 6.0  ;;  %v5089_v7 = vadd.f32 %v5007_v60, %v7715_v14  ;;  %v5185_v11 = vsub.f32 %v7715_v14, %v5007_v60 }
 0x26f   : > { %v5152_v40 = vmin.f32 %v5120_v57, 6.0  ;;  %v5248_v48 = vmin.f32 %v5216_v28, 6.0  ;;  %v5314_v63 = vmul.f32 0.16666667, %v5282_v46 }
 0x270   : > { %v5121_v20 = vmax.f32 %v5089_v7, 0.0  ;;  %v5217_v6 = vmax.f32 %v5185_v11, 0.0  ;;  %v5283_v47 = vmul.f32 %v5251_v62, %v5155_v8 }
 0x271   : > { %5392 = vrot.lane.b32.xlu0 %v5314_v63, %s6573_s24  ;;  %v5280_v3 = vmul.f32 %v5248_v48, %v5152_v40  ;;  %v5017_v43 = vpop.permute.xlu0 %5016 }
 0x272   : > { %v5153_v17 = vmin.f32 %v5121_v20, 6.0  ;;  %v5249_v51 = vmin.f32 %v5217_v6, 6.0  ;;  %v5315_v24 = vmul.f32 0.16666667, %v5283_v47  ;;  %v5094_v55 = vadd.f32 %v5017_v43, %v7720_v33 }
 0x273   : > { %v5190_v4 = vsub.f32 %v7720_v33, %v5017_v43  ;;  %v5312_v58 = vmul.f32 0.16666667, %v5280_v3 }
 0x274   : > { %5394 = vrot.lane.b32.xlu1 %v5315_v24, %s6573_s24  ;;  %v5281_v14 = vmul.f32 %v5249_v51, %v5153_v17  ;;  %v5126_v26 = vmax.f32 %v5094_v55, 0.0 }
 0x275   : > { %v5222_v25 = vmax.f32 %v5190_v4, 0.0  ;;  %5388 = vrot.lane.b32.xlu0 %v5312_v58, %s6573_s24  ;;  %v5019_v56 = vpop.permute.xlu1 %5018  ;;  %v5013_v1 = vpop.permute.xlu0 %5012 }
 0x276   : > { %v5313_v34 = vmul.f32 0.16666667, %v5281_v14  ;;  %v5158_v2 = vmin.f32 %v5126_v26, 6.0  ;;  %v5095_v61 = vadd.f32 %v5019_v56, %v7728_v59  ;;  %v5191_v54 = vsub.f32 %v7728_v59, %v5019_v56 }
 0x277   : > { %v5254_v12 = vmin.f32 %v5222_v25, 6.0  ;;  %v5092_v15 = vadd.f32 %v5013_v1, %v7726_v30  ;;  %v5188_v33 = vsub.f32 %v7726_v30, %v5013_v1 }
 0x278   : > { %5390 = vrot.lane.b32.xlu1 %v5313_v34, %s6573_s24  ;;  %v5127_v29 = vmax.f32 %v5095_v61, 0.0  ;;  %v5223_v41 = vmax.f32 %v5191_v54, 0.0 }
 0x279   : > { %v5286_v35 = vmul.f32 %v5254_v12, %v5158_v2  ;;  %v5124_v49 = vmax.f32 %v5092_v15, 0.0  ;;  %v5220_v36 = vmax.f32 %v5188_v33, 0.0  ;;  %v5015_v10 = vpop.permute.xlu1 %5014 }
 0x27a   : > { %v5159_v22 = vmin.f32 %v5127_v29, 6.0  ;;  %v5255_v21 = vmin.f32 %v5223_v41, 6.0  ;;  %v5093_v45 = vadd.f32 %v5015_v10, %v7735_v18  ;;  %v5189_v42 = vsub.f32 %v7735_v18, %v5015_v10 }
 0x27b   : > { %v5156_v16 = vmin.f32 %v5124_v49, 6.0  ;;  %v5252_v59 = vmin.f32 %v5220_v36, 6.0  ;;  %v5318_v13 = vmul.f32 0.16666667, %v5286_v35 }
 0x27c   : > { %v5125_v5 = vmax.f32 %v5093_v45, 0.0  ;;  %v5221_v27 = vmax.f32 %v5189_v42, 0.0  ;;  %v5287_v30 = vmul.f32 %v5255_v21, %v5159_v22 }
 0x27d   : > { %5400 = vrot.lane.b32.xlu0 %v5318_v13, %s6573_s24  ;;  %v5284_v46 = vmul.f32 %v5252_v59, %v5156_v16 }
 0x27e   : > { %v5025_v19 = vpop.permute.xlu0 %5024  ;;  %v5157_v57 = vmin.f32 %v5125_v5, 6.0  ;;  %v5253_v28 = vmin.f32 %v5221_v27, 6.0  ;;  %v5319_v62 = vmul.f32 0.16666667, %v5287_v30 }
 0x27f   : > { %v5098_v60 = vadd.f32 %v5025_v19, %v7740_v44  ;;  %v5194_v8 = vsub.f32 %v7740_v44, %v5025_v19  ;;  %v5316_v7 = vmul.f32 0.16666667, %v5284_v46 }
 0x280   : > { %v5285_v40 = vmul.f32 %v5253_v28, %v5157_v57  ;;  %5402 = vrot.lane.b32.xlu1 %v5319_v62, %s6573_s24 }
 0x281   : > { %v5130_v11 = vmax.f32 %v5098_v60, 0.0  ;;  %v5226_v18 = vmax.f32 %v5194_v8, 0.0  ;;  %5396 = vrot.lane.b32.xlu0 %v5316_v7, %s6573_s24 }
 0x282   : > { %v5027_v48 = vpop.permute.xlu1 %5026  ;;  %v5021_v63 = vpop.permute.xlu0 %5020  ;;  %v5317_v51 = vmul.f32 0.16666667, %v5285_v40 }
 0x283   : > { %v5162_v20 = vmin.f32 %v5130_v11, 6.0  ;;  %v5258_v6 = vmin.f32 %v5226_v18, 6.0  ;;  %v5099_v47 = vadd.f32 %v5027_v48, %v7748_v37  ;;  %v5195_v3 = vsub.f32 %v7748_v37, %v5027_v48 }
 0x284   : > { %v5096_v17 = vadd.f32 %v5021_v63, %v7746_v53  ;;  %v5192_v44 = vsub.f32 %v7746_v53, %v5021_v63  ;;  %5398 = vrot.lane.b32.xlu1 %v5317_v51, %s6573_s24 }
 0x285   : > { %v5131_v43 = vmax.f32 %v5099_v47, 0.0  ;;  %v5227_v24 = vmax.f32 %v5195_v3, 0.0  ;;  %v5290_v55 = vmul.f32 %v5258_v6, %v5162_v20 }
 0x286   : > { %v5128_v4 = vmax.f32 %v5096_v17, 0.0  ;;  %v5224_v58 = vmax.f32 %v5192_v44, 0.0  ;;  %v5023_v14 = vpop.permute.xlu1 %5022 }
 0x287   : > { %v5163_v26 = vmin.f32 %v5131_v43, 6.0  ;;  %v5259_v25 = vmin.f32 %v5227_v24, 6.0  ;;  %v5097_v56 = vadd.f32 %v5023_v14, %v7755_v50  ;;  %v5193_v1 = vsub.f32 %v7755_v50, %v5023_v14 }
 0x288   : > { %v5160_v37 = vmin.f32 %v5128_v4, 6.0  ;;  %v5256_v34 = vmin.f32 %v5224_v58, 6.0  ;;  %v5322_v2 = vmul.f32 0.16666667, %v5290_v55 }
 0x289   : > { %v5129_v12 = vmax.f32 %v5097_v56, 0.0  ;;  %v5225_v53 = vmax.f32 %v5193_v1, 0.0  ;;  %v5291_v61 = vmul.f32 %v5259_v25, %v5163_v26 }
 0x28a   : > { %v5033_v54 = vpop.permute.xlu0 %5032  ;;  %5408 = vrot.lane.b32.xlu0 %v5322_v2, %s6573_s24  ;;  %v5288_v15 = vmul.f32 %v5256_v34, %v5160_v37 }
 0x28b   : > { %v5161_v33 = vmin.f32 %v5129_v12, 6.0  ;;  %v5257_v29 = vmin.f32 %v5225_v53, 6.0  ;;  %v5102_v41 = vadd.f32 %v5033_v54, %v7760_v38  ;;  %v5198_v35 = vsub.f32 %v7760_v38, %v5033_v54 }
 0x28c   : > { %v5323_v49 = vmul.f32 0.16666667, %v5291_v61  ;;  %v5320_v36 = vmul.f32 0.16666667, %v5288_v15 }
 0x28d   : > { %v5134_v10 = vmax.f32 %v5102_v41, 0.0  ;;  %v5230_v50 = vmax.f32 %v5198_v35, 0.0  ;;  %v5289_v22 = vmul.f32 %v5257_v29, %v5161_v33 }
 0x28e   : > { %v5035_v21 = vpop.permute.xlu1 %5034  ;;  %v5029_v45 = vpop.permute.xlu0 %5028  ;;  %5410 = vrot.lane.b32.xlu1 %v5323_v49, %s6573_s24  ;;  %5404 = vrot.lane.b32.xlu0 %v5320_v36, %s6573_s24 }
 0x28f   : > { %v5166_v42 = vmin.f32 %v5134_v10, 6.0  ;;  %v5262_v16 = vmin.f32 %v5230_v50, 6.0  ;;  %v5103_v59 = vadd.f32 %v5035_v21, %v7768_v9  ;;  %v5199_v13 = vsub.f32 %v7768_v9, %v5035_v21 }
 0x290   : > { %v5100_v5 = vadd.f32 %v5029_v45, %v7766_v31  ;;  %v5196_v38 = vsub.f32 %v7766_v31, %v5029_v45  ;;  %v5321_v27 = vmul.f32 0.16666667, %v5289_v22 }
 0x291   : > { %v5135_v30 = vmax.f32 %v5103_v59, 0.0  ;;  %v5231_v19 = vmax.f32 %v5199_v13, 0.0  ;;  %v5294_v46 = vmul.f32 %v5262_v16, %v5166_v42 }
 0x292   : > { %v5132_v57 = vmax.f32 %v5100_v5, 0.0  ;;  %v5228_v28 = vmax.f32 %v5196_v38, 0.0  ;;  %v5031_v60 = vpop.permute.xlu1 %5030  ;;  %5406 = vrot.lane.b32.xlu1 %v5321_v27, %s6573_s24 }
 0x293   : > { %v5167_v8 = vmin.f32 %v5135_v30, 6.0  ;;  %v5263_v62 = vmin.f32 %v5231_v19, 6.0  ;;  %v5101_v7 = vadd.f32 %v5031_v60, %v7775_v39  ;;  %v5197_v11 = vsub.f32 %v7775_v39, %v5031_v60 }
 0x294   : > { %v5164_v9 = vmin.f32 %v5132_v57, 6.0  ;;  %v5260_v18 = vmin.f32 %v5228_v28, 6.0  ;;  %v5326_v40 = vmul.f32 0.16666667, %v5294_v46 }
 0x295   : > { %v5133_v48 = vmax.f32 %v5101_v7, 0.0  ;;  %v5229_v31 = vmax.f32 %v5197_v11, 0.0  ;;  %v5295_v63 = vmul.f32 %v5263_v62, %v5167_v8 }
 0x296   : > { %5416 = vrot.lane.b32.xlu0 %v5326_v40, %s6573_s24  ;;  %v5292_v20 = vmul.f32 %v5260_v18, %v5164_v9 }
 0x297   : > { %v5165_v6 = vmin.f32 %v5133_v48, 6.0  ;;  %v5261_v47 = vmin.f32 %v5229_v31, 6.0  ;;  %v5327_v3 = vmul.f32 0.16666667, %v5295_v63 }
 0x298   : > { %v5037_v17 = vpop.permute.xlu0 %5036  ;;  %v5324_v44 = vmul.f32 0.16666667, %v5292_v20 }
 0x299   : > { %v5104_v51 = vadd.f32 %v5037_v17, %v7781_v52  ;;  %v5200_v43 = vsub.f32 %v7781_v52, %v5037_v17  ;;  %5418 = vrot.lane.b32.xlu1 %v5327_v3, %s6573_s24  ;;  %v5293_v39 = vmul.f32 %v5261_v47, %v5165_v6 }
 0x29a   : > { %5412 = vrot.lane.b32.xlu0 %v5324_v44, %s6573_s24 }
 0x29b   : > { %v5136_v24 = vmax.f32 %v5104_v51, 0.0  ;;  %v5232_v55 = vmax.f32 %v5200_v43, 0.0  ;;  %v5325_v4 = vmul.f32 0.16666667, %v5293_v39 }
 0x29c   : > { %v5041_v58 = vpop.permute.xlu0 %5040  ;;  %v5039_v14 = vpop.permute.xlu1 %5038 }
 0x29d   : > { %v5168_v26 = vmin.f32 %v5136_v24, 6.0  ;;  %v5264_v25 = vmin.f32 %v5232_v55, 6.0  ;;  %v5106_v56 = vadd.f32 %v5041_v58, %v7786_v0  ;;  %v5202_v1 = vsub.f32 %v7786_v0, %v5041_v58  ;;  %5414 = vrot.lane.b32.xlu1 %v5325_v4, %s6573_s24 }
 0x29e   : > { %v5105_v52 = vadd.f32 %v5039_v14, %v7789_v23  ;;  %v5201_v37 = vsub.f32 %v7789_v23, %v5039_v14 }
 0x29f   : > { %v5138_v34 = vmax.f32 %v5106_v56, 0.0  ;;  %v5234_v2 = vmax.f32 %v5202_v1, 0.0  ;;  %v5296_v12 = vmul.f32 %v5264_v25, %v5168_v26 }
 0x2a0   : > { %v5137_v53 = vmax.f32 %v5105_v52, 0.0  ;;  %v5233_v61 = vmax.f32 %v5201_v37, 0.0  ;;  %v5043_v54 = vpop.permute.xlu1 %5042 }
 0x2a1   : > { %v5170_v15 = vmin.f32 %v5138_v34, 6.0  ;;  %v5266_v33 = vmin.f32 %v5234_v2, 6.0  ;;  %v5107_v29 = vadd.f32 %v5043_v54, %v7795_v32  ;;  %v5203_v41 = vsub.f32 %v7795_v32, %v5043_v54 }
 0x2a2   : > { %v5169_v35 = vmin.f32 %v5137_v53, 6.0  ;;  %v5265_v0 = vmin.f32 %v5233_v61, 6.0  ;;  %v5328_v49 = vmul.f32 0.16666667, %v5296_v12 }
 0x2a3   : > { %v5139_v36 = vmax.f32 %v5107_v29, 0.0  ;;  %v5235_v10 = vmax.f32 %v5203_v41, 0.0  ;;  %v5298_v23 = vmul.f32 %v5266_v33, %v5170_v15 }
 0x2a4   : > { %5420 = vrot.lane.b32.xlu0 %v5328_v49, %s6573_s24  ;;  %v5297_v50 = vmul.f32 %v5265_v0, %v5169_v35 }
 0x2a5   : > { %v5171_v22 = vmin.f32 %v5139_v36, 6.0  ;;  %v5267_v21 = vmin.f32 %v5235_v10, 6.0  ;;  %v5330_v45 = vmul.f32 0.16666667, %v5298_v23 }
 0x2a6   : > { %v5329_v42 = vmul.f32 0.16666667, %v5297_v50 }
 0x2a7   : > { %v5299_v16 = vmul.f32 %v5267_v21, %v5171_v22 }
 0x2a8   : > { %5424 = vrot.lane.b32.xlu0 %v5330_v45, %s6573_s24  ;;  %5422 = vrot.lane.b32.xlu1 %v5329_v42, %s6573_s24 }
 0x2a9   : > { %v5331_v32 = vmul.f32 0.16666667, %v5299_v16 }
 0x2ac   : > { %5426 = vrot.lane.b32.xlu1 %v5331_v32, %s6573_s24 }
 0x2bd   : > { %v5369_v59 = vpop.permute.xlu0 %5368 }
 0x2be   : > { %5463 = vst.msk [vmem:[%s7898_s27 + $0x10] sm:$0xff] %vm5460_vm2, %v5369_v59 }
 0x2c1   : > { %v5365_v13 = vpop.permute.xlu0 %5364  ;;  %v5371_v5 = vpop.permute.xlu1 %5370 }
 0x2c2   : > { %5461 = vst.msk [vmem:[%s7898_s27] sm:$0xff] %vm5460_vm2, %v5365_v13  ;;  %5464 = vst.msk [vmem:[%s7898_s27 + $0x18] sm:$0xff] %vm5460_vm2, %v5371_v5 }
 0x2c5   : > { %v5367_v38 = vpop.permute.xlu1 %5366 }
 0x2c6   : > { %5462 = vst.msk [vmem:[%s7898_s27 + $0x8] sm:$0xff] %vm5460_vm2, %v5367_v38 }
 0x2ca   : > { %v5377_v27 = vpop.permute.xlu0 %5376 }
 0x2cb   : > { %5467 = vst.msk [vmem:[%s7898_s27 + $0x30] sm:$0xff] %vm5460_vm2, %v5377_v27 }
 0x2cd   : > { %v5379_v30 = vpop.permute.xlu1 %5378 }
 0x2ce   : > { %v5373_v19 = vpop.permute.xlu0 %5372  ;;  %5468 = vst.msk [vmem:[%s7898_s27 + $0x38] sm:$0xff] %vm5460_vm2, %v5379_v30 }
 0x2cf   : > { %5465 = vst.msk [vmem:[%s7898_s27 + $0x20] sm:$0xff] %vm5460_vm2, %v5373_v19 }
 0x2d1   : > { %v5375_v46 = vpop.permute.xlu1 %5374 }
 0x2d2   : > { %5466 = vst.msk [vmem:[%s7898_s27 + $0x28] sm:$0xff] %vm5460_vm2, %v5375_v46 }
 0x2d7   : > { %v5385_v57 = vpop.permute.xlu0 %5384 }
 0x2d8   : > { %5471 = vst.msk [vmem:[%s7898_s27 + $0x50] sm:$0xff] %vm5460_vm2, %v5385_v57 }
 0x2db   : > { %v5387_v28 = vpop.permute.xlu1 %5386  ;;  %v5381_v60 = vpop.permute.xlu0 %5380 }
 0x2dc   : > { %5472 = vst.msk [vmem:[%s7898_s27 + $0x58] sm:$0xff] %vm5460_vm2, %v5387_v28  ;;  %5469 = vst.msk [vmem:[%s7898_s27 + $0x40] sm:$0xff] %vm5460_vm2, %v5381_v60 }
 0x2df   : > { %v5383_v8 = vpop.permute.xlu1 %5382 }
 0x2e0   : > { %5470 = vst.msk [vmem:[%s7898_s27 + $0x48] sm:$0xff] %vm5460_vm2, %v5383_v8 }
 0x2e3   : > { %v5393_v62 = vpop.permute.xlu0 %5392 }
 0x2e4   : > { %5475 = vst.msk [vmem:[%s7898_s27 + $0x70] sm:$0xff] %vm5460_vm2, %v5393_v62 }
 0x2e6   : > { %v5395_v7 = vpop.permute.xlu1 %5394 }
 0x2e7   : > { %5476 = vst.msk [vmem:[%s7898_s27 + $0x78] sm:$0xff] %vm5460_vm2, %v5395_v7  ;;  %v5389_v11 = vpop.permute.xlu0 %5388 }
 0x2e8   : > { %5473 = vst.msk [vmem:[%s7898_s27 + $0x60] sm:$0xff] %vm5460_vm2, %v5389_v11 }
 0x2ea   : > { %v5391_v9 = vpop.permute.xlu1 %5390 }
 0x2eb   : > { %5474 = vst.msk [vmem:[%s7898_s27 + $0x68] sm:$0xff] %vm5460_vm2, %v5391_v9 }
 0x2ef   : > { %v5401_v18 = vpop.permute.xlu0 %5400 }
 0x2f0   : > { %5479 = vst.msk [vmem:[%s7898_s27 + $0x90] sm:$0xff] %vm5460_vm2, %v5401_v18 }
 0x2f2   : > { %v5403_v40 = vpop.permute.xlu1 %5402 }
 0x2f3   : > { %v5397_v48 = vpop.permute.xlu0 %5396  ;;  %5480 = vst.msk [vmem:[%s7898_s27 + $0x98] sm:$0xff] %vm5460_vm2, %v5403_v40 }
 0x2f4   : > { %5477 = vst.msk [vmem:[%s7898_s27 + $0x80] sm:$0xff] %vm5460_vm2, %v5397_v48 }
 0x2f6   : > { %v5399_v31 = vpop.permute.xlu1 %5398 }
 0x2f7   : > { %5478 = vst.msk [vmem:[%s7898_s27 + $0x88] sm:$0xff] %vm5460_vm2, %v5399_v31 }
 0x2fc   : > { %v5409_v63 = vpop.permute.xlu0 %5408 }
 0x2fd   : > { %5483 = vst.msk [vmem:[%s7898_s27 + $0xb0] sm:$0xff] %vm5460_vm2, %v5409_v63 }
 0x300   : > { %v5411_v20 = vpop.permute.xlu1 %5410  ;;  %v5405_v6 = vpop.permute.xlu0 %5404 }
 0x301   : > { %5484 = vst.msk [vmem:[%s7898_s27 + $0xb8] sm:$0xff] %vm5460_vm2, %v5411_v20  ;;  %5481 = vst.msk [vmem:[%s7898_s27 + $0xa0] sm:$0xff] %vm5460_vm2, %v5405_v6 }
 0x304   : > { %v5407_v47 = vpop.permute.xlu1 %5406 }
 0x305   : > { %5482 = vst.msk [vmem:[%s7898_s27 + $0xa8] sm:$0xff] %vm5460_vm2, %v5407_v47 }
 0x308   : > { %v5417_v3 = vpop.permute.xlu0 %5416 }
 0x309   : > { %5487 = vst.msk [vmem:[%s7898_s27 + $0xd0] sm:$0xff] %vm5460_vm2, %v5417_v3 }
 0x30b   : > { %v5419_v17 = vpop.permute.xlu1 %5418 }
 0x30c   : > { %5488 = vst.msk [vmem:[%s7898_s27 + $0xd8] sm:$0xff] %vm5460_vm2, %v5419_v17  ;;  %v5413_v44 = vpop.permute.xlu0 %5412 }
 0x30d   : > { %5485 = vst.msk [vmem:[%s7898_s27 + $0xc0] sm:$0xff] %vm5460_vm2, %v5413_v44 }
 0x30f   : > { %v5415_v51 = vpop.permute.xlu1 %5414 }
 0x310   : > { %5486 = vst.msk [vmem:[%s7898_s27 + $0xc8] sm:$0xff] %vm5460_vm2, %v5415_v51 }
 0x316   : > { %v5421_v43 = vpop.permute.xlu0 %5420 }
 0x317   : > { %5489 = vst.msk [vmem:[%s7898_s27 + $0xe0] sm:$0xff] %vm5460_vm2, %v5421_v43 }
 0x31a   : > { %v5425_v39 = vpop.permute.xlu0 %5424  ;;  %v5423_v24 = vpop.permute.xlu1 %5422 }
 0x31b   : > { %5491 = vst.msk [vmem:[%s7898_s27 + $0xf0] sm:$0xff] %vm5460_vm2, %v5425_v39  ;;  %5490 = vst.msk [vmem:[%s7898_s27 + $0xe8] sm:$0xff] %vm5460_vm2, %v5423_v24 }
 0x31e   : > { %v5427_v55 = vpop.permute.xlu1 %5426 }
 0x31f   : > { %5492 = vst.msk [vmem:[%s7898_s27 + $0xf8] sm:$0xff] %vm5460_vm2, %v5427_v55 }
 0x320   : > { %6523 = shalt.err (!%p6520_p3)
}
 0x321   : > { %s6524_s16 = scalar_lea.hbm %s7967_s5, 4096  ;;  %s6528_s22 = scalar_lea.hbm %s8017_s2, 8192 }
 0x322   : > { %p6525_p4 = scmp.ne.s32.totalorder %s7967_s5, %s6524_s16  ;;  %p6529_p9 = scmp.lt.s32.totalorder %s7967_s5, %s8017_s2 }
 0x323   : > { %p6530_p10 = scmp.lt.s32.totalorder %s6528_s22, %s6524_s16 }
 0x324   : > { %p6526_p7 = pnand %p6525_p4, %p6630_p5 }
 0x325   : > { %p6531_p11 = por %p6530_p10, %p6529_p9 }
 0x326   : > { %p6527_p8 = pneg %p6526_p7 }
 0x328   : > { %p6532_p12 = pnand %p6531_p11, %p6527_p8 }
 0x32a   : > { %6535 = shalt.err (!%p6532_p12)
}
 0x32b   : > { %s6575_s24 = smov 128   ;;  %s6576_s25 = smov 8  }
 0x32c   : > { %6395 = dma.vmem_to_hbm [thread:$0]  (%p6630_p5), %s7969_s29, 4096, %s7967_s5, %s7975_s13, %s6575_s24, %s6575_s24, %s6576_s25  }
 0x32d PF: > { %p6401_p13 = scmp.ge.s32.totalorder %s6570_s12, 2  ;;  %s5523_s26 = sand.u32 1, %s6558_s9  }
 0x32e   : > { %s5524_s27 = scalar_lea.sflag [#allocation5], %s5523_s26 }
 0x32f   : > { %p6398_p0 = pnand %p6401_p13, %p6634_p6 }
 0x331   : > { %p6399_p1 = pneg %p6398_p0 }
 0x333   : > { %6553 = dma.done.wait (%p6399_p1), %s5524_s27, 4096  }
 0x334   : > { %6555 = vsyncadd (%p6399_p1), %s5524_s27, 4294963200  ;;  %p12_p2 = scmp.ge.s32.totalorder %s6617_s15, 4   ;;  %s8084_s9 = smov %s6562_s10 }
 0x335   : > { %s8085_s10 = smov %s6566_s11  ;;  %s8086_s11 = smov %s6628_s18 }
 0x336   : > { %s8087_s12 = smov %s6617_s15  ;;  %14 = sbr.rel (!%p12_p2) target bundleno = 3 (0x3), region = 69 }
 0x33b   :  { %5529 = vsyncpa [#allocation5], 1 }
 0x33c   :  { %5531 = vsyncpa [#allocation5 + $0x1], 1 }

</bundles_post_ra>
